<compile_context>
chip_gen: v5e
topology: v5e:2x2
jax: 0.10.0
libtpu: 0.0.40
codegen_flags: <defaults>
</compile_context>

<pallas_src>
import functools

import jax
import jax.numpy as jnp
import numpy as np
from jax import lax
from jax.experimental import pallas as pl
from jax.experimental.pallas import tpu as pltpu


def _vmem_spec():
    return pl.BlockSpec(memory_space=pltpu.MemorySpace.VMEM)


# ----------------------------------------------------------------------------
# LSTM cell math (PyTorch gate order i, f, g, o).
# sigmoid / tanh are applied once at full (B, 4H) width, then gates sliced.
# ----------------------------------------------------------------------------
def _lstm_gates(gates, c_prev, H):
    sg = jax.nn.sigmoid(gates)          # (B, 4H) — one full-width EUP pass
    th = jnp.tanh(gates)                # (B, 4H) — one full-width EUP pass
    i = sg[:, 0 * H:1 * H]
    f = sg[:, 1 * H:2 * H]
    g = th[:, 2 * H:3 * H]
    o = sg[:, 3 * H:4 * H]
    c = f * c_prev + i * g
    h = o * jnp.tanh(c)
    return h, c


# ----------------------------------------------------------------------------
# One bidirectional LSTM layer (not the last): both directions fused, time loop
# fully unrolled in-kernel, only h @ W_hh on the serial chain.
# ----------------------------------------------------------------------------
def _bilstm_layer_kernel(T, H, gxf_ref, gxr_ref, whhf_ref, whhr_ref,
                         outf_ref, outr_ref):
    whh_f = whhf_ref[...]               # (H, 4H)
    whh_r = whhr_ref[...]
    B = gxf_ref.shape[1]
    z = jnp.zeros((B, H), jnp.float32)

    h_f = c_f = h_r = c_r = z
    # T is small & static -> plain Python loop fully unrolls (straight-line code).
    for s in range(T):
        rt = T - 1 - s
        g_f = gxf_ref[s] + jnp.dot(h_f, whh_f, preferred_element_type=jnp.float32)
        g_r = gxr_ref[rt] + jnp.dot(h_r, whh_r, preferred_element_type=jnp.float32)
        h_f, c_f = _lstm_gates(g_f, c_f, H)
        h_r, c_r = _lstm_gates(g_r, c_r, H)
        outf_ref[s] = h_f
        outr_ref[rt] = h_r


def bilstm_layer(gx_f, gx_r, w_hh_f, w_hh_r, *, hidden):
    T, B, _ = gx_f.shape
    return pl.pallas_call(
        functools.partial(_bilstm_layer_kernel, T, hidden),
        out_shape=(jax.ShapeDtypeStruct((T, B, hidden), jnp.float32),
                   jax.ShapeDtypeStruct((T, B, hidden), jnp.float32)),
        in_specs=[_vmem_spec() for _ in range(4)],
        out_specs=(_vmem_spec(), _vmem_spec()),
    )(gx_f, gx_r, w_hh_f, w_hh_r)


# ----------------------------------------------------------------------------
# Last bidirectional layer fused with the head:
# running max-over-time in the loop carry, then Linear + Softmax in-kernel.
# ----------------------------------------------------------------------------
def _bilstm_head_kernel(T, H, gxf_ref, gxr_ref, whhf_ref, whhr_ref,
                        wfc_ref, bfc_ref, out_ref):
    whh_f = whhf_ref[...]
    whh_r = whhr_ref[...]
    B = gxf_ref.shape[1]
    z = jnp.zeros((B, H), jnp.float32)
    neg = jnp.full((B, H), -jnp.inf, jnp.float32)

    h_f = c_f = h_r = c_r = z
    m_f = m_r = neg
    for s in range(T):
        rt = T - 1 - s
        g_f = gxf_ref[s] + jnp.dot(h_f, whh_f, preferred_element_type=jnp.float32)
        g_r = gxr_ref[rt] + jnp.dot(h_r, whh_r, preferred_element_type=jnp.float32)
        h_f, c_f = _lstm_gates(g_f, c_f, H)
        h_r, c_r = _lstm_gates(g_r, c_r, H)
        m_f = jnp.maximum(m_f, h_f)     # running max over time, forward half
        m_r = jnp.maximum(m_r, h_r)     # running max over time, reverse half

    # pooled = concat([m_f, m_r]);  logits = pooled @ W_fc + b  (split-weight
    # form, no in-kernel concat).
    w_fc = wfc_ref[...]                 # (2H, C)
    logits = (jnp.dot(m_f, w_fc[:H], preferred_element_type=jnp.float32)
              + jnp.dot(m_r, w_fc[H:], preferred_element_type=jnp.float32)
              + bfc_ref[...])           # (B, C)
    mx = jnp.max(logits, axis=1, keepdims=True)
    e = jnp.exp(logits - mx)
    denom = jnp.sum(e, axis=1, keepdims=True)
    out_ref[...] = (e * pl.reciprocal(denom, approx=True)).astype(out_ref.dtype)


def bilstm_head(gx_f, gx_r, w_hh_f, w_hh_r, w_fc, b_fc, *, hidden):
    T, B, _ = gx_f.shape
    C = w_fc.shape[1]
    return pl.pallas_call(
        functools.partial(_bilstm_head_kernel, T, hidden),
        out_shape=jax.ShapeDtypeStruct((B, C), jnp.float32),
        in_specs=[_vmem_spec() for _ in range(6)],
        out_specs=_vmem_spec(),
    )(gx_f, gx_r, w_hh_f, w_hh_r, w_fc, b_fc)


# ----------------------------------------------------------------------------
# Full model.  Glue in plain XLA: embedding gather, transpose, and the hoisted
# per-layer input projections (one big matmul per layer/direction).
# ----------------------------------------------------------------------------
def model_forward(tokens, params, *, num_layers, hidden_size):
    H = hidden_size
    # Embedding gather stays in XLA (data-dependent row gather).
    emb = jnp.take(params["embedding"], tokens, axis=0)          # (B, T, E)
    x_f = jnp.transpose(emb, (1, 0, 2)).astype(jnp.float32)      # (T, B, E)
    x_r = None                                                   # rev half (layers > 0)

    out = None
    for l in range(num_layers):
        w_ih_f = params[f"w_ih_l{l}"]          # (D_in, 4H)
        w_ih_r = params[f"w_ih_l{l}_rev"]
        b_f = params[f"b_l{l}"]                # (1, 4H)
        b_r = params[f"b_l{l}_rev"]

        if l == 0:
            gx_f = jnp.einsum("tbd,df->tbf", x_f, w_ih_f) + b_f
            gx_r = jnp.einsum("tbd,df->tbf", x_f, w_ih_r) + b_r
        else:
            # Input is [h_fwd, h_rev]; split-weight form avoids any concat.
            gx_f = (jnp.einsum("tbh,hf->tbf", x_f, w_ih_f[:H])
                    + jnp.einsum("tbh,hf->tbf", x_r, w_ih_f[H:]) + b_f)
            gx_r = (jnp.einsum("tbh,hf->tbf", x_f, w_ih_r[:H])
                    + jnp.einsum("tbh,hf->tbf", x_r, w_ih_r[H:]) + b_r)

        w_hh_f = params[f"w_hh_l{l}"]
        w_hh_r = params[f"w_hh_l{l}_rev"]
        if l == num_layers - 1:
            out = bilstm_head(gx_f, gx_r, w_hh_f, w_hh_r,
                              params["w_fc"], params["b_fc"], hidden=H)
        else:
            x_f, x_r = bilstm_layer(gx_f, gx_r, w_hh_f, w_hh_r, hidden=H)
    return out


# ----------------------------------------------------------------------------
# Pure-JAX reference (lax.scan LSTM) for a correctness check
# ----------------------------------------------------------------------------
def _ref_dir(x_tbd, w_ih_t, w_hh_t, b, reverse):
    T, B, D = x_tbd.shape
    H = w_hh_t.shape[0]
    xs = x_tbd[::-1] if reverse else x_tbd

    def step(carry, x_t):
        h, c = carry
        g = x_t @ w_ih_t + h @ w_hh_t + b
        i = jax.nn.sigmoid(g[:, :H])
        f = jax.nn.sigmoid(g[:, H:2 * H])
        gg = jnp.tanh(g[:, 2 * H:3 * H])
        o = jax.nn.sigmoid(g[:, 3 * H:4 * H])
        c = f * c + i * gg
        h = o * jnp.tanh(c)
        return (h, c), h

    init = (jnp.zeros((B, H), jnp.float32), jnp.zeros((B, H), jnp.float32))
    _, hs = lax.scan(step, init, xs)
    return hs[::-1] if reverse else hs


def ref_forward(tokens, params, *, num_layers):
    emb = jnp.take(params["embedding"], tokens, axis=0)
    x = jnp.transpose(emb, (1, 0, 2)).astype(jnp.float32)
    for l in range(num_layers):
        out_f = _ref_dir(x, params[f"w_ih_l{l}"], params[f"w_hh_l{l}"],
                         params[f"b_l{l}"], reverse=False)
        out_b = _ref_dir(x, params[f"w_ih_l{l}_rev"], params[f"w_hh_l{l}_rev"],
                         params[f"b_l{l}_rev"], reverse=True)
        x = jnp.concatenate([out_f, out_b], axis=-1)
    pooled = jnp.max(x, axis=0)
    logits = pooled @ params["w_fc"] + params["b_fc"]
    return jax.nn.softmax(logits, axis=1)


# ----------------------------------------------------------------------------
# Deterministic parameter construction
# ----------------------------------------------------------------------------
def make_params(key, *, n_vocab, embed_size, hidden_size, num_layers, num_classes):
    params = {}
    k_emb, k_lstm, k_fc = jax.random.split(key, 3)

    emb = jax.random.normal(k_emb, (n_vocab, embed_size), jnp.float32) * 0.1
    emb = emb.at[n_vocab - 1].set(0.0)          # padding_idx = n_vocab - 1
    params["embedding"] = emb

    bound = 1.0 / np.sqrt(hidden_size)
    keys = jax.random.split(k_lstm, num_layers * 2 * 4)
    ki = 0
    for l in range(num_layers):
        d_in = embed_size if l == 0 else 2 * hidden_size
        for suffix in ("", "_rev"):
            w_ih = jax.random.uniform(keys[ki], (d_in, 4 * hidden_size),
                                      jnp.float32, -bound, bound); ki += 1
            w_hh = jax.random.uniform(keys[ki], (hidden_size, 4 * hidden_size),
                                      jnp.float32, -bound, bound); ki += 1
            b_ih = jax.random.uniform(keys[ki], (1, 4 * hidden_size),
                                      jnp.float32, -bound, bound); ki += 1
            b_hh = jax.random.uniform(keys[ki], (1, 4 * hidden_size),
                                      jnp.float32, -bound, bound); ki += 1
            params[f"w_ih_l{l}{suffix}"] = w_ih
            params[f"w_hh_l{l}{suffix}"] = w_hh
            params[f"b_l{l}{suffix}"] = b_ih + b_hh

    bound_fc = 1.0 / np.sqrt(2 * hidden_size)
    k_w, k_b = jax.random.split(k_fc)
    params["w_fc"] = jax.random.uniform(k_w, (2 * hidden_size, num_classes),
                                        jnp.float32, -bound_fc, bound_fc)
    params["b_fc"] = jax.random.uniform(k_b, (1, num_classes),
                                        jnp.float32, -bound_fc, bound_fc)
    return params


if __name__ == "__main__":
    # Small config consistent with the module's forward
    N_VOCAB, EMBED, HIDDEN, LAYERS, CLASSES = 32, 16, 32, 2, 4
    B, T = 2, 8

    key = jax.random.PRNGKey(0)
    k_par, k_tok = jax.random.split(key)
    params = make_params(k_par, n_vocab=N_VOCAB, embed_size=EMBED,
                         hidden_size=HIDDEN, num_layers=LAYERS,
                         num_classes=CLASSES)
    tokens = jax.random.randint(k_tok, (B, T), 0, N_VOCAB, dtype=jnp.int32)

    fwd = jax.jit(functools.partial(model_forward, num_layers=LAYERS,
                                    hidden_size=HIDDEN))
    out = fwd(tokens, params)
    jax.block_until_ready(out)

    ref = ref_forward(tokens, params, num_layers=LAYERS)
    assert out.shape == (B, CLASSES)
    np.testing.assert_allclose(np.asarray(out), np.asarray(ref),
                               atol=2e-3, rtol=2e-3)
    print("KERNEL_OK")
</pallas_src>

<mosaic_0001>
module attributes {stable_mosaic.version = 11 : i64} {
  func.func @_bilstm_layer_kernel(%arg0: memref<8x2x128xf32, #tpu.memory_space<vmem>>, %arg1: memref<8x2x128xf32, #tpu.memory_space<vmem>>, %arg2: memref<32x128xf32, #tpu.memory_space<vmem>>, %arg3: memref<32x128xf32, #tpu.memory_space<vmem>>, %arg4: memref<8x2x32xf32, #tpu.memory_space<vmem>>, %arg5: memref<8x2x32xf32, #tpu.memory_space<vmem>>) attributes {dimension_semantics = [], scalar_prefetch = 0 : i64, scratch_operands = 0 : i64, tpu.core_type = #tpu.core_type<tc>} {
    %c0 = arith.constant 0 : index
    %c0_0 = arith.constant 0 : index
    %0 = vector.load %arg2[%c0, %c0_0] : memref<32x128xf32, #tpu.memory_space<vmem>>, vector<32x128xf32>
    %c0_1 = arith.constant 0 : index
    %c0_2 = arith.constant 0 : index
    %1 = vector.load %arg3[%c0_1, %c0_2] : memref<32x128xf32, #tpu.memory_space<vmem>>, vector<32x128xf32>
    %cst = arith.constant 0.000000e+00 : f32
    %2 = vector.broadcast %cst : f32 to vector<2x32xf32>
    %c0_3 = arith.constant 0 : index
    %c0_4 = arith.constant 0 : index
    %c0_5 = arith.constant 0 : index
    %3 = vector.load %arg0[%c0_3, %c0_4, %c0_5] : memref<8x2x128xf32, #tpu.memory_space<vmem>>, vector<1x2x128xf32>
    %4 = vector.shape_cast %3 : vector<1x2x128xf32> to vector<2x128xf32>
    %cst_6 = arith.constant dense<0.000000e+00> : vector<2x128xf32>
    %5 = tpu.matmul %2, %0, %cst_6 {dimension_numbers = #tpu.dot_dimension_numbers<[1], [0], [0], [1], [0, 0, 1, 1], [], []>} : vector<2x32xf32>, vector<32x128xf32>, vector<2x128xf32> -> vector<2x128xf32>
    %6 = arith.addf %4, %5 : vector<2x128xf32>
    %c7 = arith.constant 7 : index
    %c0_7 = arith.constant 0 : index
    %c0_8 = arith.constant 0 : index
    %7 = vector.load %arg1[%c7, %c0_7, %c0_8] : memref<8x2x128xf32, #tpu.memory_space<vmem>>, vector<1x2x128xf32>
    %8 = vector.shape_cast %7 : vector<1x2x128xf32> to vector<2x128xf32>
    %cst_9 = arith.constant dense<0.000000e+00> : vector<2x128xf32>
    %9 = tpu.matmul %2, %1, %cst_9 {dimension_numbers = #tpu.dot_dimension_numbers<[1], [0], [0], [1], [0, 0, 1, 1], [], []>} : vector<2x32xf32>, vector<32x128xf32>, vector<2x128xf32> -> vector<2x128xf32>
    %10 = arith.addf %8, %9 : vector<2x128xf32>
    %11 = arith.negf %6 : vector<2x128xf32>
    %12 = math.exp %11 : vector<2x128xf32>
    %cst_10 = arith.constant 1.000000e+00 : f32
    %13 = vector.broadcast %cst_10 : f32 to vector<2x128xf32>
    %14 = arith.addf %13, %12 : vector<2x128xf32>
    %15 = arith.divf %13, %14 : vector<2x128xf32>
    %16 = math.tanh %6 : vector<2x128xf32>
    %17 = vector.extract_strided_slice %15 {offsets = [0, 0], sizes = [2, 32], strides = [1, 1]} : vector<2x128xf32> to vector<2x32xf32>
    %18 = vector.extract_strided_slice %15 {offsets = [0, 32], sizes = [2, 32], strides = [1, 1]} : vector<2x128xf32> to vector<2x32xf32>
    %19 = vector.extract_strided_slice %16 {offsets = [0, 64], sizes = [2, 32], strides = [1, 1]} : vector<2x128xf32> to vector<2x32xf32>
    %20 = vector.extract_strided_slice %15 {offsets = [0, 96], sizes = [2, 32], strides = [1, 1]} : vector<2x128xf32> to vector<2x32xf32>
    %21 = arith.mulf %18, %2 : vector<2x32xf32>
    %22 = arith.mulf %17, %19 : vector<2x32xf32>
    %23 = arith.addf %21, %22 : vector<2x32xf32>
    %24 = math.tanh %23 : vector<2x32xf32>
    %25 = arith.mulf %20, %24 : vector<2x32xf32>
    %26 = arith.negf %10 : vector<2x128xf32>
    %27 = math.exp %26 : vector<2x128xf32>
    %cst_11 = arith.constant 1.000000e+00 : f32
    %28 = vector.broadcast %cst_11 : f32 to vector<2x128xf32>
    %29 = arith.addf %28, %27 : vector<2x128xf32>
    %30 = arith.divf %28, %29 : vector<2x128xf32>
    %31 = math.tanh %10 : vector<2x128xf32>
    %32 = vector.extract_strided_slice %30 {offsets = [0, 0], sizes = [2, 32], strides = [1, 1]} : vector<2x128xf32> to vector<2x32xf32>
    %33 = vector.extract_strided_slice %30 {offsets = [0, 32], sizes = [2, 32], strides = [1, 1]} : vector<2x128xf32> to vector<2x32xf32>
    %34 = vector.extract_strided_slice %31 {offsets = [0, 64], sizes = [2, 32], strides = [1, 1]} : vector<2x128xf32> to vector<2x32xf32>
    %35 = vector.extract_strided_slice %30 {offsets = [0, 96], sizes = [2, 32], strides = [1, 1]} : vector<2x128xf32> to vector<2x32xf32>
    %36 = arith.mulf %33, %2 : vector<2x32xf32>
    %37 = arith.mulf %32, %34 : vector<2x32xf32>
    %38 = arith.addf %36, %37 : vector<2x32xf32>
    %39 = math.tanh %38 : vector<2x32xf32>
    %40 = arith.mulf %35, %39 : vector<2x32xf32>
    %c0_12 = arith.constant 0 : index
    %c0_13 = arith.constant 0 : index
    %c0_14 = arith.constant 0 : index
    %41 = vector.load %arg4[%c0_12, %c0_13, %c0_14] : memref<8x2x32xf32, #tpu.memory_space<vmem>>, vector<1x2x32xf32>
    %42 = vector.shape_cast %41 : vector<1x2x32xf32> to vector<2x32xf32>
    %43 = vector.shape_cast %25 : vector<2x32xf32> to vector<1x2x32xf32>
    tpu.vector_store %arg4[%c0_12, %c0_13, %c0_14], %43 {strides = array<i32>} : memref<8x2x32xf32, #tpu.memory_space<vmem>>, vector<1x2x32xf32>,
    %c7_15 = arith.constant 7 : index
    %c0_16 = arith.constant 0 : index
    %c0_17 = arith.constant 0 : index
    %44 = vector.load %arg5[%c7_15, %c0_16, %c0_17] : memref<8x2x32xf32, #tpu.memory_space<vmem>>, vector<1x2x32xf32>
    %45 = vector.shape_cast %44 : vector<1x2x32xf32> to vector<2x32xf32>
    %46 = vector.shape_cast %40 : vector<2x32xf32> to vector<1x2x32xf32>
    tpu.vector_store %arg5[%c7_15, %c0_16, %c0_17], %46 {strides = array<i32>} : memref<8x2x32xf32, #tpu.memory_space<vmem>>, vector<1x2x32xf32>,
    %c1 = arith.constant 1 : index
    %c0_18 = arith.constant 0 : index
    %c0_19 = arith.constant 0 : index
    %47 = vector.load %arg0[%c1, %c0_18, %c0_19] : memref<8x2x128xf32, #tpu.memory_space<vmem>>, vector<1x2x128xf32>
    %48 = vector.shape_cast %47 : vector<1x2x128xf32> to vector<2x128xf32>
    %cst_20 = arith.constant dense<0.000000e+00> : vector<2x128xf32>
    %49 = tpu.matmul %25, %0, %cst_20 {dimension_numbers = #tpu.dot_dimension_numbers<[1], [0], [0], [1], [0, 0, 1, 1], [], []>} : vector<2x32xf32>, vector<32x128xf32>, vector<2x128xf32> -> vector<2x128xf32>
    %50 = arith.addf %48, %49 : vector<2x128xf32>
    %c6 = arith.constant 6 : index
    %c0_21 = arith.constant 0 : index
    %c0_22 = arith.constant 0 : index
    %51 = vector.load %arg1[%c6, %c0_21, %c0_22] : memref<8x2x128xf32, #tpu.memory_space<vmem>>, vector<1x2x128xf32>
    %52 = vector.shape_cast %51 : vector<1x2x128xf32> to vector<2x128xf32>
    %cst_23 = arith.constant dense<0.000000e+00> : vector<2x128xf32>
    %53 = tpu.matmul %40, %1, %cst_23 {dimension_numbers = #tpu.dot_dimension_numbers<[1], [0], [0], [1], [0, 0, 1, 1], [], []>} : vector<2x32xf32>, vector<32x128xf32>, vector<2x128xf32> -> vector<2x128xf32>
    %54 = arith.addf %52, %53 : vector<2x128xf32>
    %55 = arith.negf %50 : vector<2x128xf32>
    %56 = math.exp %55 : vector<2x128xf32>
    %cst_24 = arith.constant 1.000000e+00 : f32
    %57 = vector.broadcast %cst_24 : f32 to vector<2x128xf32>
    %58 = arith.addf %57, %56 : vector<2x128xf32>
    %59 = arith.divf %57, %58 : vector<2x128xf32>
    %60 = math.tanh %50 : vector<2x128xf32>
    %61 = vector.extract_strided_slice %59 {offsets = [0, 0], sizes = [2, 32], strides = [1, 1]} : vector<2x128xf32> to vector<2x32xf32>
    %62 = vector.extract_strided_slice %59 {offsets = [0, 32], sizes = [2, 32], strides = [1, 1]} : vector<2x128xf32> to vector<2x32xf32>
    %63 = vector.extract_strided_slice %60 {offsets = [0, 64], sizes = [2, 32], strides = [1, 1]} : vector<2x128xf32> to vector<2x32xf32>
    %64 = vector.extract_strided_slice %59 {offsets = [0, 96], sizes = [2, 32], strides = [1, 1]} : vector<2x128xf32> to vector<2x32xf32>
    %65 = arith.mulf %62, %23 : vector<2x32xf32>
    %66 = arith.mulf %61, %63 : vector<2x32xf32>
    %67 = arith.addf %65, %66 : vector<2x32xf32>
    %68 = math.tanh %67 : vector<2x32xf32>
    %69 = arith.mulf %64, %68 : vector<2x32xf32>
    %70 = arith.negf %54 : vector<2x128xf32>
    %71 = math.exp %70 : vector<2x128xf32>
    %cst_25 = arith.constant 1.000000e+00 : f32
    %72 = vector.broadcast %cst_25 : f32 to vector<2x128xf32>
    %73 = arith.addf %72, %71 : vector<2x128xf32>
    %74 = arith.divf %72, %73 : vector<2x128xf32>
    %75 = math.tanh %54 : vector<2x128xf32>
    %76 = vector.extract_strided_slice %74 {offsets = [0, 0], sizes = [2, 32], strides = [1, 1]} : vector<2x128xf32> to vector<2x32xf32>
    %77 = vector.extract_strided_slice %74 {offsets = [0, 32], sizes = [2, 32], strides = [1, 1]} : vector<2x128xf32> to vector<2x32xf32>
    %78 = vector.extract_strided_slice %75 {offsets = [0, 64], sizes = [2, 32], strides = [1, 1]} : vector<2x128xf32> to vector<2x32xf32>
    %79 = vector.extract_strided_slice %74 {offsets = [0, 96], sizes = [2, 32], strides = [1, 1]} : vector<2x128xf32> to vector<2x32xf32>
    %80 = arith.mulf %77, %38 : vector<2x32xf32>
    %81 = arith.mulf %76, %78 : vector<2x32xf32>
    %82 = arith.addf %80, %81 : vector<2x32xf32>
    %83 = math.tanh %82 : vector<2x32xf32>
    %84 = arith.mulf %79, %83 : vector<2x32xf32>
    %c1_26 = arith.constant 1 : index
    %c0_27 = arith.constant 0 : index
    %c0_28 = arith.constant 0 : index
    %85 = vector.load %arg4[%c1_26, %c0_27, %c0_28] : memref<8x2x32xf32, #tpu.memory_space<vmem>>, vector<1x2x32xf32>
    %86 = vector.shape_cast %85 : vector<1x2x32xf32> to vector<2x32xf32>
    %87 = vector.shape_cast %69 : vector<2x32xf32> to vector<1x2x32xf32>
    tpu.vector_store %arg4[%c1_26, %c0_27, %c0_28], %87 {strides = array<i32>} : memref<8x2x32xf32, #tpu.memory_space<vmem>>, vector<1x2x32xf32>,
    %c6_29 = arith.constant 6 : index
    %c0_30 = arith.constant 0 : index
    %c0_31 = arith.constant 0 : index
    %88 = vector.load %arg5[%c6_29, %c0_30, %c0_31] : memref<8x2x32xf32, #tpu.memory_space<vmem>>, vector<1x2x32xf32>
    %89 = vector.shape_cast %88 : vector<1x2x32xf32> to vector<2x32xf32>
    %90 = vector.shape_cast %84 : vector<2x32xf32> to vector<1x2x32xf32>
    tpu.vector_store %arg5[%c6_29, %c0_30, %c0_31], %90 {strides = array<i32>} : memref<8x2x32xf32, #tpu.memory_space<vmem>>, vector<1x2x32xf32>,
    %c2 = arith.constant 2 : index
    %c0_32 = arith.constant 0 : index
    %c0_33 = arith.constant 0 : index
    %91 = vector.load %arg0[%c2, %c0_32, %c0_33] : memref<8x2x128xf32, #tpu.memory_space<vmem>>, vector<1x2x128xf32>
    %92 = vector.shape_cast %91 : vector<1x2x128xf32> to vector<2x128xf32>
    %cst_34 = arith.constant dense<0.000000e+00> : vector<2x128xf32>
    %93 = tpu.matmul %69, %0, %cst_34 {dimension_numbers = #tpu.dot_dimension_numbers<[1], [0], [0], [1], [0, 0, 1, 1], [], []>} : vector<2x32xf32>, vector<32x128xf32>, vector<2x128xf32> -> vector<2x128xf32>
    %94 = arith.addf %92, %93 : vector<2x128xf32>
    %c5 = arith.constant 5 : index
    %c0_35 = arith.constant 0 : index
    %c0_36 = arith.constant 0 : index
    %95 = vector.load %arg1[%c5, %c0_35, %c0_36] : memref<8x2x128xf32, #tpu.memory_space<vmem>>, vector<1x2x128xf32>
    %96 = vector.shape_cast %95 : vector<1x2x128xf32> to vector<2x128xf32>
    %cst_37 = arith.constant dense<0.000000e+00> : vector<2x128xf32>
    %97 = tpu.matmul %84, %1, %cst_37 {dimension_numbers = #tpu.dot_dimension_numbers<[1], [0], [0], [1], [0, 0, 1, 1], [], []>} : vector<2x32xf32>, vector<32x128xf32>, vector<2x128xf32> -> vector<2x128xf32>
    %98 = arith.addf %96, %97 : vector<2x128xf32>
    %99 = arith.negf %94 : vector<2x128xf32>
    %100 = math.exp %99 : vector<2x128xf32>
    %cst_38 = arith.constant 1.000000e+00 : f32
    %101 = vector.broadcast %cst_38 : f32 to vector<2x128xf32>
    %102 = arith.addf %101, %100 : vector<2x128xf32>
    %103 = arith.divf %101, %102 : vector<2x128xf32>
    %104 = math.tanh %94 : vector<2x128xf32>
    %105 = vector.extract_strided_slice %103 {offsets = [0, 0], sizes = [2, 32], strides = [1, 1]} : vector<2x128xf32> to vector<2x32xf32>
    %106 = vector.extract_strided_slice %103 {offsets = [0, 32], sizes = [2, 32], strides = [1, 1]} : vector<2x128xf32> to vector<2x32xf32>
    %107 = vector.extract_strided_slice %104 {offsets = [0, 64], sizes = [2, 32], strides = [1, 1]} : vector<2x128xf32> to vector<2x32xf32>
    %108 = vector.extract_strided_slice %103 {offsets = [0, 96], sizes = [2, 32], strides = [1, 1]} : vector<2x128xf32> to vector<2x32xf32>
    %109 = arith.mulf %106, %67 : vector<2x32xf32>
    %110 = arith.mulf %105, %107 : vector<2x32xf32>
    %111 = arith.addf %109, %110 : vector<2x32xf32>
    %112 = math.tanh %111 : vector<2x32xf32>
    %113 = arith.mulf %108, %112 : vector<2x32xf32>
    %114 = arith.negf %98 : vector<2x128xf32>
    %115 = math.exp %114 : vector<2x128xf32>
    %cst_39 = arith.constant 1.000000e+00 : f32
    %116 = vector.broadcast %cst_39 : f32 to vector<2x128xf32>
    %117 = arith.addf %116, %115 : vector<2x128xf32>
    %118 = arith.divf %116, %117 : vector<2x128xf32>
    %119 = math.tanh %98 : vector<2x128xf32>
    %120 = vector.extract_strided_slice %118 {offsets = [0, 0], sizes = [2, 32], strides = [1, 1]} : vector<2x128xf32> to vector<2x32xf32>
    %121 = vector.extract_strided_slice %118 {offsets = [0, 32], sizes = [2, 32], strides = [1, 1]} : vector<2x128xf32> to vector<2x32xf32>
    %122 = vector.extract_strided_slice %119 {offsets = [0, 64], sizes = [2, 32], strides = [1, 1]} : vector<2x128xf32> to vector<2x32xf32>
    %123 = vector.extract_strided_slice %118 {offsets = [0, 96], sizes = [2, 32], strides = [1, 1]} : vector<2x128xf32> to vector<2x32xf32>
    %124 = arith.mulf %121, %82 : vector<2x32xf32>
    %125 = arith.mulf %120, %122 : vector<2x32xf32>
    %126 = arith.addf %124, %125 : vector<2x32xf32>
    %127 = math.tanh %126 : vector<2x32xf32>
    %128 = arith.mulf %123, %127 : vector<2x32xf32>
    %c2_40 = arith.constant 2 : index
    %c0_41 = arith.constant 0 : index
    %c0_42 = arith.constant 0 : index
    %129 = vector.load %arg4[%c2_40, %c0_41, %c0_42] : memref<8x2x32xf32, #tpu.memory_space<vmem>>, vector<1x2x32xf32>
    %130 = vector.shape_cast %129 : vector<1x2x32xf32> to vector<2x32xf32>
    %131 = vector.shape_cast %113 : vector<2x32xf32> to vector<1x2x32xf32>
    tpu.vector_store %arg4[%c2_40, %c0_41, %c0_42], %131 {strides = array<i32>} : memref<8x2x32xf32, #tpu.memory_space<vmem>>, vector<1x2x32xf32>,
    %c5_43 = arith.constant 5 : index
    %c0_44 = arith.constant 0 : index
    %c0_45 = arith.constant 0 : index
    %132 = vector.load %arg5[%c5_43, %c0_44, %c0_45] : memref<8x2x32xf32, #tpu.memory_space<vmem>>, vector<1x2x32xf32>
    %133 = vector.shape_cast %132 : vector<1x2x32xf32> to vector<2x32xf32>
    %134 = vector.shape_cast %128 : vector<2x32xf32> to vector<1x2x32xf32>
    tpu.vector_store %arg5[%c5_43, %c0_44, %c0_45], %134 {strides = array<i32>} : memref<8x2x32xf32, #tpu.memory_space<vmem>>, vector<1x2x32xf32>,
    %c3 = arith.constant 3 : index
    %c0_46 = arith.constant 0 : index
    %c0_47 = arith.constant 0 : index
    %135 = vector.load %arg0[%c3, %c0_46, %c0_47] : memref<8x2x128xf32, #tpu.memory_space<vmem>>, vector<1x2x128xf32>
    %136 = vector.shape_cast %135 : vector<1x2x128xf32> to vector<2x128xf32>
    %cst_48 = arith.constant dense<0.000000e+00> : vector<2x128xf32>
    %137 = tpu.matmul %113, %0, %cst_48 {dimension_numbers = #tpu.dot_dimension_numbers<[1], [0], [0], [1], [0, 0, 1, 1], [], []>} : vector<2x32xf32>, vector<32x128xf32>, vector<2x128xf32> -> vector<2x128xf32>
    %138 = arith.addf %136, %137 : vector<2x128xf32>
    %c4 = arith.constant 4 : index
    %c0_49 = arith.constant 0 : index
    %c0_50 = arith.constant 0 : index
    %139 = vector.load %arg1[%c4, %c0_49, %c0_50] : memref<8x2x128xf32, #tpu.memory_space<vmem>>, vector<1x2x128xf32>
    %140 = vector.shape_cast %139 : vector<1x2x128xf32> to vector<2x128xf32>
    %cst_51 = arith.constant dense<0.000000e+00> : vector<2x128xf32>
    %141 = tpu.matmul %128, %1, %cst_51 {dimension_numbers = #tpu.dot_dimension_numbers<[1], [0], [0], [1], [0, 0, 1, 1], [], []>} : vector<2x32xf32>, vector<32x128xf32>, vector<2x128xf32> -> vector<2x128xf32>
    %142 = arith.addf %140, %141 : vector<2x128xf32>
    %143 = arith.negf %138 : vector<2x128xf32>
    %144 = math.exp %143 : vector<2x128xf32>
    %cst_52 = arith.constant 1.000000e+00 : f32
    %145 = vector.broadcast %cst_52 : f32 to vector<2x128xf32>
    %146 = arith.addf %145, %144 : vector<2x128xf32>
    %147 = arith.divf %145, %146 : vector<2x128xf32>
    %148 = math.tanh %138 : vector<2x128xf32>
    %149 = vector.extract_strided_slice %147 {offsets = [0, 0], sizes = [2, 32], strides = [1, 1]} : vector<2x128xf32> to vector<2x32xf32>
    %150 = vector.extract_strided_slice %147 {offsets = [0, 32], sizes = [2, 32], strides = [1, 1]} : vector<2x128xf32> to vector<2x32xf32>
    %151 = vector.extract_strided_slice %148 {offsets = [0, 64], sizes = [2, 32], strides = [1, 1]} : vector<2x128xf32> to vector<2x32xf32>
    %152 = vector.extract_strided_slice %147 {offsets = [0, 96], sizes = [2, 32], strides = [1, 1]} : vector<2x128xf32> to vector<2x32xf32>
    %153 = arith.mulf %150, %111 : vector<2x32xf32>
    %154 = arith.mulf %149, %151 : vector<2x32xf32>
    %155 = arith.addf %153, %154 : vector<2x32xf32>
    %156 = math.tanh %155 : vector<2x32xf32>
    %157 = arith.mulf %152, %156 : vector<2x32xf32>
    %158 = arith.negf %142 : vector<2x128xf32>
    %159 = math.exp %158 : vector<2x128xf32>
    %cst_53 = arith.constant 1.000000e+00 : f32
    %160 = vector.broadcast %cst_53 : f32 to vector<2x128xf32>
    %161 = arith.addf %160, %159 : vector<2x128xf32>
    %162 = arith.divf %160, %161 : vector<2x128xf32>
    %163 = math.tanh %142 : vector<2x128xf32>
    %164 = vector.extract_strided_slice %162 {offsets = [0, 0], sizes = [2, 32], strides = [1, 1]} : vector<2x128xf32> to vector<2x32xf32>
    %165 = vector.extract_strided_slice %162 {offsets = [0, 32], sizes = [2, 32], strides = [1, 1]} : vector<2x128xf32> to vector<2x32xf32>
    %166 = vector.extract_strided_slice %163 {offsets = [0, 64], sizes = [2, 32], strides = [1, 1]} : vector<2x128xf32> to vector<2x32xf32>
    %167 = vector.extract_strided_slice %162 {offsets = [0, 96], sizes = [2, 32], strides = [1, 1]} : vector<2x128xf32> to vector<2x32xf32>
    %168 = arith.mulf %165, %126 : vector<2x32xf32>
    %169 = arith.mulf %164, %166 : vector<2x32xf32>
    %170 = arith.addf %168, %169 : vector<2x32xf32>
    %171 = math.tanh %170 : vector<2x32xf32>
    %172 = arith.mulf %167, %171 : vector<2x32xf32>
    %c3_54 = arith.constant 3 : index
    %c0_55 = arith.constant 0 : index
    %c0_56 = arith.constant 0 : index
    %173 = vector.load %arg4[%c3_54, %c0_55, %c0_56] : memref<8x2x32xf32, #tpu.memory_space<vmem>>, vector<1x2x32xf32>
    %174 = vector.shape_cast %173 : vector<1x2x32xf32> to vector<2x32xf32>
    %175 = vector.shape_cast %157 : vector<2x32xf32> to vector<1x2x32xf32>
    tpu.vector_store %arg4[%c3_54, %c0_55, %c0_56], %175 {strides = array<i32>} : memref<8x2x32xf32, #tpu.memory_space<vmem>>, vector<1x2x32xf32>,
    %c4_57 = arith.constant 4 : index
    %c0_58 = arith.constant 0 : index
    %c0_59 = arith.constant 0 : index
    %176 = vector.load %arg5[%c4_57, %c0_58, %c0_59] : memref<8x2x32xf32, #tpu.memory_space<vmem>>, vector<1x2x32xf32>
    %177 = vector.shape_cast %176 : vector<1x2x32xf32> to vector<2x32xf32>
    %178 = vector.shape_cast %172 : vector<2x32xf32> to vector<1x2x32xf32>
    tpu.vector_store %arg5[%c4_57, %c0_58, %c0_59], %178 {strides = array<i32>} : memref<8x2x32xf32, #tpu.memory_space<vmem>>, vector<1x2x32xf32>,
    %c4_60 = arith.constant 4 : index
    %c0_61 = arith.constant 0 : index
    %c0_62 = arith.constant 0 : index
    %179 = vector.load %arg0[%c4_60, %c0_61, %c0_62] : memref<8x2x128xf32, #tpu.memory_space<vmem>>, vector<1x2x128xf32>
    %180 = vector.shape_cast %179 : vector<1x2x128xf32> to vector<2x128xf32>
    %cst_63 = arith.constant dense<0.000000e+00> : vector<2x128xf32>
    %181 = tpu.matmul %157, %0, %cst_63 {dimension_numbers = #tpu.dot_dimension_numbers<[1], [0], [0], [1], [0, 0, 1, 1], [], []>} : vector<2x32xf32>, vector<32x128xf32>, vector<2x128xf32> -> vector<2x128xf32>
    %182 = arith.addf %180, %181 : vector<2x128xf32>
    %c3_64 = arith.constant 3 : index
    %c0_65 = arith.constant 0 : index
    %c0_66 = arith.constant 0 : index
    %183 = vector.load %arg1[%c3_64, %c0_65, %c0_66] : memref<8x2x128xf32, #tpu.memory_space<vmem>>, vector<1x2x128xf32>
    %184 = vector.shape_cast %183 : vector<1x2x128xf32> to vector<2x128xf32>
    %cst_67 = arith.constant dense<0.000000e+00> : vector<2x128xf32>
    %185 = tpu.matmul %172, %1, %cst_67 {dimension_numbers = #tpu.dot_dimension_numbers<[1], [0], [0], [1], [0, 0, 1, 1], [], []>} : vector<2x32xf32>, vector<32x128xf32>, vector<2x128xf32> -> vector<2x128xf32>
    %186 = arith.addf %184, %185 : vector<2x128xf32>
    %187 = arith.negf %182 : vector<2x128xf32>
    %188 = math.exp %187 : vector<2x128xf32>
    %cst_68 = arith.constant 1.000000e+00 : f32
    %189 = vector.broadcast %cst_68 : f32 to vector<2x128xf32>
    %190 = arith.addf %189, %188 : vector<2x128xf32>
    %191 = arith.divf %189, %190 : vector<2x128xf32>
    %192 = math.tanh %182 : vector<2x128xf32>
    %193 = vector.extract_strided_slice %191 {offsets = [0, 0], sizes = [2, 32], strides = [1, 1]} : vector<2x128xf32> to vector<2x32xf32>
    %194 = vector.extract_strided_slice %191 {offsets = [0, 32], sizes = [2, 32], strides = [1, 1]} : vector<2x128xf32> to vector<2x32xf32>
    %195 = vector.extract_strided_slice %192 {offsets = [0, 64], sizes = [2, 32], strides = [1, 1]} : vector<2x128xf32> to vector<2x32xf32>
    %196 = vector.extract_strided_slice %191 {offsets = [0, 96], sizes = [2, 32], strides = [1, 1]} : vector<2x128xf32> to vector<2x32xf32>
    %197 = arith.mulf %194, %155 : vector<2x32xf32>
    %198 = arith.mulf %193, %195 : vector<2x32xf32>
    %199 = arith.addf %197, %198 : vector<2x32xf32>
    %200 = math.tanh %199 : vector<2x32xf32>
    %201 = arith.mulf %196, %200 : vector<2x32xf32>
    %202 = arith.negf %186 : vector<2x128xf32>
    %203 = math.exp %202 : vector<2x128xf32>
    %cst_69 = arith.constant 1.000000e+00 : f32
    %204 = vector.broadcast %cst_69 : f32 to vector<2x128xf32>
    %205 = arith.addf %204, %203 : vector<2x128xf32>
    %206 = arith.divf %204, %205 : vector<2x128xf32>
    %207 = math.tanh %186 : vector<2x128xf32>
    %208 = vector.extract_strided_slice %206 {offsets = [0, 0], sizes = [2, 32], strides = [1, 1]} : vector<2x128xf32> to vector<2x32xf32>
    %209 = vector.extract_strided_slice %206 {offsets = [0, 32], sizes = [2, 32], strides = [1, 1]} : vector<2x128xf32> to vector<2x32xf32>
    %210 = vector.extract_strided_slice %207 {offsets = [0, 64], sizes = [2, 32], strides = [1, 1]} : vector<2x128xf32> to vector<2x32xf32>
    %211 = vector.extract_strided_slice %206 {offsets = [0, 96], sizes = [2, 32], strides = [1, 1]} : vector<2x128xf32> to vector<2x32xf32>
    %212 = arith.mulf %209, %170 : vector<2x32xf32>
    %213 = arith.mulf %208, %210 : vector<2x32xf32>
    %214 = arith.addf %212, %213 : vector<2x32xf32>
    %215 = math.tanh %214 : vector<2x32xf32>
    %216 = arith.mulf %211, %215 : vector<2x32xf32>
    %c4_70 = arith.constant 4 : index
    %c0_71 = arith.constant 0 : index
    %c0_72 = arith.constant 0 : index
    %217 = vector.load %arg4[%c4_70, %c0_71, %c0_72] : memref<8x2x32xf32, #tpu.memory_space<vmem>>, vector<1x2x32xf32>
    %218 = vector.shape_cast %217 : vector<1x2x32xf32> to vector<2x32xf32>
    %219 = vector.shape_cast %201 : vector<2x32xf32> to vector<1x2x32xf32>
    tpu.vector_store %arg4[%c4_70, %c0_71, %c0_72], %219 {strides = array<i32>} : memref<8x2x32xf32, #tpu.memory_space<vmem>>, vector<1x2x32xf32>,
    %c3_73 = arith.constant 3 : index
    %c0_74 = arith.constant 0 : index
    %c0_75 = arith.constant 0 : index
    %220 = vector.load %arg5[%c3_73, %c0_74, %c0_75] : memref<8x2x32xf32, #tpu.memory_space<vmem>>, vector<1x2x32xf32>
    %221 = vector.shape_cast %220 : vector<1x2x32xf32> to vector<2x32xf32>
    %222 = vector.shape_cast %216 : vector<2x32xf32> to vector<1x2x32xf32>
    tpu.vector_store %arg5[%c3_73, %c0_74, %c0_75], %222 {strides = array<i32>} : memref<8x2x32xf32, #tpu.memory_space<vmem>>, vector<1x2x32xf32>,
    %c5_76 = arith.constant 5 : index
    %c0_77 = arith.constant 0 : index
    %c0_78 = arith.constant 0 : index
    %223 = vector.load %arg0[%c5_76, %c0_77, %c0_78] : memref<8x2x128xf32, #tpu.memory_space<vmem>>, vector<1x2x128xf32>
    %224 = vector.shape_cast %223 : vector<1x2x128xf32> to vector<2x128xf32>
    %cst_79 = arith.constant dense<0.000000e+00> : vector<2x128xf32>
    %225 = tpu.matmul %201, %0, %cst_79 {dimension_numbers = #tpu.dot_dimension_numbers<[1], [0], [0], [1], [0, 0, 1, 1], [], []>} : vector<2x32xf32>, vector<32x128xf32>, vector<2x128xf32> -> vector<2x128xf32>
    %226 = arith.addf %224, %225 : vector<2x128xf32>
    %c2_80 = arith.constant 2 : index
    %c0_81 = arith.constant 0 : index
    %c0_82 = arith.constant 0 : index
    %227 = vector.load %arg1[%c2_80, %c0_81, %c0_82] : memref<8x2x128xf32, #tpu.memory_space<vmem>>, vector<1x2x128xf32>
    %228 = vector.shape_cast %227 : vector<1x2x128xf32> to vector<2x128xf32>
    %cst_83 = arith.constant dense<0.000000e+00> : vector<2x128xf32>
    %229 = tpu.matmul %216, %1, %cst_83 {dimension_numbers = #tpu.dot_dimension_numbers<[1], [0], [0], [1], [0, 0, 1, 1], [], []>} : vector<2x32xf32>, vector<32x128xf32>, vector<2x128xf32> -> vector<2x128xf32>
    %230 = arith.addf %228, %229 : vector<2x128xf32>
    %231 = arith.negf %226 : vector<2x128xf32>
    %232 = math.exp %231 : vector<2x128xf32>
    %cst_84 = arith.constant 1.000000e+00 : f32
    %233 = vector.broadcast %cst_84 : f32 to vector<2x128xf32>
    %234 = arith.addf %233, %232 : vector<2x128xf32>
    %235 = arith.divf %233, %234 : vector<2x128xf32>
    %236 = math.tanh %226 : vector<2x128xf32>
    %237 = vector.extract_strided_slice %235 {offsets = [0, 0], sizes = [2, 32], strides = [1, 1]} : vector<2x128xf32> to vector<2x32xf32>
    %238 = vector.extract_strided_slice %235 {offsets = [0, 32], sizes = [2, 32], strides = [1, 1]} : vector<2x128xf32> to vector<2x32xf32>
    %239 = vector.extract_strided_slice %236 {offsets = [0, 64], sizes = [2, 32], strides = [1, 1]} : vector<2x128xf32> to vector<2x32xf32>
    %240 = vector.extract_strided_slice %235 {offsets = [0, 96], sizes = [2, 32], strides = [1, 1]} : vector<2x128xf32> to vector<2x32xf32>
    %241 = arith.mulf %238, %199 : vector<2x32xf32>
    %242 = arith.mulf %237, %239 : vector<2x32xf32>
    %243 = arith.addf %241, %242 : vector<2x32xf32>
    %244 = math.tanh %243 : vector<2x32xf32>
    %245 = arith.mulf %240, %244 : vector<2x32xf32>
    %246 = arith.negf %230 : vector<2x128xf32>
    %247 = math.exp %246 : vector<2x128xf32>
    %cst_85 = arith.constant 1.000000e+00 : f32
    %248 = vector.broadcast %cst_85 : f32 to vector<2x128xf32>
    %249 = arith.addf %248, %247 : vector<2x128xf32>
    %250 = arith.divf %248, %249 : vector<2x128xf32>
    %251 = math.tanh %230 : vector<2x128xf32>
    %252 = vector.extract_strided_slice %250 {offsets = [0, 0], sizes = [2, 32], strides = [1, 1]} : vector<2x128xf32> to vector<2x32xf32>
    %253 = vector.extract_strided_slice %250 {offsets = [0, 32], sizes = [2, 32], strides = [1, 1]} : vector<2x128xf32> to vector<2x32xf32>
    %254 = vector.extract_strided_slice %251 {offsets = [0, 64], sizes = [2, 32], strides = [1, 1]} : vector<2x128xf32> to vector<2x32xf32>
    %255 = vector.extract_strided_slice %250 {offsets = [0, 96], sizes = [2, 32], strides = [1, 1]} : vector<2x128xf32> to vector<2x32xf32>
    %256 = arith.mulf %253, %214 : vector<2x32xf32>
    %257 = arith.mulf %252, %254 : vector<2x32xf32>
    %258 = arith.addf %256, %257 : vector<2x32xf32>
    %259 = math.tanh %258 : vector<2x32xf32>
    %260 = arith.mulf %255, %259 : vector<2x32xf32>
    %c5_86 = arith.constant 5 : index
    %c0_87 = arith.constant 0 : index
    %c0_88 = arith.constant 0 : index
    %261 = vector.load %arg4[%c5_86, %c0_87, %c0_88] : memref<8x2x32xf32, #tpu.memory_space<vmem>>, vector<1x2x32xf32>
    %262 = vector.shape_cast %261 : vector<1x2x32xf32> to vector<2x32xf32>
    %263 = vector.shape_cast %245 : vector<2x32xf32> to vector<1x2x32xf32>
    tpu.vector_store %arg4[%c5_86, %c0_87, %c0_88], %263 {strides = array<i32>} : memref<8x2x32xf32, #tpu.memory_space<vmem>>, vector<1x2x32xf32>,
    %c2_89 = arith.constant 2 : index
    %c0_90 = arith.constant 0 : index
    %c0_91 = arith.constant 0 : index
    %264 = vector.load %arg5[%c2_89, %c0_90, %c0_91] : memref<8x2x32xf32, #tpu.memory_space<vmem>>, vector<1x2x32xf32>
    %265 = vector.shape_cast %264 : vector<1x2x32xf32> to vector<2x32xf32>
    %266 = vector.shape_cast %260 : vector<2x32xf32> to vector<1x2x32xf32>
    tpu.vector_store %arg5[%c2_89, %c0_90, %c0_91], %266 {strides = array<i32>} : memref<8x2x32xf32, #tpu.memory_space<vmem>>, vector<1x2x32xf32>,
    %c6_92 = arith.constant 6 : index
    %c0_93 = arith.constant 0 : index
    %c0_94 = arith.constant 0 : index
    %267 = vector.load %arg0[%c6_92, %c0_93, %c0_94] : memref<8x2x128xf32, #tpu.memory_space<vmem>>, vector<1x2x128xf32>
    %268 = vector.shape_cast %267 : vector<1x2x128xf32> to vector<2x128xf32>
    %cst_95 = arith.constant dense<0.000000e+00> : vector<2x128xf32>
    %269 = tpu.matmul %245, %0, %cst_95 {dimension_numbers = #tpu.dot_dimension_numbers<[1], [0], [0], [1], [0, 0, 1, 1], [], []>} : vector<2x32xf32>, vector<32x128xf32>, vector<2x128xf32> -> vector<2x128xf32>
    %270 = arith.addf %268, %269 : vector<2x128xf32>
    %c1_96 = arith.constant 1 : index
    %c0_97 = arith.constant 0 : index
    %c0_98 = arith.constant 0 : index
    %271 = vector.load %arg1[%c1_96, %c0_97, %c0_98] : memref<8x2x128xf32, #tpu.memory_space<vmem>>, vector<1x2x128xf32>
    %272 = vector.shape_cast %271 : vector<1x2x128xf32> to vector<2x128xf32>
    %cst_99 = arith.constant dense<0.000000e+00> : vector<2x128xf32>
    %273 = tpu.matmul %260, %1, %cst_99 {dimension_numbers = #tpu.dot_dimension_numbers<[1], [0], [0], [1], [0, 0, 1, 1], [], []>} : vector<2x32xf32>, vector<32x128xf32>, vector<2x128xf32> -> vector<2x128xf32>
    %274 = arith.addf %272, %273 : vector<2x128xf32>
    %275 = arith.negf %270 : vector<2x128xf32>
    %276 = math.exp %275 : vector<2x128xf32>
    %cst_100 = arith.constant 1.000000e+00 : f32
    %277 = vector.broadcast %cst_100 : f32 to vector<2x128xf32>
    %278 = arith.addf %277, %276 : vector<2x128xf32>
    %279 = arith.divf %277, %278 : vector<2x128xf32>
    %280 = math.tanh %270 : vector<2x128xf32>
    %281 = vector.extract_strided_slice %279 {offsets = [0, 0], sizes = [2, 32], strides = [1, 1]} : vector<2x128xf32> to vector<2x32xf32>
    %282 = vector.extract_strided_slice %279 {offsets = [0, 32], sizes = [2, 32], strides = [1, 1]} : vector<2x128xf32> to vector<2x32xf32>
    %283 = vector.extract_strided_slice %280 {offsets = [0, 64], sizes = [2, 32], strides = [1, 1]} : vector<2x128xf32> to vector<2x32xf32>
    %284 = vector.extract_strided_slice %279 {offsets = [0, 96], sizes = [2, 32], strides = [1, 1]} : vector<2x128xf32> to vector<2x32xf32>
    %285 = arith.mulf %282, %243 : vector<2x32xf32>
    %286 = arith.mulf %281, %283 : vector<2x32xf32>
    %287 = arith.addf %285, %286 : vector<2x32xf32>
    %288 = math.tanh %287 : vector<2x32xf32>
    %289 = arith.mulf %284, %288 : vector<2x32xf32>
    %290 = arith.negf %274 : vector<2x128xf32>
    %291 = math.exp %290 : vector<2x128xf32>
    %cst_101 = arith.constant 1.000000e+00 : f32
    %292 = vector.broadcast %cst_101 : f32 to vector<2x128xf32>
    %293 = arith.addf %292, %291 : vector<2x128xf32>
    %294 = arith.divf %292, %293 : vector<2x128xf32>
    %295 = math.tanh %274 : vector<2x128xf32>
    %296 = vector.extract_strided_slice %294 {offsets = [0, 0], sizes = [2, 32], strides = [1, 1]} : vector<2x128xf32> to vector<2x32xf32>
    %297 = vector.extract_strided_slice %294 {offsets = [0, 32], sizes = [2, 32], strides = [1, 1]} : vector<2x128xf32> to vector<2x32xf32>
    %298 = vector.extract_strided_slice %295 {offsets = [0, 64], sizes = [2, 32], strides = [1, 1]} : vector<2x128xf32> to vector<2x32xf32>
    %299 = vector.extract_strided_slice %294 {offsets = [0, 96], sizes = [2, 32], strides = [1, 1]} : vector<2x128xf32> to vector<2x32xf32>
    %300 = arith.mulf %297, %258 : vector<2x32xf32>
    %301 = arith.mulf %296, %298 : vector<2x32xf32>
    %302 = arith.addf %300, %301 : vector<2x32xf32>
    %303 = math.tanh %302 : vector<2x32xf32>
    %304 = arith.mulf %299, %303 : vector<2x32xf32>
    %c6_102 = arith.constant 6 : index
    %c0_103 = arith.constant 0 : index
    %c0_104 = arith.constant 0 : index
    %305 = vector.load %arg4[%c6_102, %c0_103, %c0_104] : memref<8x2x32xf32, #tpu.memory_space<vmem>>, vector<1x2x32xf32>
    %306 = vector.shape_cast %305 : vector<1x2x32xf32> to vector<2x32xf32>
    %307 = vector.shape_cast %289 : vector<2x32xf32> to vector<1x2x32xf32>
    tpu.vector_store %arg4[%c6_102, %c0_103, %c0_104], %307 {strides = array<i32>} : memref<8x2x32xf32, #tpu.memory_space<vmem>>, vector<1x2x32xf32>,
    %c1_105 = arith.constant 1 : index
    %c0_106 = arith.constant 0 : index
    %c0_107 = arith.constant 0 : index
    %308 = vector.load %arg5[%c1_105, %c0_106, %c0_107] : memref<8x2x32xf32, #tpu.memory_space<vmem>>, vector<1x2x32xf32>
    %309 = vector.shape_cast %308 : vector<1x2x32xf32> to vector<2x32xf32>
    %310 = vector.shape_cast %304 : vector<2x32xf32> to vector<1x2x32xf32>
    tpu.vector_store %arg5[%c1_105, %c0_106, %c0_107], %310 {strides = array<i32>} : memref<8x2x32xf32, #tpu.memory_space<vmem>>, vector<1x2x32xf32>,
    %c7_108 = arith.constant 7 : index
    %c0_109 = arith.constant 0 : index
    %c0_110 = arith.constant 0 : index
    %311 = vector.load %arg0[%c7_108, %c0_109, %c0_110] : memref<8x2x128xf32, #tpu.memory_space<vmem>>, vector<1x2x128xf32>
    %312 = vector.shape_cast %311 : vector<1x2x128xf32> to vector<2x128xf32>
    %cst_111 = arith.constant dense<0.000000e+00> : vector<2x128xf32>
    %313 = tpu.matmul %289, %0, %cst_111 {dimension_numbers = #tpu.dot_dimension_numbers<[1], [0], [0], [1], [0, 0, 1, 1], [], []>} : vector<2x32xf32>, vector<32x128xf32>, vector<2x128xf32> -> vector<2x128xf32>
    %314 = arith.addf %312, %313 : vector<2x128xf32>
    %c0_112 = arith.constant 0 : index
    %c0_113 = arith.constant 0 : index
    %c0_114 = arith.constant 0 : index
    %315 = vector.load %arg1[%c0_112, %c0_113, %c0_114] : memref<8x2x128xf32, #tpu.memory_space<vmem>>, vector<1x2x128xf32>
    %316 = vector.shape_cast %315 : vector<1x2x128xf32> to vector<2x128xf32>
    %cst_115 = arith.constant dense<0.000000e+00> : vector<2x128xf32>
    %317 = tpu.matmul %304, %1, %cst_115 {dimension_numbers = #tpu.dot_dimension_numbers<[1], [0], [0], [1], [0, 0, 1, 1], [], []>} : vector<2x32xf32>, vector<32x128xf32>, vector<2x128xf32> -> vector<2x128xf32>
    %318 = arith.addf %316, %317 : vector<2x128xf32>
    %319 = arith.negf %314 : vector<2x128xf32>
    %320 = math.exp %319 : vector<2x128xf32>
    %cst_116 = arith.constant 1.000000e+00 : f32
    %321 = vector.broadcast %cst_116 : f32 to vector<2x128xf32>
    %322 = arith.addf %321, %320 : vector<2x128xf32>
    %323 = arith.divf %321, %322 : vector<2x128xf32>
    %324 = math.tanh %314 : vector<2x128xf32>
    %325 = vector.extract_strided_slice %323 {offsets = [0, 0], sizes = [2, 32], strides = [1, 1]} : vector<2x128xf32> to vector<2x32xf32>
    %326 = vector.extract_strided_slice %323 {offsets = [0, 32], sizes = [2, 32], strides = [1, 1]} : vector<2x128xf32> to vector<2x32xf32>
    %327 = vector.extract_strided_slice %324 {offsets = [0, 64], sizes = [2, 32], strides = [1, 1]} : vector<2x128xf32> to vector<2x32xf32>
    %328 = vector.extract_strided_slice %323 {offsets = [0, 96], sizes = [2, 32], strides = [1, 1]} : vector<2x128xf32> to vector<2x32xf32>
    %329 = arith.mulf %326, %287 : vector<2x32xf32>
    %330 = arith.mulf %325, %327 : vector<2x32xf32>
    %331 = arith.addf %329, %330 : vector<2x32xf32>
    %332 = math.tanh %331 : vector<2x32xf32>
    %333 = arith.mulf %328, %332 : vector<2x32xf32>
    %334 = arith.negf %318 : vector<2x128xf32>
    %335 = math.exp %334 : vector<2x128xf32>
    %cst_117 = arith.constant 1.000000e+00 : f32
    %336 = vector.broadcast %cst_117 : f32 to vector<2x128xf32>
    %337 = arith.addf %336, %335 : vector<2x128xf32>
    %338 = arith.divf %336, %337 : vector<2x128xf32>
    %339 = math.tanh %318 : vector<2x128xf32>
    %340 = vector.extract_strided_slice %338 {offsets = [0, 0], sizes = [2, 32], strides = [1, 1]} : vector<2x128xf32> to vector<2x32xf32>
    %341 = vector.extract_strided_slice %338 {offsets = [0, 32], sizes = [2, 32], strides = [1, 1]} : vector<2x128xf32> to vector<2x32xf32>
    %342 = vector.extract_strided_slice %339 {offsets = [0, 64], sizes = [2, 32], strides = [1, 1]} : vector<2x128xf32> to vector<2x32xf32>
    %343 = vector.extract_strided_slice %338 {offsets = [0, 96], sizes = [2, 32], strides = [1, 1]} : vector<2x128xf32> to vector<2x32xf32>
    %344 = arith.mulf %341, %302 : vector<2x32xf32>
    %345 = arith.mulf %340, %342 : vector<2x32xf32>
    %346 = arith.addf %344, %345 : vector<2x32xf32>
    %347 = math.tanh %346 : vector<2x32xf32>
    %348 = arith.mulf %343, %347 : vector<2x32xf32>
    %c7_118 = arith.constant 7 : index
    %c0_119 = arith.constant 0 : index
    %c0_120 = arith.constant 0 : index
    %349 = vector.load %arg4[%c7_118, %c0_119, %c0_120] : memref<8x2x32xf32, #tpu.memory_space<vmem>>, vector<1x2x32xf32>
    %350 = vector.shape_cast %349 : vector<1x2x32xf32> to vector<2x32xf32>
    %351 = vector.shape_cast %333 : vector<2x32xf32> to vector<1x2x32xf32>
    tpu.vector_store %arg4[%c7_118, %c0_119, %c0_120], %351 {strides = array<i32>} : memref<8x2x32xf32, #tpu.memory_space<vmem>>, vector<1x2x32xf32>,
    %c0_121 = arith.constant 0 : index
    %c0_122 = arith.constant 0 : index
    %c0_123 = arith.constant 0 : index
    %352 = vector.load %arg5[%c0_121, %c0_122, %c0_123] : memref<8x2x32xf32, #tpu.memory_space<vmem>>, vector<1x2x32xf32>
    %353 = vector.shape_cast %352 : vector<1x2x32xf32> to vector<2x32xf32>
    %354 = vector.shape_cast %348 : vector<2x32xf32> to vector<1x2x32xf32>
    tpu.vector_store %arg5[%c0_121, %c0_122, %c0_123], %354 {strides = array<i32>} : memref<8x2x32xf32, #tpu.memory_space<vmem>>, vector<1x2x32xf32>,
    return
  }
}

module attributes {stable_mosaic.version = 11 : i64} {
  func.func @_bilstm_head_kernel(%arg0: memref<8x2x128xf32, #tpu.memory_space<vmem>>, %arg1: memref<8x2x128xf32, #tpu.memory_space<vmem>>, %arg2: memref<32x128xf32, #tpu.memory_space<vmem>>, %arg3: memref<32x128xf32, #tpu.memory_space<vmem>>, %arg4: memref<64x4xf32, #tpu.memory_space<vmem>>, %arg5: memref<1x4xf32, #tpu.memory_space<vmem>>, %arg6: memref<2x4xf32, #tpu.memory_space<vmem>>) attributes {dimension_semantics = [], scalar_prefetch = 0 : i64, scratch_operands = 0 : i64, tpu.core_type = #tpu.core_type<tc>} {
    %c0 = arith.constant 0 : index
    %c0_0 = arith.constant 0 : index
    %0 = vector.load %arg2[%c0, %c0_0] : memref<32x128xf32, #tpu.memory_space<vmem>>, vector<32x128xf32>
    %c0_1 = arith.constant 0 : index
    %c0_2 = arith.constant 0 : index
    %1 = vector.load %arg3[%c0_1, %c0_2] : memref<32x128xf32, #tpu.memory_space<vmem>>, vector<32x128xf32>
    %cst = arith.constant 0.000000e+00 : f32
    %2 = vector.broadcast %cst : f32 to vector<2x32xf32>
    %cst_3 = arith.constant 0xFF800000 : f32
    %3 = vector.broadcast %cst_3 : f32 to vector<2x32xf32>
    %c0_4 = arith.constant 0 : index
    %c0_5 = arith.constant 0 : index
    %c0_6 = arith.constant 0 : index
    %4 = vector.load %arg0[%c0_4, %c0_5, %c0_6] : memref<8x2x128xf32, #tpu.memory_space<vmem>>, vector<1x2x128xf32>
    %5 = vector.shape_cast %4 : vector<1x2x128xf32> to vector<2x128xf32>
    %cst_7 = arith.constant dense<0.000000e+00> : vector<2x128xf32>
    %6 = tpu.matmul %2, %0, %cst_7 {dimension_numbers = #tpu.dot_dimension_numbers<[1], [0], [0], [1], [0, 0, 1, 1], [], []>} : vector<2x32xf32>, vector<32x128xf32>, vector<2x128xf32> -> vector<2x128xf32>
    %7 = arith.addf %5, %6 : vector<2x128xf32>
    %c7 = arith.constant 7 : index
    %c0_8 = arith.constant 0 : index
    %c0_9 = arith.constant 0 : index
    %8 = vector.load %arg1[%c7, %c0_8, %c0_9] : memref<8x2x128xf32, #tpu.memory_space<vmem>>, vector<1x2x128xf32>
    %9 = vector.shape_cast %8 : vector<1x2x128xf32> to vector<2x128xf32>
    %cst_10 = arith.constant dense<0.000000e+00> : vector<2x128xf32>
    %10 = tpu.matmul %2, %1, %cst_10 {dimension_numbers = #tpu.dot_dimension_numbers<[1], [0], [0], [1], [0, 0, 1, 1], [], []>} : vector<2x32xf32>, vector<32x128xf32>, vector<2x128xf32> -> vector<2x128xf32>
    %11 = arith.addf %9, %10 : vector<2x128xf32>
    %12 = arith.negf %7 : vector<2x128xf32>
    %13 = math.exp %12 : vector<2x128xf32>
    %cst_11 = arith.constant 1.000000e+00 : f32
    %14 = vector.broadcast %cst_11 : f32 to vector<2x128xf32>
    %15 = arith.addf %14, %13 : vector<2x128xf32>
    %16 = arith.divf %14, %15 : vector<2x128xf32>
    %17 = math.tanh %7 : vector<2x128xf32>
    %18 = vector.extract_strided_slice %16 {offsets = [0, 0], sizes = [2, 32], strides = [1, 1]} : vector<2x128xf32> to vector<2x32xf32>
    %19 = vector.extract_strided_slice %16 {offsets = [0, 32], sizes = [2, 32], strides = [1, 1]} : vector<2x128xf32> to vector<2x32xf32>
    %20 = vector.extract_strided_slice %17 {offsets = [0, 64], sizes = [2, 32], strides = [1, 1]} : vector<2x128xf32> to vector<2x32xf32>
    %21 = vector.extract_strided_slice %16 {offsets = [0, 96], sizes = [2, 32], strides = [1, 1]} : vector<2x128xf32> to vector<2x32xf32>
    %22 = arith.mulf %19, %2 : vector<2x32xf32>
    %23 = arith.mulf %18, %20 : vector<2x32xf32>
    %24 = arith.addf %22, %23 : vector<2x32xf32>
    %25 = math.tanh %24 : vector<2x32xf32>
    %26 = arith.mulf %21, %25 : vector<2x32xf32>
    %27 = arith.negf %11 : vector<2x128xf32>
    %28 = math.exp %27 : vector<2x128xf32>
    %cst_12 = arith.constant 1.000000e+00 : f32
    %29 = vector.broadcast %cst_12 : f32 to vector<2x128xf32>
    %30 = arith.addf %29, %28 : vector<2x128xf32>
    %31 = arith.divf %29, %30 : vector<2x128xf32>
    %32 = math.tanh %11 : vector<2x128xf32>
    %33 = vector.extract_strided_slice %31 {offsets = [0, 0], sizes = [2, 32], strides = [1, 1]} : vector<2x128xf32> to vector<2x32xf32>
    %34 = vector.extract_strided_slice %31 {offsets = [0, 32], sizes = [2, 32], strides = [1, 1]} : vector<2x128xf32> to vector<2x32xf32>
    %35 = vector.extract_strided_slice %32 {offsets = [0, 64], sizes = [2, 32], strides = [1, 1]} : vector<2x128xf32> to vector<2x32xf32>
    %36 = vector.extract_strided_slice %31 {offsets = [0, 96], sizes = [2, 32], strides = [1, 1]} : vector<2x128xf32> to vector<2x32xf32>
    %37 = arith.mulf %34, %2 : vector<2x32xf32>
    %38 = arith.mulf %33, %35 : vector<2x32xf32>
    %39 = arith.addf %37, %38 : vector<2x32xf32>
    %40 = math.tanh %39 : vector<2x32xf32>
    %41 = arith.mulf %36, %40 : vector<2x32xf32>
    %42 = arith.maximumf %3, %26 : vector<2x32xf32>
    %43 = arith.maximumf %3, %41 : vector<2x32xf32>
    %c1 = arith.constant 1 : index
    %c0_13 = arith.constant 0 : index
    %c0_14 = arith.constant 0 : index
    %44 = vector.load %arg0[%c1, %c0_13, %c0_14] : memref<8x2x128xf32, #tpu.memory_space<vmem>>, vector<1x2x128xf32>
    %45 = vector.shape_cast %44 : vector<1x2x128xf32> to vector<2x128xf32>
    %cst_15 = arith.constant dense<0.000000e+00> : vector<2x128xf32>
    %46 = tpu.matmul %26, %0, %cst_15 {dimension_numbers = #tpu.dot_dimension_numbers<[1], [0], [0], [1], [0, 0, 1, 1], [], []>} : vector<2x32xf32>, vector<32x128xf32>, vector<2x128xf32> -> vector<2x128xf32>
    %47 = arith.addf %45, %46 : vector<2x128xf32>
    %c6 = arith.constant 6 : index
    %c0_16 = arith.constant 0 : index
    %c0_17 = arith.constant 0 : index
    %48 = vector.load %arg1[%c6, %c0_16, %c0_17] : memref<8x2x128xf32, #tpu.memory_space<vmem>>, vector<1x2x128xf32>
    %49 = vector.shape_cast %48 : vector<1x2x128xf32> to vector<2x128xf32>
    %cst_18 = arith.constant dense<0.000000e+00> : vector<2x128xf32>
    %50 = tpu.matmul %41, %1, %cst_18 {dimension_numbers = #tpu.dot_dimension_numbers<[1], [0], [0], [1], [0, 0, 1, 1], [], []>} : vector<2x32xf32>, vector<32x128xf32>, vector<2x128xf32> -> vector<2x128xf32>
    %51 = arith.addf %49, %50 : vector<2x128xf32>
    %52 = arith.negf %47 : vector<2x128xf32>
    %53 = math.exp %52 : vector<2x128xf32>
    %cst_19 = arith.constant 1.000000e+00 : f32
    %54 = vector.broadcast %cst_19 : f32 to vector<2x128xf32>
    %55 = arith.addf %54, %53 : vector<2x128xf32>
    %56 = arith.divf %54, %55 : vector<2x128xf32>
    %57 = math.tanh %47 : vector<2x128xf32>
    %58 = vector.extract_strided_slice %56 {offsets = [0, 0], sizes = [2, 32], strides = [1, 1]} : vector<2x128xf32> to vector<2x32xf32>
    %59 = vector.extract_strided_slice %56 {offsets = [0, 32], sizes = [2, 32], strides = [1, 1]} : vector<2x128xf32> to vector<2x32xf32>
    %60 = vector.extract_strided_slice %57 {offsets = [0, 64], sizes = [2, 32], strides = [1, 1]} : vector<2x128xf32> to vector<2x32xf32>
    %61 = vector.extract_strided_slice %56 {offsets = [0, 96], sizes = [2, 32], strides = [1, 1]} : vector<2x128xf32> to vector<2x32xf32>
    %62 = arith.mulf %59, %24 : vector<2x32xf32>
    %63 = arith.mulf %58, %60 : vector<2x32xf32>
    %64 = arith.addf %62, %63 : vector<2x32xf32>
    %65 = math.tanh %64 : vector<2x32xf32>
    %66 = arith.mulf %61, %65 : vector<2x32xf32>
    %67 = arith.negf %51 : vector<2x128xf32>
    %68 = math.exp %67 : vector<2x128xf32>
    %cst_20 = arith.constant 1.000000e+00 : f32
    %69 = vector.broadcast %cst_20 : f32 to vector<2x128xf32>
    %70 = arith.addf %69, %68 : vector<2x128xf32>
    %71 = arith.divf %69, %70 : vector<2x128xf32>
    %72 = math.tanh %51 : vector<2x128xf32>
    %73 = vector.extract_strided_slice %71 {offsets = [0, 0], sizes = [2, 32], strides = [1, 1]} : vector<2x128xf32> to vector<2x32xf32>
    %74 = vector.extract_strided_slice %71 {offsets = [0, 32], sizes = [2, 32], strides = [1, 1]} : vector<2x128xf32> to vector<2x32xf32>
    %75 = vector.extract_strided_slice %72 {offsets = [0, 64], sizes = [2, 32], strides = [1, 1]} : vector<2x128xf32> to vector<2x32xf32>
    %76 = vector.extract_strided_slice %71 {offsets = [0, 96], sizes = [2, 32], strides = [1, 1]} : vector<2x128xf32> to vector<2x32xf32>
    %77 = arith.mulf %74, %39 : vector<2x32xf32>
    %78 = arith.mulf %73, %75 : vector<2x32xf32>
    %79 = arith.addf %77, %78 : vector<2x32xf32>
    %80 = math.tanh %79 : vector<2x32xf32>
    %81 = arith.mulf %76, %80 : vector<2x32xf32>
    %82 = arith.maximumf %42, %66 : vector<2x32xf32>
    %83 = arith.maximumf %43, %81 : vector<2x32xf32>
    %c2 = arith.constant 2 : index
    %c0_21 = arith.constant 0 : index
    %c0_22 = arith.constant 0 : index
    %84 = vector.load %arg0[%c2, %c0_21, %c0_22] : memref<8x2x128xf32, #tpu.memory_space<vmem>>, vector<1x2x128xf32>
    %85 = vector.shape_cast %84 : vector<1x2x128xf32> to vector<2x128xf32>
    %cst_23 = arith.constant dense<0.000000e+00> : vector<2x128xf32>
    %86 = tpu.matmul %66, %0, %cst_23 {dimension_numbers = #tpu.dot_dimension_numbers<[1], [0], [0], [1], [0, 0, 1, 1], [], []>} : vector<2x32xf32>, vector<32x128xf32>, vector<2x128xf32> -> vector<2x128xf32>
    %87 = arith.addf %85, %86 : vector<2x128xf32>
    %c5 = arith.constant 5 : index
    %c0_24 = arith.constant 0 : index
    %c0_25 = arith.constant 0 : index
    %88 = vector.load %arg1[%c5, %c0_24, %c0_25] : memref<8x2x128xf32, #tpu.memory_space<vmem>>, vector<1x2x128xf32>
    %89 = vector.shape_cast %88 : vector<1x2x128xf32> to vector<2x128xf32>
    %cst_26 = arith.constant dense<0.000000e+00> : vector<2x128xf32>
    %90 = tpu.matmul %81, %1, %cst_26 {dimension_numbers = #tpu.dot_dimension_numbers<[1], [0], [0], [1], [0, 0, 1, 1], [], []>} : vector<2x32xf32>, vector<32x128xf32>, vector<2x128xf32> -> vector<2x128xf32>
    %91 = arith.addf %89, %90 : vector<2x128xf32>
    %92 = arith.negf %87 : vector<2x128xf32>
    %93 = math.exp %92 : vector<2x128xf32>
    %cst_27 = arith.constant 1.000000e+00 : f32
    %94 = vector.broadcast %cst_27 : f32 to vector<2x128xf32>
    %95 = arith.addf %94, %93 : vector<2x128xf32>
    %96 = arith.divf %94, %95 : vector<2x128xf32>
    %97 = math.tanh %87 : vector<2x128xf32>
    %98 = vector.extract_strided_slice %96 {offsets = [0, 0], sizes = [2, 32], strides = [1, 1]} : vector<2x128xf32> to vector<2x32xf32>
    %99 = vector.extract_strided_slice %96 {offsets = [0, 32], sizes = [2, 32], strides = [1, 1]} : vector<2x128xf32> to vector<2x32xf32>
    %100 = vector.extract_strided_slice %97 {offsets = [0, 64], sizes = [2, 32], strides = [1, 1]} : vector<2x128xf32> to vector<2x32xf32>
    %101 = vector.extract_strided_slice %96 {offsets = [0, 96], sizes = [2, 32], strides = [1, 1]} : vector<2x128xf32> to vector<2x32xf32>
    %102 = arith.mulf %99, %64 : vector<2x32xf32>
    %103 = arith.mulf %98, %100 : vector<2x32xf32>
    %104 = arith.addf %102, %103 : vector<2x32xf32>
    %105 = math.tanh %104 : vector<2x32xf32>
    %106 = arith.mulf %101, %105 : vector<2x32xf32>
    %107 = arith.negf %91 : vector<2x128xf32>
    %108 = math.exp %107 : vector<2x128xf32>
    %cst_28 = arith.constant 1.000000e+00 : f32
    %109 = vector.broadcast %cst_28 : f32 to vector<2x128xf32>
    %110 = arith.addf %109, %108 : vector<2x128xf32>
    %111 = arith.divf %109, %110 : vector<2x128xf32>
    %112 = math.tanh %91 : vector<2x128xf32>
    %113 = vector.extract_strided_slice %111 {offsets = [0, 0], sizes = [2, 32], strides = [1, 1]} : vector<2x128xf32> to vector<2x32xf32>
    %114 = vector.extract_strided_slice %111 {offsets = [0, 32], sizes = [2, 32], strides = [1, 1]} : vector<2x128xf32> to vector<2x32xf32>
    %115 = vector.extract_strided_slice %112 {offsets = [0, 64], sizes = [2, 32], strides = [1, 1]} : vector<2x128xf32> to vector<2x32xf32>
    %116 = vector.extract_strided_slice %111 {offsets = [0, 96], sizes = [2, 32], strides = [1, 1]} : vector<2x128xf32> to vector<2x32xf32>
    %117 = arith.mulf %114, %79 : vector<2x32xf32>
    %118 = arith.mulf %113, %115 : vector<2x32xf32>
    %119 = arith.addf %117, %118 : vector<2x32xf32>
    %120 = math.tanh %119 : vector<2x32xf32>
    %121 = arith.mulf %116, %120 : vector<2x32xf32>
    %122 = arith.maximumf %82, %106 : vector<2x32xf32>
    %123 = arith.maximumf %83, %121 : vector<2x32xf32>
    %c3 = arith.constant 3 : index
    %c0_29 = arith.constant 0 : index
    %c0_30 = arith.constant 0 : index
    %124 = vector.load %arg0[%c3, %c0_29, %c0_30] : memref<8x2x128xf32, #tpu.memory_space<vmem>>, vector<1x2x128xf32>
    %125 = vector.shape_cast %124 : vector<1x2x128xf32> to vector<2x128xf32>
    %cst_31 = arith.constant dense<0.000000e+00> : vector<2x128xf32>
    %126 = tpu.matmul %106, %0, %cst_31 {dimension_numbers = #tpu.dot_dimension_numbers<[1], [0], [0], [1], [0, 0, 1, 1], [], []>} : vector<2x32xf32>, vector<32x128xf32>, vector<2x128xf32> -> vector<2x128xf32>
    %127 = arith.addf %125, %126 : vector<2x128xf32>
    %c4 = arith.constant 4 : index
    %c0_32 = arith.constant 0 : index
    %c0_33 = arith.constant 0 : index
    %128 = vector.load %arg1[%c4, %c0_32, %c0_33] : memref<8x2x128xf32, #tpu.memory_space<vmem>>, vector<1x2x128xf32>
    %129 = vector.shape_cast %128 : vector<1x2x128xf32> to vector<2x128xf32>
    %cst_34 = arith.constant dense<0.000000e+00> : vector<2x128xf32>
    %130 = tpu.matmul %121, %1, %cst_34 {dimension_numbers = #tpu.dot_dimension_numbers<[1], [0], [0], [1], [0, 0, 1, 1], [], []>} : vector<2x32xf32>, vector<32x128xf32>, vector<2x128xf32> -> vector<2x128xf32>
    %131 = arith.addf %129, %130 : vector<2x128xf32>
    %132 = arith.negf %127 : vector<2x128xf32>
    %133 = math.exp %132 : vector<2x128xf32>
    %cst_35 = arith.constant 1.000000e+00 : f32
    %134 = vector.broadcast %cst_35 : f32 to vector<2x128xf32>
    %135 = arith.addf %134, %133 : vector<2x128xf32>
    %136 = arith.divf %134, %135 : vector<2x128xf32>
    %137 = math.tanh %127 : vector<2x128xf32>
    %138 = vector.extract_strided_slice %136 {offsets = [0, 0], sizes = [2, 32], strides = [1, 1]} : vector<2x128xf32> to vector<2x32xf32>
    %139 = vector.extract_strided_slice %136 {offsets = [0, 32], sizes = [2, 32], strides = [1, 1]} : vector<2x128xf32> to vector<2x32xf32>
    %140 = vector.extract_strided_slice %137 {offsets = [0, 64], sizes = [2, 32], strides = [1, 1]} : vector<2x128xf32> to vector<2x32xf32>
    %141 = vector.extract_strided_slice %136 {offsets = [0, 96], sizes = [2, 32], strides = [1, 1]} : vector<2x128xf32> to vector<2x32xf32>
    %142 = arith.mulf %139, %104 : vector<2x32xf32>
    %143 = arith.mulf %138, %140 : vector<2x32xf32>
    %144 = arith.addf %142, %143 : vector<2x32xf32>
    %145 = math.tanh %144 : vector<2x32xf32>
    %146 = arith.mulf %141, %145 : vector<2x32xf32>
    %147 = arith.negf %131 : vector<2x128xf32>
    %148 = math.exp %147 : vector<2x128xf32>
    %cst_36 = arith.constant 1.000000e+00 : f32
    %149 = vector.broadcast %cst_36 : f32 to vector<2x128xf32>
    %150 = arith.addf %149, %148 : vector<2x128xf32>
    %151 = arith.divf %149, %150 : vector<2x128xf32>
    %152 = math.tanh %131 : vector<2x128xf32>
    %153 = vector.extract_strided_slice %151 {offsets = [0, 0], sizes = [2, 32], strides = [1, 1]} : vector<2x128xf32> to vector<2x32xf32>
    %154 = vector.extract_strided_slice %151 {offsets = [0, 32], sizes = [2, 32], strides = [1, 1]} : vector<2x128xf32> to vector<2x32xf32>
    %155 = vector.extract_strided_slice %152 {offsets = [0, 64], sizes = [2, 32], strides = [1, 1]} : vector<2x128xf32> to vector<2x32xf32>
    %156 = vector.extract_strided_slice %151 {offsets = [0, 96], sizes = [2, 32], strides = [1, 1]} : vector<2x128xf32> to vector<2x32xf32>
    %157 = arith.mulf %154, %119 : vector<2x32xf32>
    %158 = arith.mulf %153, %155 : vector<2x32xf32>
    %159 = arith.addf %157, %158 : vector<2x32xf32>
    %160 = math.tanh %159 : vector<2x32xf32>
    %161 = arith.mulf %156, %160 : vector<2x32xf32>
    %162 = arith.maximumf %122, %146 : vector<2x32xf32>
    %163 = arith.maximumf %123, %161 : vector<2x32xf32>
    %c4_37 = arith.constant 4 : index
    %c0_38 = arith.constant 0 : index
    %c0_39 = arith.constant 0 : index
    %164 = vector.load %arg0[%c4_37, %c0_38, %c0_39] : memref<8x2x128xf32, #tpu.memory_space<vmem>>, vector<1x2x128xf32>
    %165 = vector.shape_cast %164 : vector<1x2x128xf32> to vector<2x128xf32>
    %cst_40 = arith.constant dense<0.000000e+00> : vector<2x128xf32>
    %166 = tpu.matmul %146, %0, %cst_40 {dimension_numbers = #tpu.dot_dimension_numbers<[1], [0], [0], [1], [0, 0, 1, 1], [], []>} : vector<2x32xf32>, vector<32x128xf32>, vector<2x128xf32> -> vector<2x128xf32>
    %167 = arith.addf %165, %166 : vector<2x128xf32>
    %c3_41 = arith.constant 3 : index
    %c0_42 = arith.constant 0 : index
    %c0_43 = arith.constant 0 : index
    %168 = vector.load %arg1[%c3_41, %c0_42, %c0_43] : memref<8x2x128xf32, #tpu.memory_space<vmem>>, vector<1x2x128xf32>
    %169 = vector.shape_cast %168 : vector<1x2x128xf32> to vector<2x128xf32>
    %cst_44 = arith.constant dense<0.000000e+00> : vector<2x128xf32>
    %170 = tpu.matmul %161, %1, %cst_44 {dimension_numbers = #tpu.dot_dimension_numbers<[1], [0], [0], [1], [0, 0, 1, 1], [], []>} : vector<2x32xf32>, vector<32x128xf32>, vector<2x128xf32> -> vector<2x128xf32>
    %171 = arith.addf %169, %170 : vector<2x128xf32>
    %172 = arith.negf %167 : vector<2x128xf32>
    %173 = math.exp %172 : vector<2x128xf32>
    %cst_45 = arith.constant 1.000000e+00 : f32
    %174 = vector.broadcast %cst_45 : f32 to vector<2x128xf32>
    %175 = arith.addf %174, %173 : vector<2x128xf32>
    %176 = arith.divf %174, %175 : vector<2x128xf32>
    %177 = math.tanh %167 : vector<2x128xf32>
    %178 = vector.extract_strided_slice %176 {offsets = [0, 0], sizes = [2, 32], strides = [1, 1]} : vector<2x128xf32> to vector<2x32xf32>
    %179 = vector.extract_strided_slice %176 {offsets = [0, 32], sizes = [2, 32], strides = [1, 1]} : vector<2x128xf32> to vector<2x32xf32>
    %180 = vector.extract_strided_slice %177 {offsets = [0, 64], sizes = [2, 32], strides = [1, 1]} : vector<2x128xf32> to vector<2x32xf32>
    %181 = vector.extract_strided_slice %176 {offsets = [0, 96], sizes = [2, 32], strides = [1, 1]} : vector<2x128xf32> to vector<2x32xf32>
    %182 = arith.mulf %179, %144 : vector<2x32xf32>
    %183 = arith.mulf %178, %180 : vector<2x32xf32>
    %184 = arith.addf %182, %183 : vector<2x32xf32>
    %185 = math.tanh %184 : vector<2x32xf32>
    %186 = arith.mulf %181, %185 : vector<2x32xf32>
    %187 = arith.negf %171 : vector<2x128xf32>
    %188 = math.exp %187 : vector<2x128xf32>
    %cst_46 = arith.constant 1.000000e+00 : f32
    %189 = vector.broadcast %cst_46 : f32 to vector<2x128xf32>
    %190 = arith.addf %189, %188 : vector<2x128xf32>
    %191 = arith.divf %189, %190 : vector<2x128xf32>
    %192 = math.tanh %171 : vector<2x128xf32>
    %193 = vector.extract_strided_slice %191 {offsets = [0, 0], sizes = [2, 32], strides = [1, 1]} : vector<2x128xf32> to vector<2x32xf32>
    %194 = vector.extract_strided_slice %191 {offsets = [0, 32], sizes = [2, 32], strides = [1, 1]} : vector<2x128xf32> to vector<2x32xf32>
    %195 = vector.extract_strided_slice %192 {offsets = [0, 64], sizes = [2, 32], strides = [1, 1]} : vector<2x128xf32> to vector<2x32xf32>
    %196 = vector.extract_strided_slice %191 {offsets = [0, 96], sizes = [2, 32], strides = [1, 1]} : vector<2x128xf32> to vector<2x32xf32>
    %197 = arith.mulf %194, %159 : vector<2x32xf32>
    %198 = arith.mulf %193, %195 : vector<2x32xf32>
    %199 = arith.addf %197, %198 : vector<2x32xf32>
    %200 = math.tanh %199 : vector<2x32xf32>
    %201 = arith.mulf %196, %200 : vector<2x32xf32>
    %202 = arith.maximumf %162, %186 : vector<2x32xf32>
    %203 = arith.maximumf %163, %201 : vector<2x32xf32>
    %c5_47 = arith.constant 5 : index
    %c0_48 = arith.constant 0 : index
    %c0_49 = arith.constant 0 : index
    %204 = vector.load %arg0[%c5_47, %c0_48, %c0_49] : memref<8x2x128xf32, #tpu.memory_space<vmem>>, vector<1x2x128xf32>
    %205 = vector.shape_cast %204 : vector<1x2x128xf32> to vector<2x128xf32>
    %cst_50 = arith.constant dense<0.000000e+00> : vector<2x128xf32>
    %206 = tpu.matmul %186, %0, %cst_50 {dimension_numbers = #tpu.dot_dimension_numbers<[1], [0], [0], [1], [0, 0, 1, 1], [], []>} : vector<2x32xf32>, vector<32x128xf32>, vector<2x128xf32> -> vector<2x128xf32>
    %207 = arith.addf %205, %206 : vector<2x128xf32>
    %c2_51 = arith.constant 2 : index
    %c0_52 = arith.constant 0 : index
    %c0_53 = arith.constant 0 : index
    %208 = vector.load %arg1[%c2_51, %c0_52, %c0_53] : memref<8x2x128xf32, #tpu.memory_space<vmem>>, vector<1x2x128xf32>
    %209 = vector.shape_cast %208 : vector<1x2x128xf32> to vector<2x128xf32>
    %cst_54 = arith.constant dense<0.000000e+00> : vector<2x128xf32>
    %210 = tpu.matmul %201, %1, %cst_54 {dimension_numbers = #tpu.dot_dimension_numbers<[1], [0], [0], [1], [0, 0, 1, 1], [], []>} : vector<2x32xf32>, vector<32x128xf32>, vector<2x128xf32> -> vector<2x128xf32>
    %211 = arith.addf %209, %210 : vector<2x128xf32>
    %212 = arith.negf %207 : vector<2x128xf32>
    %213 = math.exp %212 : vector<2x128xf32>
    %cst_55 = arith.constant 1.000000e+00 : f32
    %214 = vector.broadcast %cst_55 : f32 to vector<2x128xf32>
    %215 = arith.addf %214, %213 : vector<2x128xf32>
    %216 = arith.divf %214, %215 : vector<2x128xf32>
    %217 = math.tanh %207 : vector<2x128xf32>
    %218 = vector.extract_strided_slice %216 {offsets = [0, 0], sizes = [2, 32], strides = [1, 1]} : vector<2x128xf32> to vector<2x32xf32>
    %219 = vector.extract_strided_slice %216 {offsets = [0, 32], sizes = [2, 32], strides = [1, 1]} : vector<2x128xf32> to vector<2x32xf32>
    %220 = vector.extract_strided_slice %217 {offsets = [0, 64], sizes = [2, 32], strides = [1, 1]} : vector<2x128xf32> to vector<2x32xf32>
    %221 = vector.extract_strided_slice %216 {offsets = [0, 96], sizes = [2, 32], strides = [1, 1]} : vector<2x128xf32> to vector<2x32xf32>
    %222 = arith.mulf %219, %184 : vector<2x32xf32>
    %223 = arith.mulf %218, %220 : vector<2x32xf32>
    %224 = arith.addf %222, %223 : vector<2x32xf32>
    %225 = math.tanh %224 : vector<2x32xf32>
    %226 = arith.mulf %221, %225 : vector<2x32xf32>
    %227 = arith.negf %211 : vector<2x128xf32>
    %228 = math.exp %227 : vector<2x128xf32>
    %cst_56 = arith.constant 1.000000e+00 : f32
    %229 = vector.broadcast %cst_56 : f32 to vector<2x128xf32>
    %230 = arith.addf %229, %228 : vector<2x128xf32>
    %231 = arith.divf %229, %230 : vector<2x128xf32>
    %232 = math.tanh %211 : vector<2x128xf32>
    %233 = vector.extract_strided_slice %231 {offsets = [0, 0], sizes = [2, 32], strides = [1, 1]} : vector<2x128xf32> to vector<2x32xf32>
    %234 = vector.extract_strided_slice %231 {offsets = [0, 32], sizes = [2, 32], strides = [1, 1]} : vector<2x128xf32> to vector<2x32xf32>
    %235 = vector.extract_strided_slice %232 {offsets = [0, 64], sizes = [2, 32], strides = [1, 1]} : vector<2x128xf32> to vector<2x32xf32>
    %236 = vector.extract_strided_slice %231 {offsets = [0, 96], sizes = [2, 32], strides = [1, 1]} : vector<2x128xf32> to vector<2x32xf32>
    %237 = arith.mulf %234, %199 : vector<2x32xf32>
    %238 = arith.mulf %233, %235 : vector<2x32xf32>
    %239 = arith.addf %237, %238 : vector<2x32xf32>
    %240 = math.tanh %239 : vector<2x32xf32>
    %241 = arith.mulf %236, %240 : vector<2x32xf32>
    %242 = arith.maximumf %202, %226 : vector<2x32xf32>
    %243 = arith.maximumf %203, %241 : vector<2x32xf32>
    %c6_57 = arith.constant 6 : index
    %c0_58 = arith.constant 0 : index
    %c0_59 = arith.constant 0 : index
    %244 = vector.load %arg0[%c6_57, %c0_58, %c0_59] : memref<8x2x128xf32, #tpu.memory_space<vmem>>, vector<1x2x128xf32>
    %245 = vector.shape_cast %244 : vector<1x2x128xf32> to vector<2x128xf32>
    %cst_60 = arith.constant dense<0.000000e+00> : vector<2x128xf32>
    %246 = tpu.matmul %226, %0, %cst_60 {dimension_numbers = #tpu.dot_dimension_numbers<[1], [0], [0], [1], [0, 0, 1, 1], [], []>} : vector<2x32xf32>, vector<32x128xf32>, vector<2x128xf32> -> vector<2x128xf32>
    %247 = arith.addf %245, %246 : vector<2x128xf32>
    %c1_61 = arith.constant 1 : index
    %c0_62 = arith.constant 0 : index
    %c0_63 = arith.constant 0 : index
    %248 = vector.load %arg1[%c1_61, %c0_62, %c0_63] : memref<8x2x128xf32, #tpu.memory_space<vmem>>, vector<1x2x128xf32>
    %249 = vector.shape_cast %248 : vector<1x2x128xf32> to vector<2x128xf32>
    %cst_64 = arith.constant dense<0.000000e+00> : vector<2x128xf32>
    %250 = tpu.matmul %241, %1, %cst_64 {dimension_numbers = #tpu.dot_dimension_numbers<[1], [0], [0], [1], [0, 0, 1, 1], [], []>} : vector<2x32xf32>, vector<32x128xf32>, vector<2x128xf32> -> vector<2x128xf32>
    %251 = arith.addf %249, %250 : vector<2x128xf32>
    %252 = arith.negf %247 : vector<2x128xf32>
    %253 = math.exp %252 : vector<2x128xf32>
    %cst_65 = arith.constant 1.000000e+00 : f32
    %254 = vector.broadcast %cst_65 : f32 to vector<2x128xf32>
    %255 = arith.addf %254, %253 : vector<2x128xf32>
    %256 = arith.divf %254, %255 : vector<2x128xf32>
    %257 = math.tanh %247 : vector<2x128xf32>
    %258 = vector.extract_strided_slice %256 {offsets = [0, 0], sizes = [2, 32], strides = [1, 1]} : vector<2x128xf32> to vector<2x32xf32>
    %259 = vector.extract_strided_slice %256 {offsets = [0, 32], sizes = [2, 32], strides = [1, 1]} : vector<2x128xf32> to vector<2x32xf32>
    %260 = vector.extract_strided_slice %257 {offsets = [0, 64], sizes = [2, 32], strides = [1, 1]} : vector<2x128xf32> to vector<2x32xf32>
    %261 = vector.extract_strided_slice %256 {offsets = [0, 96], sizes = [2, 32], strides = [1, 1]} : vector<2x128xf32> to vector<2x32xf32>
    %262 = arith.mulf %259, %224 : vector<2x32xf32>
    %263 = arith.mulf %258, %260 : vector<2x32xf32>
    %264 = arith.addf %262, %263 : vector<2x32xf32>
    %265 = math.tanh %264 : vector<2x32xf32>
    %266 = arith.mulf %261, %265 : vector<2x32xf32>
    %267 = arith.negf %251 : vector<2x128xf32>
    %268 = math.exp %267 : vector<2x128xf32>
    %cst_66 = arith.constant 1.000000e+00 : f32
    %269 = vector.broadcast %cst_66 : f32 to vector<2x128xf32>
    %270 = arith.addf %269, %268 : vector<2x128xf32>
    %271 = arith.divf %269, %270 : vector<2x128xf32>
    %272 = math.tanh %251 : vector<2x128xf32>
    %273 = vector.extract_strided_slice %271 {offsets = [0, 0], sizes = [2, 32], strides = [1, 1]} : vector<2x128xf32> to vector<2x32xf32>
    %274 = vector.extract_strided_slice %271 {offsets = [0, 32], sizes = [2, 32], strides = [1, 1]} : vector<2x128xf32> to vector<2x32xf32>
    %275 = vector.extract_strided_slice %272 {offsets = [0, 64], sizes = [2, 32], strides = [1, 1]} : vector<2x128xf32> to vector<2x32xf32>
    %276 = vector.extract_strided_slice %271 {offsets = [0, 96], sizes = [2, 32], strides = [1, 1]} : vector<2x128xf32> to vector<2x32xf32>
    %277 = arith.mulf %274, %239 : vector<2x32xf32>
    %278 = arith.mulf %273, %275 : vector<2x32xf32>
    %279 = arith.addf %277, %278 : vector<2x32xf32>
    %280 = math.tanh %279 : vector<2x32xf32>
    %281 = arith.mulf %276, %280 : vector<2x32xf32>
    %282 = arith.maximumf %242, %266 : vector<2x32xf32>
    %283 = arith.maximumf %243, %281 : vector<2x32xf32>
    %c7_67 = arith.constant 7 : index
    %c0_68 = arith.constant 0 : index
    %c0_69 = arith.constant 0 : index
    %284 = vector.load %arg0[%c7_67, %c0_68, %c0_69] : memref<8x2x128xf32, #tpu.memory_space<vmem>>, vector<1x2x128xf32>
    %285 = vector.shape_cast %284 : vector<1x2x128xf32> to vector<2x128xf32>
    %cst_70 = arith.constant dense<0.000000e+00> : vector<2x128xf32>
    %286 = tpu.matmul %266, %0, %cst_70 {dimension_numbers = #tpu.dot_dimension_numbers<[1], [0], [0], [1], [0, 0, 1, 1], [], []>} : vector<2x32xf32>, vector<32x128xf32>, vector<2x128xf32> -> vector<2x128xf32>
    %287 = arith.addf %285, %286 : vector<2x128xf32>
    %c0_71 = arith.constant 0 : index
    %c0_72 = arith.constant 0 : index
    %c0_73 = arith.constant 0 : index
    %288 = vector.load %arg1[%c0_71, %c0_72, %c0_73] : memref<8x2x128xf32, #tpu.memory_space<vmem>>, vector<1x2x128xf32>
    %289 = vector.shape_cast %288 : vector<1x2x128xf32> to vector<2x128xf32>
    %cst_74 = arith.constant dense<0.000000e+00> : vector<2x128xf32>
    %290 = tpu.matmul %281, %1, %cst_74 {dimension_numbers = #tpu.dot_dimension_numbers<[1], [0], [0], [1], [0, 0, 1, 1], [], []>} : vector<2x32xf32>, vector<32x128xf32>, vector<2x128xf32> -> vector<2x128xf32>
    %291 = arith.addf %289, %290 : vector<2x128xf32>
    %292 = arith.negf %287 : vector<2x128xf32>
    %293 = math.exp %292 : vector<2x128xf32>
    %cst_75 = arith.constant 1.000000e+00 : f32
    %294 = vector.broadcast %cst_75 : f32 to vector<2x128xf32>
    %295 = arith.addf %294, %293 : vector<2x128xf32>
    %296 = arith.divf %294, %295 : vector<2x128xf32>
    %297 = math.tanh %287 : vector<2x128xf32>
    %298 = vector.extract_strided_slice %296 {offsets = [0, 0], sizes = [2, 32], strides = [1, 1]} : vector<2x128xf32> to vector<2x32xf32>
    %299 = vector.extract_strided_slice %296 {offsets = [0, 32], sizes = [2, 32], strides = [1, 1]} : vector<2x128xf32> to vector<2x32xf32>
    %300 = vector.extract_strided_slice %297 {offsets = [0, 64], sizes = [2, 32], strides = [1, 1]} : vector<2x128xf32> to vector<2x32xf32>
    %301 = vector.extract_strided_slice %296 {offsets = [0, 96], sizes = [2, 32], strides = [1, 1]} : vector<2x128xf32> to vector<2x32xf32>
    %302 = arith.mulf %299, %264 : vector<2x32xf32>
    %303 = arith.mulf %298, %300 : vector<2x32xf32>
    %304 = arith.addf %302, %303 : vector<2x32xf32>
    %305 = math.tanh %304 : vector<2x32xf32>
    %306 = arith.mulf %301, %305 : vector<2x32xf32>
    %307 = arith.negf %291 : vector<2x128xf32>
    %308 = math.exp %307 : vector<2x128xf32>
    %cst_76 = arith.constant 1.000000e+00 : f32
    %309 = vector.broadcast %cst_76 : f32 to vector<2x128xf32>
    %310 = arith.addf %309, %308 : vector<2x128xf32>
    %311 = arith.divf %309, %310 : vector<2x128xf32>
    %312 = math.tanh %291 : vector<2x128xf32>
    %313 = vector.extract_strided_slice %311 {offsets = [0, 0], sizes = [2, 32], strides = [1, 1]} : vector<2x128xf32> to vector<2x32xf32>
    %314 = vector.extract_strided_slice %311 {offsets = [0, 32], sizes = [2, 32], strides = [1, 1]} : vector<2x128xf32> to vector<2x32xf32>
    %315 = vector.extract_strided_slice %312 {offsets = [0, 64], sizes = [2, 32], strides = [1, 1]} : vector<2x128xf32> to vector<2x32xf32>
    %316 = vector.extract_strided_slice %311 {offsets = [0, 96], sizes = [2, 32], strides = [1, 1]} : vector<2x128xf32> to vector<2x32xf32>
    %317 = arith.mulf %314, %279 : vector<2x32xf32>
    %318 = arith.mulf %313, %315 : vector<2x32xf32>
    %319 = arith.addf %317, %318 : vector<2x32xf32>
    %320 = math.tanh %319 : vector<2x32xf32>
    %321 = arith.mulf %316, %320 : vector<2x32xf32>
    %322 = arith.maximumf %282, %306 : vector<2x32xf32>
    %323 = arith.maximumf %283, %321 : vector<2x32xf32>
    %c0_77 = arith.constant 0 : index
    %c0_78 = arith.constant 0 : index
    %324 = vector.load %arg4[%c0_77, %c0_78] : memref<64x4xf32, #tpu.memory_space<vmem>>, vector<64x4xf32>
    %325 = vector.extract_strided_slice %324 {offsets = [0, 0], sizes = [32, 4], strides = [1, 1]} : vector<64x4xf32> to vector<32x4xf32>
    %cst_79 = arith.constant dense<0.000000e+00> : vector<2x4xf32>
    %326 = tpu.matmul %322, %325, %cst_79 {dimension_numbers = #tpu.dot_dimension_numbers<[1], [0], [0], [1], [0, 0, 1, 1], [], []>} : vector<2x32xf32>, vector<32x4xf32>, vector<2x4xf32> -> vector<2x4xf32>
    %327 = vector.extract_strided_slice %324 {offsets = [32, 0], sizes = [32, 4], strides = [1, 1]} : vector<64x4xf32> to vector<32x4xf32>
    %cst_80 = arith.constant dense<0.000000e+00> : vector<2x4xf32>
    %328 = tpu.matmul %323, %327, %cst_80 {dimension_numbers = #tpu.dot_dimension_numbers<[1], [0], [0], [1], [0, 0, 1, 1], [], []>} : vector<2x32xf32>, vector<32x4xf32>, vector<2x4xf32> -> vector<2x4xf32>
    %329 = arith.addf %326, %328 : vector<2x4xf32>
    %c0_81 = arith.constant 0 : index
    %c0_82 = arith.constant 0 : index
    %330 = vector.load %arg5[%c0_81, %c0_82] : memref<1x4xf32, #tpu.memory_space<vmem>>, vector<1x4xf32>
    %331 = vector.broadcast %330 : vector<1x4xf32> to vector<2x4xf32>
    %332 = arith.addf %329, %331 : vector<2x4xf32>
    %cst_83 = arith.constant dense<0xFF800000> : vector<2xf32>
    %333 = vector.multi_reduction <maximumf>, %332, %cst_83 [1] : vector<2x4xf32> to vector<2xf32>
    %334 = vector.shape_cast %333 : vector<2xf32> to vector<2x1xf32>
    %335 = vector.broadcast %334 : vector<2x1xf32> to vector<2x4xf32>
    %336 = arith.subf %332, %335 : vector<2x4xf32>
    %337 = math.exp %336 : vector<2x4xf32>
    %cst_84 = arith.constant dense<0.000000e+00> : vector<2xf32>
    %338 = vector.multi_reduction <add>, %337, %cst_84 [1] : vector<2x4xf32> to vector<2xf32>
    %339 = vector.shape_cast %338 : vector<2xf32> to vector<2x1xf32>
    %340 = tpu.reciprocal %339 {approx = true} : vector<2x1xf32> -> vector<2x1xf32>
    %341 = vector.broadcast %340 : vector<2x1xf32> to vector<2x4xf32>
    %342 = arith.mulf %337, %341 : vector<2x4xf32>
    %c0_85 = arith.constant 0 : index
    %c0_86 = arith.constant 0 : index
    %343 = vector.load %arg6[%c0_85, %c0_86] : memref<2x4xf32, #tpu.memory_space<vmem>>, vector<2x4xf32>
    tpu.vector_store %arg6[%c0_85, %c0_86], %342 {strides = array<i32>} : memref<2x4xf32, #tpu.memory_space<vmem>>, vector<2x4xf32>,
    return
  }
}

</mosaic_0001>

<bundles_post_ra>
// kernel: model_forward.2
= control target key start
LH: loop header
LB: loop body
LE: loop exit
PB: predicated region body
PF: predicated region fallthrough
CT: control target
= control target key end

     0   :  { %v1309_v8 = vmov 0.0   ;;  %s1310_s11 = smov 64   ;;  %s1311_s12 = smov 32   ;;  %vm154_vm8 = vcmask 254976   ;;  %vm28_vm9 = vcmask 261120   ;;  %s1692_s2 = inlined_call_operand.vmem [shape: f32[32,128], index: 2, kind: input, shape index: {}]   ;;  %s1693_s3 = inlined_call_operand.vmem [shape: f32[32,128], index: 3, kind: input, shape index: {}]   ;;  %s1694_s0 = inlined_call_operand.vmem [shape: f32[8,2,128], index: 0, kind: input, shape index: {}]   ;;  %s1695_s1 = inlined_call_operand.vmem [shape: f32[8,2,128], index: 1, kind: input, shape index: {}]   ;;  %s1696_s4 = inlined_call_operand.vmem [shape: f32[8,2,32], index: 4, kind: output, shape index: {0}]   ;;  %s1697_s5 = inlined_call_operand.vmem [shape: f32[8,2,32], index: 5, kind: output, shape index: {1}]  }
   0x1   :  { %v1345_v0 = vld [vmem:[%s1692_s2 + $0x18] sm:$0xff]  ;;  %v1355_v2 = vld [vmem:[%s1692_s2 + $0x10] sm:$0xff]  ;;  %v1367_v4 = vld [vmem:[%s1692_s2 + $0x8] sm:$0xff] }
   0x2   :  { %v1350_v1 = vld [vmem:[%s1693_s3 + $0x18] sm:$0xff]  ;;  %44 = vmatpush.msra.mxu0 %v1345_v0  ;;  %v1362_v3 = vld [vmem:[%s1693_s3 + $0x10] sm:$0xff]  ;;  %v1372_v5 = vld [vmem:[%s1693_s3 + $0x8] sm:$0xff]  ;;  %178 = vmatpush.msra.mxu2 %v1345_v0 }
   0x3   :  { %67 = vmatpush.msra.mxu1 %v1350_v1  ;;  %203 = vmatpush.msra.mxu3 %v1350_v1  ;;  %v1381_v6 = vld [vmem:[%s1692_s2] sm:$0xff]  ;;  %v1120_v12 = vld [vmem:[%s1695_s1 + $0xe] sm:$0x3] }
   0x4   :  { %45 = vmatpush.msra.mxu0 %v1355_v2  ;;  %v1386_v7 = vld [vmem:[%s1693_s3] sm:$0xff]  ;;  %179 = vmatpush.msra.mxu2 %v1355_v2 }
   0x5   :  { %68 = vmatpush.msra.mxu1 %v1362_v3  ;;  %204 = vmatpush.msra.mxu3 %v1362_v3  ;;  %v27_v9 = vld [vmem:[%s1694_s0] sm:$0x3]  ;;  %v1124_v61 = vld [vmem:[%s1694_s0 + $0x2] sm:$0x3] }
   0x6   :  { %46 = vmatpush.msra.mxu0 %v1367_v4  ;;  %180 = vmatpush.msra.mxu2 %v1367_v4 }
   0x7   :  { %69 = vmatpush.msra.mxu1 %v1372_v5  ;;  %205 = vmatpush.msra.mxu3 %v1372_v5 }
   0x8   :  { %47 = vmatpush.msra.mxu0 %v1381_v6  ;;  %181 = vmatpush.msra.mxu2 %v1381_v6 }
   0x9   :  { %70 = vmatpush.msra.mxu1 %v1386_v7  ;;  %48 = vmatmul.f32.vlgmr.msra.gmra.mxu0 %v1309_v8 }
   0xa   :  { %71 = vmatmul.f32.vlgmr.msra.gmra.mxu1 %v1309_v8  ;;  %206 = vmatpush.msra.mxu3 %v1386_v7  ;;  %v1126_v8 = vld [vmem:[%s1695_s1 + $0xc] sm:$0x3] }
   0xb   :  { %314 = vmatpush.msrb.mxu0 %v1345_v0  ;;  %339 = vmatpush.msrb.mxu1 %v1350_v1 }
   0xc   :  { %450 = vmatpush.msrb.mxu2 %v1345_v0  ;;  %475 = vmatpush.msrb.mxu3 %v1350_v1 }
   0xd   :  { %315 = vmatpush.msrb.mxu0 %v1355_v2  ;;  %340 = vmatpush.msrb.mxu1 %v1362_v3 }
   0xe   :  { %451 = vmatpush.msrb.mxu2 %v1355_v2  ;;  %476 = vmatpush.msrb.mxu3 %v1362_v3 }
   0xf   :  { %316 = vmatpush.msrb.mxu0 %v1367_v4  ;;  %341 = vmatpush.msrb.mxu1 %v1372_v5 }
  0x10   :  { %452 = vmatpush.msrb.mxu2 %v1367_v4  ;;  %477 = vmatpush.msrb.mxu3 %v1372_v5 }
  0x11   :  { %317 = vmatpush.msrb.mxu0 %v1381_v6  ;;  %342 = vmatpush.msrb.mxu1 %v1386_v7 }
  0x12   :  { %453 = vmatpush.msrb.mxu2 %v1381_v6  ;;  %478 = vmatpush.msrb.mxu3 %v1386_v7 }
  0x13   :  { %586 = vmatpush.msra.mxu0 %v1345_v0  ;;  %611 = vmatpush.msra.mxu1 %v1350_v1 }
  0x15   :  { %587 = vmatpush.msra.mxu0 %v1355_v2  ;;  %612 = vmatpush.msra.mxu1 %v1362_v3 }
  0x17   :  { %588 = vmatpush.msra.mxu0 %v1367_v4  ;;  %613 = vmatpush.msra.mxu1 %v1372_v5 }
  0x19   :  { %589 = vmatpush.msra.mxu0 %v1381_v6  ;;  %614 = vmatpush.msra.mxu1 %v1386_v7 }
  0x86   :  { %v49_v10 = vpop.f32.mrf.mxu0 }
  0x87   :  { %v52_v11 = vadd.f32 %v49_v10, %v27_v9  ;;  %v72_v13 = vpop.f32.mrf.mxu1 }
  0x88   :  { %v75_v14 = vadd.f32 %v1120_v12, %v72_v13 }
  0x89   :  { %1181 = vtanh.f32 %v52_v11  ;;  %v1121_v17 = vmul.f32 -1.442695, %v52_v11 }
  0x8a   :  { %1183 = vtanh.f32 %v75_v14  ;;  %v1122_v18 = vmul.f32 -1.442695, %v75_v14 }
  0x8b   :  { %1185 = vpow2.f32 %v1121_v17 }
  0x8c   :  { %1187 = vpow2.f32 %v1122_v18 }
  0x8f   :  { %v1182_v15 = vpop.eup %1181 }
  0x90   :  { %98 = vrot.lane.b32.xlu0 %v1182_v15, %s1310_s11  ;;  %v1184_v16 = vpop.eup %1183 }
  0x91   :  { %v1186_v19 = vpop.eup %1185 }
  0x92   :  { %v79_v20 = vadd.f32 1.0, %v1186_v19  ;;  %v1188_v21 = vpop.eup %1187 }
  0x93   :  { %v116_v22 = vadd.f32 1.0, %v1188_v21 }
  0x94   :  { %1189 = vrcp.f32 %v79_v20  ;;  %v91_v31 = vand.u32 2147483648, %v79_v20  ;;  %vm85_vm1 = vweird.f32 %v79_v20  ;;  %v89_v32 = vand.u32 2147483647, %v79_v20 }
  0x95   :  { %1191 = vrcp.f32 %v116_v22  ;;  %vm122_vm4 = vweird.f32 %v116_v22  ;;  %v128_v40 = vand.u32 2147483648, %v116_v22  ;;  %v126_v41 = vand.u32 2147483647, %v116_v22 }
  0x96   :  { %v92_v35 = vor.u32 1.1754944e-38, %v91_v31  ;;  %vm90_vm3 = vcmp.eq.f32.partialorder %v89_v32, 8.507059e+37 }
  0x97   :  { %v129_v43 = vor.u32 1.1754944e-38, %v128_v40  ;;  %vm127_vm7 = vcmp.eq.f32.partialorder %v126_v41, 8.507059e+37 }
  0x98   :  { %135 = vrot.lane.b32.xlu0 %v1184_v16, %s1310_s11 }
  0x9a   :  { %v1190_v23 = vpop.eup %1189 }
  0x9b   :  { %v81_v24 = vmul.f32 %v1190_v23, %v79_v20  ;;  %v1192_v26 = vpop.eup %1191  ;;  %vm86_vm0 = vweird.f32 %v1190_v23 }
  0x9c   :  { %v118_v28 = vmul.f32 %v1192_v26, %v116_v22  ;;  %vm87_vm2 = vmor %vm85_vm1, %vm86_vm0  ;;  %vm123_vm5 = vweird.f32 %v1192_v26 }
  0x9d   :  { %v82_v25 = vsub.f32 1.0, %v81_v24  ;;  %vm124_vm6 = vmor %vm122_vm4, %vm123_vm5 }
  0x9e   :  { %v119_v30 = vsub.f32 1.0, %v118_v28 }
  0x9f   :  { %v83_v27 = vmul.f32 %v1190_v23, %v82_v25 }
  0xa0   :  { %v120_v34 = vmul.f32 %v1192_v26, %v119_v30 }
  0xa1   :  { %v84_v29 = vadd.f32 %v1190_v23, %v83_v27 }
  0xa2   :  { %v121_v39 = vadd.f32 %v1192_v26, %v120_v34 }
  0xa3   :  { %v88_v33 = vsel %vm87_vm2, %v1190_v23, %v84_v29 }
  0xa4   :  { %v93_v37 = vsel %vm90_vm3, %v92_v35, %v88_v33  ;;  %v125_v42 = vsel %vm124_vm6, %v1192_v26, %v121_v39 }
  0xa5   :  { %v130_v44 = vsel %vm127_vm7, %v129_v43, %v125_v42  ;;  %v96_v47 = vmul.f32 0.0, %v93_v37 }
  0xa6   :  { %v133_v50 = vmul.f32 0.0, %v130_v44 }
 0x102   :  { %v99_v36 = vpop.permute.xlu0 %98 }
 0x103   :  { %v101_v38 = vmul.f32 %v99_v36, %v93_v37 }
 0x105   :  { %103 = vrot.lane.b32.xlu1 %v101_v38, %s1311_s12 }
 0x10a   :  { %v136_v45 = vpop.permute.xlu0 %135 }
 0x10b   :  { %v138_v46 = vmul.f32 %v136_v45, %v130_v44 }
 0x10d   :  { %140 = vrot.lane.b32.xlu1 %v138_v46, %s1311_s12 }
 0x177   :  { %v104_v48 = vpop.permute.xlu1 %103 }
 0x178   :  { %v1432_v49 = vadd.f32 %v104_v48, %v96_v47 }
 0x17a   :  { %1193 = vtanh.f32 %v1432_v49 }
 0x17f   :  { %v141_v51 = vpop.permute.xlu1 %140 }
 0x180   :  { %v1194_v52 = vpop.eup %1193  ;;  %v1435_v53 = vadd.f32 %v141_v51, %v133_v50 }
 0x181   :  { %109 = vrot.lane.b32.xlu2 %v1194_v52, %s1310_s11 }
 0x182   :  { %1195 = vtanh.f32 %v1435_v53 }
 0x188   :  { %v1196_v54 = vpop.eup %1195 }
 0x189   :  { %146 = vrot.lane.b32.xlu2 %v1196_v54, %s1310_s11 }
 0x1db   :  { %v110_v55 = vpop.permute.xlu2 %109 }
 0x1dc   :  { %v112_v56 = vmul.f32 %v110_v55, %v93_v37 }
 0x1de   :  { %151 = vrot.lane.b32.xlu0 %v112_v56, %s1311_s12 }
 0x1e3   :  { %v147_v57 = vpop.permute.xlu2 %146 }
 0x1e4   :  { %v149_v58 = vmul.f32 %v147_v57, %v130_v44  ;;  %v1132_v57 = vld [vmem:[%s1694_s0 + $0x4] sm:$0x3] }
 0x1e6   :  { %157 = vrot.lane.b32.xlu1 %v149_v58, %s1311_s12 }
 0x250   :  { %v152_v59 = vpop.permute.xlu0 %151 }
 0x251   :  { %155 = vst.msk [vmem:[%s1696_s4] sm:$0x3] %vm154_vm8, %v152_v59  ;;  %1125 = vmatmul.msk.f32.vlgmr.msra.gmra.mxu2 %vm28_vm9, %v152_v59 }
 0x252   :  { %722 = vmatpush.msra.mxu2 %v1345_v0 }
 0x254   :  { %723 = vmatpush.msra.mxu2 %v1355_v2 }
 0x256   :  { %724 = vmatpush.msra.mxu2 %v1367_v4 }
 0x258   :  { %v158_v60 = vpop.permute.xlu1 %157  ;;  %725 = vmatpush.msra.mxu2 %v1381_v6 }
 0x259   :  { %1123 = vst.msk [vmem:[%s1697_s5 + $0xe] sm:$0x3] %vm154_vm8, %v158_v60  ;;  %1127 = vmatmul.msk.f32.vlgmr.msra.gmra.mxu3 %vm28_vm9, %v158_v60 }
 0x25a   :  { %747 = vmatpush.msra.mxu3 %v1350_v1 }
 0x25c   :  { %748 = vmatpush.msra.mxu3 %v1362_v3 }
 0x25e   :  { %749 = vmatpush.msra.mxu3 %v1372_v5 }
 0x260   :  { %750 = vmatpush.msra.mxu3 %v1386_v7 }
 0x2d4   :  { %v183_v62 = vpop.f32.mrf.mxu2 }
 0x2d5   :  { %v186_v63 = vadd.f32 %v1124_v61, %v183_v62  ;;  %v1134_v61 = vld [vmem:[%s1695_s1 + $0xa] sm:$0x3] }
 0x2d7   :  { %1197 = vtanh.f32 %v186_v63  ;;  %v1128_v13 = vmul.f32 -1.442695, %v186_v63 }
 0x2dc   :  { %v208_v9 = vpop.f32.mrf.mxu3 }
 0x2dd   :  { %v1198_v10 = vpop.eup %1197  ;;  %v211_v11 = vadd.f32 %v1126_v8, %v208_v9 }
 0x2de   :  { %234 = vrot.lane.b32.xlu2 %v1198_v10, %s1310_s11 }
 0x2df   :  { %1199 = vtanh.f32 %v211_v11  ;;  %v1129_v19 = vmul.f32 -1.442695, %v211_v11 }
 0x2e0   :  { %1201 = vpow2.f32 %v1128_v13 }
 0x2e5   :  { %v1200_v12 = vpop.eup %1199 }
 0x2e6   :  { %271 = vrot.lane.b32.xlu0 %v1200_v12, %s1310_s11  ;;  %v1202_v14 = vpop.eup %1201 }
 0x2e7   :  { %v215_v15 = vadd.f32 1.0, %v1202_v14 }
 0x2e9   :  { %1203 = vrcp.f32 %v215_v15  ;;  %v227_v22 = vand.u32 2147483648, %v215_v15  ;;  %vm221_vm11 = vweird.f32 %v215_v15  ;;  %v225_v23 = vand.u32 2147483647, %v215_v15 }
 0x2ea   :  { %1205 = vpow2.f32 %v1129_v19 }
 0x2eb   :  { %v228_v26 = vor.u32 1.1754944e-38, %v227_v22  ;;  %vm226_vm13 = vcmp.eq.f32.partialorder %v225_v23, 8.507059e+37 }
 0x2ef   :  { %v1204_v16 = vpop.eup %1203 }
 0x2f0   :  { %v217_v17 = vmul.f32 %v1204_v16, %v215_v15  ;;  %vm222_vm10 = vweird.f32 %v1204_v16  ;;  %v1206_v24 = vpop.eup %1205 }
 0x2f1   :  { %vm223_vm12 = vmor %vm221_vm11, %vm222_vm10  ;;  %v252_v27 = vadd.f32 1.0, %v1206_v24 }
 0x2f2   :  { %v218_v18 = vsub.f32 1.0, %v217_v17 }
 0x2f3   :  { %1207 = vrcp.f32 %v252_v27  ;;  %v264_v36 = vand.u32 2147483648, %v252_v27  ;;  %vm258_vm15 = vweird.f32 %v252_v27  ;;  %v262_v37 = vand.u32 2147483647, %v252_v27 }
 0x2f4   :  { %v219_v20 = vmul.f32 %v1204_v16, %v218_v18 }
 0x2f5   :  { %v265_v39 = vor.u32 1.1754944e-38, %v264_v36  ;;  %vm263_vm1 = vcmp.eq.f32.partialorder %v262_v37, 8.507059e+37 }
 0x2f6   :  { %v220_v21 = vadd.f32 %v1204_v16, %v219_v20 }
 0x2f8   :  { %v224_v25 = vsel %vm223_vm12, %v1204_v16, %v220_v21 }
 0x2f9   :  { %v229_v28 = vsel %vm226_vm13, %v228_v26, %v224_v25  ;;  %v1208_v31 = vpop.eup %1207 }
 0x2fa   :  { %v254_v32 = vmul.f32 %v1208_v31, %v252_v27  ;;  %vm259_vm14 = vweird.f32 %v1208_v31  ;;  %v232_v43 = vmul.f32 %v229_v28, %v1432_v49 }
 0x2fb   :  { %vm260_vm0 = vmor %vm258_vm15, %vm259_vm14 }
 0x2fc   :  { %v255_v33 = vsub.f32 1.0, %v254_v32 }
 0x2fe   :  { %v256_v34 = vmul.f32 %v1208_v31, %v255_v33 }
 0x300   :  { %v257_v35 = vadd.f32 %v1208_v31, %v256_v34 }
 0x302   :  { %v261_v38 = vsel %vm260_vm0, %v1208_v31, %v257_v35 }
 0x303   :  { %v266_v41 = vsel %vm263_vm1, %v265_v39, %v261_v38 }
 0x304   :  { %v269_v46 = vmul.f32 %v266_v41, %v1435_v53 }
 0x338   :  { %v235_v29 = vpop.permute.xlu2 %234 }
 0x339   :  { %v237_v30 = vmul.f32 %v235_v29, %v229_v28 }
 0x33b   :  { %239 = vrot.lane.b32.xlu1 %v237_v30, %s1311_s12 }
 0x358   :  { %v272_v40 = vpop.permute.xlu0 %271 }
 0x359   :  { %v274_v42 = vmul.f32 %v272_v40, %v266_v41 }
 0x35b   :  { %276 = vrot.lane.b32.xlu2 %v274_v42, %s1311_s12 }
 0x3ad   :  { %v240_v44 = vpop.permute.xlu1 %239 }
 0x3ae   :  { %v1471_v45 = vadd.f32 %v240_v44, %v232_v43 }
 0x3b0   :  { %1209 = vtanh.f32 %v1471_v45 }
 0x3b5   :  { %v277_v47 = vpop.permute.xlu2 %276 }
 0x3b6   :  { %v1210_v48 = vpop.eup %1209  ;;  %v1475_v50 = vadd.f32 %v277_v47, %v269_v46 }
 0x3b7   :  { %245 = vrot.lane.b32.xlu0 %v1210_v48, %s1310_s11 }
 0x3b8   :  { %1211 = vtanh.f32 %v1475_v50 }
 0x3be   :  { %v1212_v51 = vpop.eup %1211 }
 0x3bf   :  { %282 = vrot.lane.b32.xlu1 %v1212_v51, %s1310_s11 }
 0x429   :  { %v246_v52 = vpop.permute.xlu0 %245 }
 0x42a   :  { %v248_v49 = vmul.f32 %v246_v52, %v229_v28 }
 0x42c   :  { %287 = vrot.lane.b32.xlu2 %v248_v49, %s1311_s12 }
 0x431   :  { %v283_v54 = vpop.permute.xlu1 %282 }
 0x432   :  { %v285_v55 = vmul.f32 %v283_v54, %v266_v41 }
 0x434   :  { %293 = vrot.lane.b32.xlu0 %v285_v55, %s1311_s12 }
 0x486   :  { %v288_v53 = vpop.permute.xlu2 %287 }
 0x487   :  { %1130 = vst.msk [vmem:[%s1696_s4 + $0x2] sm:$0x3] %vm154_vm8, %v288_v53  ;;  %1133 = vmatmul.msk.f32.vlgmr.msrb.gmra.mxu0 %vm28_vm9, %v288_v53 }
 0x488   :  { %858 = vmatpush.msrb.mxu0 %v1345_v0 }
 0x48a   :  { %859 = vmatpush.msrb.mxu0 %v1355_v2 }
 0x48c   :  { %860 = vmatpush.msrb.mxu0 %v1367_v4 }
 0x48e   :  { %861 = vmatpush.msrb.mxu0 %v1381_v6 }
 0x4a6   :  { %v294_v56 = vpop.permute.xlu0 %293 }
 0x4a7   :  { %1131 = vst.msk [vmem:[%s1697_s5 + $0xc] sm:$0x3] %vm154_vm8, %v294_v56  ;;  %1135 = vmatmul.msk.f32.vlgmr.msrb.gmra.mxu1 %vm28_vm9, %v294_v56 }
 0x4a8   :  { %883 = vmatpush.msrb.mxu1 %v1350_v1 }
 0x4aa   :  { %884 = vmatpush.msrb.mxu1 %v1362_v3 }
 0x4ac   :  { %885 = vmatpush.msrb.mxu1 %v1372_v5 }
 0x4ae   :  { %886 = vmatpush.msrb.mxu1 %v1386_v7 }
 0x504   :  { %v319_v58 = vpop.f32.mrf.mxu0 }
 0x505   :  { %v322_v59 = vadd.f32 %v1132_v57, %v319_v58 }
 0x507   :  { %1213 = vtanh.f32 %v322_v59  ;;  %v1136_v9 = vmul.f32 -1.442695, %v322_v59 }
 0x50d   :  { %v1214_v60 = vpop.eup %1213 }
 0x50e   :  { %370 = vrot.lane.b32.xlu1 %v1214_v60, %s1310_s11 }
 0x524   :  { %v344_v62 = vpop.f32.mrf.mxu1 }
 0x525   :  { %v347_v63 = vadd.f32 %v1134_v61, %v344_v62 }
 0x527   :  { %1215 = vtanh.f32 %v347_v63  ;;  %v1137_v10 = vmul.f32 -1.442695, %v347_v63 }
 0x528   :  { %1217 = vpow2.f32 %v1136_v9 }
 0x529   :  { %1219 = vpow2.f32 %v1137_v10 }
 0x52d   :  { %v1216_v8 = vpop.eup %1215 }
 0x52e   :  { %407 = vrot.lane.b32.xlu2 %v1216_v8, %s1310_s11  ;;  %v1218_v11 = vpop.eup %1217 }
 0x52f   :  { %v351_v12 = vadd.f32 1.0, %v1218_v11  ;;  %v1220_v13 = vpop.eup %1219 }
 0x530   :  { %v388_v14 = vadd.f32 1.0, %v1220_v13 }
 0x531   :  { %1221 = vrcp.f32 %v351_v12  ;;  %v363_v23 = vand.u32 2147483648, %v351_v12  ;;  %vm357_vm3 = vweird.f32 %v351_v12  ;;  %v361_v24 = vand.u32 2147483647, %v351_v12 }
 0x532   :  { %1223 = vrcp.f32 %v388_v14  ;;  %v400_v32 = vand.u32 2147483648, %v388_v14  ;;  %vm394_vm7 = vweird.f32 %v388_v14  ;;  %v398_v33 = vand.u32 2147483647, %v388_v14 }
 0x533   :  { %v364_v27 = vor.u32 1.1754944e-38, %v363_v23  ;;  %vm362_vm5 = vcmp.eq.f32.partialorder %v361_v24, 8.507059e+37 }
 0x534   :  { %v401_v35 = vor.u32 1.1754944e-38, %v400_v32  ;;  %vm399_vm11 = vcmp.eq.f32.partialorder %v398_v33, 8.507059e+37 }
 0x537   :  { %v1222_v15 = vpop.eup %1221 }
 0x538   :  { %v353_v16 = vmul.f32 %v1222_v15, %v351_v12  ;;  %v1224_v18 = vpop.eup %1223  ;;  %vm358_vm2 = vweird.f32 %v1222_v15 }
 0x539   :  { %v390_v20 = vmul.f32 %v1224_v18, %v388_v14  ;;  %vm359_vm4 = vmor %vm357_vm3, %vm358_vm2  ;;  %vm395_vm6 = vweird.f32 %v1224_v18 }
 0x53a   :  { %v354_v17 = vsub.f32 1.0, %v353_v16  ;;  %vm396_vm10 = vmor %vm394_vm7, %vm395_vm6 }
 0x53b   :  { %v391_v22 = vsub.f32 1.0, %v390_v20 }
 0x53c   :  { %v355_v19 = vmul.f32 %v1222_v15, %v354_v17 }
 0x53d   :  { %v392_v26 = vmul.f32 %v1224_v18, %v391_v22 }
 0x53e   :  { %v356_v21 = vadd.f32 %v1222_v15, %v355_v19 }
 0x53f   :  { %v393_v31 = vadd.f32 %v1224_v18, %v392_v26 }
 0x540   :  { %v360_v25 = vsel %vm359_vm4, %v1222_v15, %v356_v21 }
 0x541   :  { %v365_v29 = vsel %vm362_vm5, %v364_v27, %v360_v25  ;;  %v397_v34 = vsel %vm396_vm10, %v1224_v18, %v393_v31 }
 0x542   :  { %v402_v36 = vsel %vm399_vm11, %v401_v35, %v397_v34  ;;  %v368_v39 = vmul.f32 %v365_v29, %v1471_v45 }
 0x543   :  { %v405_v42 = vmul.f32 %v402_v36, %v1475_v50 }
 0x580   :  { %v371_v28 = vpop.permute.xlu1 %370 }
 0x581   :  { %v373_v30 = vmul.f32 %v371_v28, %v365_v29 }
 0x583   :  { %375 = vrot.lane.b32.xlu0 %v373_v30, %s1311_s12 }
 0x588   :  { %v408_v37 = vpop.permute.xlu2 %407 }
 0x589   :  { %v410_v38 = vmul.f32 %v408_v37, %v402_v36 }
 0x58b   :  { %412 = vrot.lane.b32.xlu1 %v410_v38, %s1311_s12 }
 0x5f5   :  { %v376_v40 = vpop.permute.xlu0 %375 }
 0x5f6   :  { %v1511_v41 = vadd.f32 %v376_v40, %v368_v39 }
 0x5f8   :  { %1225 = vtanh.f32 %v1511_v41 }
 0x5fd   :  { %v413_v43 = vpop.permute.xlu1 %412 }
 0x5fe   :  { %v1226_v44 = vpop.eup %1225  ;;  %v1515_v46 = vadd.f32 %v413_v43, %v405_v42 }
 0x5ff   :  { %381 = vrot.lane.b32.xlu2 %v1226_v44, %s1310_s11  ;;  %v1150_v44 = vld [vmem:[%s1695_s1 + $0x6] sm:$0x3] }
 0x600   :  { %1227 = vtanh.f32 %v1515_v46 }
 0x606   :  { %v1228_v47 = vpop.eup %1227 }
 0x607   :  { %418 = vrot.lane.b32.xlu0 %v1228_v47, %s1310_s11 }
 0x659   :  { %v382_v48 = vpop.permute.xlu2 %381 }
 0x65a   :  { %v384_v45 = vmul.f32 %v382_v48, %v365_v29 }
 0x65c   :  { %423 = vrot.lane.b32.xlu1 %v384_v45, %s1311_s12 }
 0x679   :  { %v419_v51 = vpop.permute.xlu0 %418 }
 0x67a   :  { %v421_v52 = vmul.f32 %v419_v51, %v402_v36 }
 0x67c   :  { %429 = vrot.lane.b32.xlu2 %v421_v52, %s1311_s12 }
 0x6ce   :  { %v424_v50 = vpop.permute.xlu1 %423 }
 0x6cf   :  { %1138 = vst.msk [vmem:[%s1696_s4 + $0x4] sm:$0x3] %vm154_vm8, %v424_v50  ;;  %1141 = vmatmul.msk.f32.vlgmr.msrb.gmra.mxu2 %vm28_vm9, %v424_v50 }
 0x6d0   :  { %994 = vmatpush.msrb.mxu2 %v1345_v0  ;;  %v1140_v0 = vld [vmem:[%s1694_s0 + $0x6] sm:$0x3] }
 0x6d2   :  { %995 = vmatpush.msrb.mxu2 %v1355_v2 }
 0x6d4   :  { %996 = vmatpush.msrb.mxu2 %v1367_v4 }
 0x6d6   :  { %v430_v49 = vpop.permute.xlu2 %429  ;;  %997 = vmatpush.msrb.mxu2 %v1381_v6  ;;  %v1142_v6 = vld [vmem:[%s1695_s1 + $0x8] sm:$0x3] }
 0x6d7   :  { %1139 = vst.msk [vmem:[%s1697_s5 + $0xa] sm:$0x3] %vm154_vm8, %v430_v49  ;;  %1143 = vmatmul.msk.f32.vlgmr.msrb.gmra.mxu3 %vm28_vm9, %v430_v49 }
 0x6d8   :  { %1018 = vmatpush.msrb.mxu3 %v1350_v1 }
 0x6da   :  { %1019 = vmatpush.msrb.mxu3 %v1362_v3 }
 0x6dc   :  { %1020 = vmatpush.msrb.mxu3 %v1372_v5 }
 0x6de   :  { %1021 = vmatpush.msrb.mxu3 %v1386_v7 }
 0x752   :  { %v455_v2 = vpop.f32.mrf.mxu2 }
 0x753   :  { %v458_v4 = vadd.f32 %v1140_v0, %v455_v2 }
 0x755   :  { %1229 = vtanh.f32 %v458_v4  ;;  %v1144_v5 = vmul.f32 -1.442695, %v458_v4 }
 0x75a   :  { %v480_v54 = vpop.f32.mrf.mxu3 }
 0x75b   :  { %v1230_v55 = vpop.eup %1229  ;;  %v483_v1 = vadd.f32 %v1142_v6, %v480_v54 }
 0x75c   :  { %506 = vrot.lane.b32.xlu0 %v1230_v55, %s1310_s11 }
 0x75d   :  { %1231 = vtanh.f32 %v483_v1  ;;  %v1145_v7 = vmul.f32 -1.442695, %v483_v1 }
 0x75e   :  { %1233 = vpow2.f32 %v1144_v5 }
 0x75f   :  { %1235 = vpow2.f32 %v1145_v7 }
 0x763   :  { %v1232_v3 = vpop.eup %1231 }
 0x764   :  { %543 = vrot.lane.b32.xlu1 %v1232_v3, %s1310_s11  ;;  %v1234_v53 = vpop.eup %1233 }
 0x765   :  { %v487_v56 = vadd.f32 1.0, %v1234_v53  ;;  %v1236_v57 = vpop.eup %1235 }
 0x766   :  { %v524_v58 = vadd.f32 1.0, %v1236_v57 }
 0x767   :  { %1237 = vrcp.f32 %v487_v56  ;;  %v499_v11 = vand.u32 2147483648, %v487_v56  ;;  %vm493_vm13 = vweird.f32 %v487_v56  ;;  %v497_v12 = vand.u32 2147483647, %v487_v56 }
 0x768   :  { %1239 = vrcp.f32 %v524_v58  ;;  %v536_v20 = vand.u32 2147483648, %v524_v58  ;;  %vm530_vm1 = vweird.f32 %v524_v58  ;;  %v534_v21 = vand.u32 2147483647, %v524_v58 }
 0x769   :  { %v500_v15 = vor.u32 1.1754944e-38, %v499_v11  ;;  %vm498_vm15 = vcmp.eq.f32.partialorder %v497_v12, 8.507059e+37 }
 0x76a   :  { %v537_v23 = vor.u32 1.1754944e-38, %v536_v20  ;;  %vm535_vm3 = vcmp.eq.f32.partialorder %v534_v21, 8.507059e+37 }
 0x76d   :  { %v1238_v59 = vpop.eup %1237 }
 0x76e   :  { %v489_v60 = vmul.f32 %v1238_v59, %v487_v56  ;;  %v1240_v62 = vpop.eup %1239  ;;  %vm494_vm12 = vweird.f32 %v1238_v59 }
 0x76f   :  { %v526_v8 = vmul.f32 %v1240_v62, %v524_v58  ;;  %vm495_vm14 = vmor %vm493_vm13, %vm494_vm12  ;;  %vm531_vm0 = vweird.f32 %v1240_v62 }
 0x770   :  { %v490_v61 = vsub.f32 1.0, %v489_v60  ;;  %vm532_vm2 = vmor %vm530_vm1, %vm531_vm0 }
 0x771   :  { %v527_v10 = vsub.f32 1.0, %v526_v8 }
 0x772   :  { %v491_v63 = vmul.f32 %v1238_v59, %v490_v61 }
 0x773   :  { %v528_v14 = vmul.f32 %v1240_v62, %v527_v10 }
 0x774   :  { %v492_v9 = vadd.f32 %v1238_v59, %v491_v63 }
 0x775   :  { %v529_v19 = vadd.f32 %v1240_v62, %v528_v14 }
 0x776   :  { %v496_v13 = vsel %vm495_vm14, %v1238_v59, %v492_v9 }
 0x777   :  { %v501_v17 = vsel %vm498_vm15, %v500_v15, %v496_v13  ;;  %v533_v22 = vsel %vm532_vm2, %v1240_v62, %v529_v19 }
 0x778   :  { %v538_v25 = vsel %vm535_vm3, %v537_v23, %v533_v22  ;;  %v504_v27 = vmul.f32 %v501_v17, %v1511_v41  ;;  %v1148_v41 = vld [vmem:[%s1694_s0 + $0x8] sm:$0x3] }
 0x779   :  { %v541_v31 = vmul.f32 %v538_v25, %v1515_v46 }
 0x7ce   :  { %v507_v16 = vpop.permute.xlu0 %506 }
 0x7cf   :  { %v509_v18 = vmul.f32 %v507_v16, %v501_v17 }
 0x7d1   :  { %511 = vrot.lane.b32.xlu2 %v509_v18, %s1311_s12 }
 0x7d6   :  { %v544_v24 = vpop.permute.xlu1 %543 }
 0x7d7   :  { %v546_v26 = vmul.f32 %v544_v24, %v538_v25 }
 0x7d9   :  { %548 = vrot.lane.b32.xlu0 %v546_v26, %s1311_s12 }
 0x82b   :  { %v512_v28 = vpop.permute.xlu2 %511 }
 0x82c   :  { %v1551_v29 = vadd.f32 %v512_v28, %v504_v27 }
 0x82e   :  { %1241 = vtanh.f32 %v1551_v29 }
 0x834   :  { %v1242_v30 = vpop.eup %1241 }
 0x835   :  { %517 = vrot.lane.b32.xlu1 %v1242_v30, %s1310_s11 }
 0x84b   :  { %v549_v32 = vpop.permute.xlu0 %548 }
 0x84c   :  { %v1556_v33 = vadd.f32 %v549_v32, %v541_v31 }
 0x84e   :  { %1243 = vtanh.f32 %v1556_v33 }
 0x854   :  { %v1244_v34 = vpop.eup %1243 }
 0x855   :  { %554 = vrot.lane.b32.xlu2 %v1244_v34, %s1310_s11 }
 0x8a7   :  { %v518_v35 = vpop.permute.xlu1 %517 }
 0x8a8   :  { %v520_v36 = vmul.f32 %v518_v35, %v501_v17 }
 0x8aa   :  { %559 = vrot.lane.b32.xlu0 %v520_v36, %s1311_s12 }
 0x8af   :  { %v555_v37 = vpop.permute.xlu2 %554 }
 0x8b0   :  { %v557_v38 = vmul.f32 %v555_v37, %v538_v25 }
 0x8b2   :  { %565 = vrot.lane.b32.xlu1 %v557_v38, %s1311_s12 }
 0x91c   :  { %v560_v39 = vpop.permute.xlu0 %559 }
 0x91d   :  { %1146 = vst.msk [vmem:[%s1696_s4 + $0x6] sm:$0x3] %vm154_vm8, %v560_v39  ;;  %1149 = vmatmul.msk.f32.vlgmr.msra.gmra.mxu0 %vm28_vm9, %v560_v39 }
 0x924   :  { %v566_v40 = vpop.permute.xlu1 %565 }
 0x925   :  { %1147 = vst.msk [vmem:[%s1697_s5 + $0x8] sm:$0x3] %vm154_vm8, %v566_v40  ;;  %1151 = vmatmul.msk.f32.vlgmr.msra.gmra.mxu1 %vm28_vm9, %v566_v40 }
 0x99a   :  { %v591_v42 = vpop.f32.mrf.mxu0 }
 0x99b   :  { %v594_v43 = vadd.f32 %v1148_v41, %v591_v42 }
 0x99d   :  { %1245 = vtanh.f32 %v594_v43  ;;  %v1152_v51 = vmul.f32 -1.442695, %v594_v43 }
 0x9a2   :  { %v616_v46 = vpop.f32.mrf.mxu1 }
 0x9a3   :  { %v1246_v47 = vpop.eup %1245  ;;  %v619_v48 = vadd.f32 %v1150_v44, %v616_v46 }
 0x9a4   :  { %642 = vrot.lane.b32.xlu2 %v1246_v47, %s1310_s11 }
 0x9a5   :  { %1247 = vtanh.f32 %v619_v48  ;;  %v1153_v4 = vmul.f32 -1.442695, %v619_v48 }
 0x9a6   :  { %1249 = vpow2.f32 %v1152_v51 }
 0x9ab   :  { %v1248_v45 = vpop.eup %1247 }
 0x9ac   :  { %679 = vrot.lane.b32.xlu0 %v1248_v45, %s1310_s11  ;;  %v1250_v52 = vpop.eup %1249 }
 0x9ad   :  { %v623_v50 = vadd.f32 1.0, %v1250_v52 }
 0x9af   :  { %1251 = vrcp.f32 %v623_v50  ;;  %v635_v55 = vand.u32 2147483648, %v623_v50  ;;  %vm629_vm5 = vweird.f32 %v623_v50  ;;  %v633_v1 = vand.u32 2147483647, %v623_v50 }
 0x9b0   :  { %1253 = vpow2.f32 %v1153_v4 }
 0x9b1   :  { %v636_v7 = vor.u32 1.1754944e-38, %v635_v55  ;;  %vm634_vm7 = vcmp.eq.f32.partialorder %v633_v1, 8.507059e+37 }
 0x9b5   :  { %v1252_v49 = vpop.eup %1251 }
 0x9b6   :  { %v625_v0 = vmul.f32 %v1252_v49, %v623_v50  ;;  %vm630_vm4 = vweird.f32 %v1252_v49  ;;  %v1254_v3 = vpop.eup %1253 }
 0x9b7   :  { %vm631_vm6 = vmor %vm629_vm5, %vm630_vm4  ;;  %v660_v53 = vadd.f32 1.0, %v1254_v3 }
 0x9b8   :  { %v626_v2 = vsub.f32 1.0, %v625_v0 }
 0x9b9   :  { %1255 = vrcp.f32 %v660_v53  ;;  %v672_v8 = vand.u32 2147483648, %v660_v53  ;;  %vm666_vm11 = vweird.f32 %v660_v53  ;;  %v670_v9 = vand.u32 2147483647, %v660_v53 }
 0x9ba   :  { %v627_v6 = vmul.f32 %v1252_v49, %v626_v2 }
 0x9bb   :  { %v673_v11 = vor.u32 1.1754944e-38, %v672_v8  ;;  %vm671_vm13 = vcmp.eq.f32.partialorder %v670_v9, 8.507059e+37 }
 0x9bc   :  { %v628_v54 = vadd.f32 %v1252_v49, %v627_v6 }
 0x9be   :  { %v632_v5 = vsel %vm631_vm6, %v1252_v49, %v628_v54 }
 0x9bf   :  { %v637_v56 = vsel %vm634_vm7, %v636_v7, %v632_v5  ;;  %v1256_v59 = vpop.eup %1255 }
 0x9c0   :  { %v662_v60 = vmul.f32 %v1256_v59, %v660_v53  ;;  %vm667_vm10 = vweird.f32 %v1256_v59  ;;  %v640_v15 = vmul.f32 %v637_v56, %v1551_v29  ;;  %v1156_v29 = vld [vmem:[%s1694_s0 + $0xa] sm:$0x3] }
 0x9c1   :  { %vm668_vm12 = vmor %vm666_vm11, %vm667_vm10 }
 0x9c2   :  { %v663_v61 = vsub.f32 1.0, %v662_v60 }
 0x9c4   :  { %v664_v62 = vmul.f32 %v1256_v59, %v663_v61 }
 0x9c6   :  { %v665_v63 = vadd.f32 %v1256_v59, %v664_v62 }
 0x9c8   :  { %v669_v10 = vsel %vm668_vm12, %v1256_v59, %v665_v63 }
 0x9c9   :  { %v674_v13 = vsel %vm671_vm13, %v673_v11, %v669_v10 }
 0x9ca   :  { %v677_v18 = vmul.f32 %v674_v13, %v1556_v33  ;;  %v1158_v33 = vld [vmem:[%s1695_s1 + $0x4] sm:$0x3] }
 0x9fe   :  { %v643_v57 = vpop.permute.xlu2 %642 }
 0x9ff   :  { %v645_v58 = vmul.f32 %v643_v57, %v637_v56 }
 0xa01   :  { %647 = vrot.lane.b32.xlu1 %v645_v58, %s1311_s12 }
 0xa1e   :  { %v680_v12 = vpop.permute.xlu0 %679 }
 0xa1f   :  { %v682_v14 = vmul.f32 %v680_v12, %v674_v13 }
 0xa21   :  { %684 = vrot.lane.b32.xlu2 %v682_v14, %s1311_s12 }
 0xa73   :  { %v648_v16 = vpop.permute.xlu1 %647 }
 0xa74   :  { %v1583_v17 = vadd.f32 %v648_v16, %v640_v15 }
 0xa76   :  { %1257 = vtanh.f32 %v1583_v17 }
 0xa7b   :  { %v685_v19 = vpop.permute.xlu2 %684 }
 0xa7c   :  { %v1258_v20 = vpop.eup %1257  ;;  %v1587_v21 = vadd.f32 %v685_v19, %v677_v18 }
 0xa7d   :  { %653 = vrot.lane.b32.xlu0 %v1258_v20, %s1310_s11  ;;  %v1166_v20 = vld [vmem:[%s1695_s1 + $0x2] sm:$0x3] }
 0xa7e   :  { %1259 = vtanh.f32 %v1587_v21 }
 0xa84   :  { %v1260_v22 = vpop.eup %1259 }
 0xa85   :  { %690 = vrot.lane.b32.xlu1 %v1260_v22, %s1310_s11 }
 0xaef   :  { %v654_v23 = vpop.permute.xlu0 %653 }
 0xaf0   :  { %v656_v24 = vmul.f32 %v654_v23, %v637_v56 }
 0xaf2   :  { %695 = vrot.lane.b32.xlu2 %v656_v24, %s1311_s12 }
 0xaf7   :  { %v691_v25 = vpop.permute.xlu1 %690 }
 0xaf8   :  { %v693_v26 = vmul.f32 %v691_v25, %v674_v13 }
 0xafa   :  { %701 = vrot.lane.b32.xlu0 %v693_v26, %s1311_s12 }
 0xb4c   :  { %v696_v27 = vpop.permute.xlu2 %695 }
 0xb4d   :  { %1154 = vst.msk [vmem:[%s1696_s4 + $0x8] sm:$0x3] %vm154_vm8, %v696_v27  ;;  %1157 = vmatmul.msk.f32.vlgmr.msra.gmra.mxu2 %vm28_vm9, %v696_v27 }
 0xb6c   :  { %v702_v28 = vpop.permute.xlu0 %701 }
 0xb6d   :  { %1155 = vst.msk [vmem:[%s1697_s5 + $0x6] sm:$0x3] %vm154_vm8, %v702_v28  ;;  %1159 = vmatmul.msk.f32.vlgmr.msra.gmra.mxu3 %vm28_vm9, %v702_v28 }
 0xbd0   :  { %v727_v30 = vpop.f32.mrf.mxu2 }
 0xbd1   :  { %v730_v31 = vadd.f32 %v1156_v29, %v727_v30 }
 0xbd3   :  { %1261 = vtanh.f32 %v730_v31  ;;  %v1160_v37 = vmul.f32 -1.442695, %v730_v31 }
 0xbd9   :  { %v1262_v32 = vpop.eup %1261 }
 0xbda   :  { %778 = vrot.lane.b32.xlu1 %v1262_v32, %s1310_s11 }
 0xbf0   :  { %v752_v34 = vpop.f32.mrf.mxu3 }
 0xbf1   :  { %v755_v35 = vadd.f32 %v1158_v33, %v752_v34 }
 0xbf3   :  { %1263 = vtanh.f32 %v755_v35  ;;  %v1161_v38 = vmul.f32 -1.442695, %v755_v35 }
 0xbf4   :  { %1265 = vpow2.f32 %v1160_v37 }
 0xbf5   :  { %1267 = vpow2.f32 %v1161_v38 }
 0xbf9   :  { %v1264_v36 = vpop.eup %1263 }
 0xbfa   :  { %815 = vrot.lane.b32.xlu2 %v1264_v36, %s1310_s11  ;;  %v1266_v39 = vpop.eup %1265 }
 0xbfb   :  { %v759_v40 = vadd.f32 1.0, %v1266_v39  ;;  %v1268_v41 = vpop.eup %1267 }
 0xbfc   :  { %v796_v42 = vadd.f32 1.0, %v1268_v41 }
 0xbfd   :  { %1269 = vrcp.f32 %v759_v40  ;;  %v771_v50 = vand.u32 2147483648, %v759_v40  ;;  %vm765_vm15 = vweird.f32 %v759_v40  ;;  %v769_v49 = vand.u32 2147483647, %v759_v40 }
 0xbfe   :  { %1271 = vrcp.f32 %v796_v42  ;;  %v808_v3 = vand.u32 2147483648, %v796_v42  ;;  %vm802_vm3 = vweird.f32 %v796_v42  ;;  %v806_v5 = vand.u32 2147483647, %v796_v42 }
 0xbff   :  { %v772_v4 = vor.u32 1.1754944e-38, %v771_v50  ;;  %vm770_vm1 = vcmp.eq.f32.partialorder %v769_v49, 8.507059e+37 }
 0xc00   :  { %v809_v53 = vor.u32 1.1754944e-38, %v808_v3  ;;  %vm807_vm5 = vcmp.eq.f32.partialorder %v806_v5, 8.507059e+37 }
 0xc03   :  { %v1270_v43 = vpop.eup %1269 }
 0xc04   :  { %v761_v44 = vmul.f32 %v1270_v43, %v759_v40  ;;  %v1272_v47 = vpop.eup %1271  ;;  %vm766_vm14 = vweird.f32 %v1270_v43 }
 0xc05   :  { %v798_v45 = vmul.f32 %v1272_v47, %v796_v42  ;;  %vm767_vm0 = vmor %vm765_vm15, %vm766_vm14  ;;  %vm803_vm2 = vweird.f32 %v1272_v47 }
 0xc06   :  { %v762_v46 = vsub.f32 1.0, %v761_v44  ;;  %vm804_vm4 = vmor %vm802_vm3, %vm803_vm2 }
 0xc07   :  { %v799_v52 = vsub.f32 1.0, %v798_v45 }
 0xc08   :  { %v763_v48 = vmul.f32 %v1270_v43, %v762_v46 }
 0xc09   :  { %v800_v2 = vmul.f32 %v1272_v47, %v799_v52 }
 0xc0a   :  { %v764_v51 = vadd.f32 %v1270_v43, %v763_v48 }
 0xc0b   :  { %v801_v1 = vadd.f32 %v1272_v47, %v800_v2 }
 0xc0c   :  { %v768_v0 = vsel %vm767_vm0, %v1270_v43, %v764_v51 }
 0xc0d   :  { %v773_v54 = vsel %vm770_vm1, %v772_v4, %v768_v0  ;;  %v805_v7 = vsel %vm804_vm4, %v1272_v47, %v801_v1 }
 0xc0e   :  { %v810_v56 = vsel %vm807_vm5, %v809_v53, %v805_v7  ;;  %v776_v59 = vmul.f32 %v773_v54, %v1583_v17  ;;  %v1164_v17 = vld [vmem:[%s1694_s0 + $0xc] sm:$0x3] }
 0xc0f   :  { %v813_v62 = vmul.f32 %v810_v56, %v1587_v21 }
 0xc4c   :  { %v779_v6 = vpop.permute.xlu1 %778 }
 0xc4d   :  { %v781_v55 = vmul.f32 %v779_v6, %v773_v54 }
 0xc4f   :  { %783 = vrot.lane.b32.xlu0 %v781_v55, %s1311_s12 }
 0xc54   :  { %v816_v57 = vpop.permute.xlu2 %815 }
 0xc55   :  { %v818_v58 = vmul.f32 %v816_v57, %v810_v56 }
 0xc57   :  { %820 = vrot.lane.b32.xlu1 %v818_v58, %s1311_s12 }
 0xcc1   :  { %v784_v60 = vpop.permute.xlu0 %783 }
 0xcc2   :  { %v1615_v61 = vadd.f32 %v784_v60, %v776_v59 }
 0xcc4   :  { %1273 = vtanh.f32 %v1615_v61 }
 0xcc9   :  { %v821_v63 = vpop.permute.xlu1 %820 }
 0xcca   :  { %v1274_v8 = vpop.eup %1273  ;;  %v1619_v9 = vadd.f32 %v821_v63, %v813_v62 }
 0xccb   :  { %789 = vrot.lane.b32.xlu2 %v1274_v8, %s1310_s11  ;;  %v1003_v8 = vld [vmem:[%s1695_s1] sm:$0x3] }
 0xccc   :  { %1275 = vtanh.f32 %v1619_v9 }
 0xcd2   :  { %v1276_v10 = vpop.eup %1275 }
 0xcd3   :  { %826 = vrot.lane.b32.xlu0 %v1276_v10, %s1310_s11 }
 0xd25   :  { %v790_v11 = vpop.permute.xlu2 %789 }
 0xd26   :  { %v792_v12 = vmul.f32 %v790_v11, %v773_v54 }
 0xd28   :  { %831 = vrot.lane.b32.xlu1 %v792_v12, %s1311_s12 }
 0xd45   :  { %v827_v13 = vpop.permute.xlu0 %826 }
 0xd46   :  { %v829_v14 = vmul.f32 %v827_v13, %v810_v56 }
 0xd48   :  { %837 = vrot.lane.b32.xlu2 %v829_v14, %s1311_s12 }
 0xd9a   :  { %v832_v15 = vpop.permute.xlu1 %831 }
 0xd9b   :  { %1162 = vst.msk [vmem:[%s1696_s4 + $0xa] sm:$0x3] %vm154_vm8, %v832_v15  ;;  %1165 = vmatmul.msk.f32.vlgmr.msrb.gmra.mxu0 %vm28_vm9, %v832_v15 }
 0xda2   :  { %v838_v16 = vpop.permute.xlu2 %837 }
 0xda3   :  { %1163 = vst.msk [vmem:[%s1697_s5 + $0x4] sm:$0x3] %vm154_vm8, %v838_v16  ;;  %1167 = vmatmul.msk.f32.vlgmr.msrb.gmra.mxu1 %vm28_vm9, %v838_v16 }
 0xe18   :  { %v863_v18 = vpop.f32.mrf.mxu0 }
 0xe19   :  { %v866_v19 = vadd.f32 %v1164_v17, %v863_v18 }
 0xe1b   :  { %1277 = vtanh.f32 %v866_v19  ;;  %v1168_v25 = vmul.f32 -1.442695, %v866_v19 }
 0xe20   :  { %v888_v21 = vpop.f32.mrf.mxu1 }
 0xe21   :  { %v1278_v22 = vpop.eup %1277  ;;  %v891_v23 = vadd.f32 %v1166_v20, %v888_v21 }
 0xe22   :  { %914 = vrot.lane.b32.xlu0 %v1278_v22, %s1310_s11 }
 0xe23   :  { %1279 = vtanh.f32 %v891_v23  ;;  %v1169_v26 = vmul.f32 -1.442695, %v891_v23 }
 0xe24   :  { %1281 = vpow2.f32 %v1168_v25 }
 0xe25   :  { %1283 = vpow2.f32 %v1169_v26 }
 0xe29   :  { %v1280_v24 = vpop.eup %1279 }
 0xe2a   :  { %951 = vrot.lane.b32.xlu1 %v1280_v24, %s1310_s11  ;;  %v1282_v27 = vpop.eup %1281 }
 0xe2b   :  { %v895_v28 = vadd.f32 1.0, %v1282_v27  ;;  %v1284_v29 = vpop.eup %1283 }
 0xe2c   :  { %v932_v30 = vadd.f32 1.0, %v1284_v29 }
 0xe2d   :  { %1285 = vrcp.f32 %v895_v28  ;;  %v907_v39 = vand.u32 2147483648, %v895_v28  ;;  %vm901_vm7 = vweird.f32 %v895_v28  ;;  %v905_v40 = vand.u32 2147483647, %v895_v28 }
 0xe2e   :  { %1287 = vrcp.f32 %v932_v30  ;;  %v944_v45 = vand.u32 2147483648, %v932_v30  ;;  %vm938_vm13 = vweird.f32 %v932_v30  ;;  %v942_v51 = vand.u32 2147483647, %v932_v30 }
 0xe2f   :  { %v908_v43 = vor.u32 1.1754944e-38, %v907_v39  ;;  %vm906_vm11 = vcmp.eq.f32.partialorder %v905_v40, 8.507059e+37 }
 0xe30   :  { %v945_v50 = vor.u32 1.1754944e-38, %v944_v45  ;;  %vm943_vm15 = vcmp.eq.f32.partialorder %v942_v51, 8.507059e+37 }
 0xe33   :  { %v1286_v31 = vpop.eup %1285 }
 0xe34   :  { %v897_v32 = vmul.f32 %v1286_v31, %v895_v28  ;;  %v1288_v34 = vpop.eup %1287  ;;  %vm902_vm6 = vweird.f32 %v1286_v31 }
 0xe35   :  { %v934_v36 = vmul.f32 %v1288_v34, %v932_v30  ;;  %vm903_vm10 = vmor %vm901_vm7, %vm902_vm6  ;;  %vm939_vm12 = vweird.f32 %v1288_v34 }
 0xe36   :  { %v898_v33 = vsub.f32 1.0, %v897_v32  ;;  %vm940_vm14 = vmor %vm938_vm13, %vm939_vm12 }
 0xe37   :  { %v935_v38 = vsub.f32 1.0, %v934_v36 }
 0xe38   :  { %v899_v35 = vmul.f32 %v1286_v31, %v898_v33 }
 0xe39   :  { %v936_v42 = vmul.f32 %v1288_v34, %v935_v38 }
 0xe3a   :  { %v900_v37 = vadd.f32 %v1286_v31, %v899_v35 }
 0xe3b   :  { %v937_v48 = vadd.f32 %v1288_v34, %v936_v42 }
 0xe3c   :  { %v904_v41 = vsel %vm903_vm10, %v1286_v31, %v900_v37 }
 0xe3d   :  { %v909_v46 = vsel %vm906_vm11, %v908_v43, %v904_v41  ;;  %v941_v52 = vsel %vm940_vm14, %v1288_v34, %v937_v48 }
 0xe3e   :  { %v946_v0 = vsel %vm943_vm15, %v945_v50, %v941_v52  ;;  %v912_v4 = vmul.f32 %v909_v46, %v1615_v61  ;;  %v1172_v61 = vld [vmem:[%s1694_s0 + $0xe] sm:$0x3] }
 0xe3f   :  { %v949_v1 = vmul.f32 %v946_v0, %v1619_v9 }
 0xe94   :  { %v915_v44 = vpop.permute.xlu0 %914 }
 0xe95   :  { %v917_v47 = vmul.f32 %v915_v44, %v909_v46 }
 0xe97   :  { %919 = vrot.lane.b32.xlu2 %v917_v47, %s1311_s12 }
 0xe9c   :  { %v952_v49 = vpop.permute.xlu1 %951 }
 0xe9d   :  { %v954_v2 = vmul.f32 %v952_v49, %v946_v0 }
 0xe9f   :  { %956 = vrot.lane.b32.xlu0 %v954_v2, %s1311_s12 }
 0xef1   :  { %v920_v6 = vpop.permute.xlu2 %919 }
 0xef2   :  { %v1647_v54 = vadd.f32 %v920_v6, %v912_v4 }
 0xef4   :  { %1289 = vtanh.f32 %v1647_v54 }
 0xefa   :  { %v1290_v55 = vpop.eup %1289 }
 0xefb   :  { %925 = vrot.lane.b32.xlu1 %v1290_v55, %s1310_s11 }
 0xf11   :  { %v957_v3 = vpop.permute.xlu0 %956 }
 0xf12   :  { %v1652_v5 = vadd.f32 %v957_v3, %v949_v1 }
 0xf14   :  { %1291 = vtanh.f32 %v1652_v5 }
 0xf1a   :  { %v1292_v7 = vpop.eup %1291 }
 0xf1b   :  { %962 = vrot.lane.b32.xlu2 %v1292_v7, %s1310_s11 }
 0xf6d   :  { %v926_v53 = vpop.permute.xlu1 %925 }
 0xf6e   :  { %v928_v56 = vmul.f32 %v926_v53, %v909_v46 }
 0xf70   :  { %967 = vrot.lane.b32.xlu0 %v928_v56, %s1311_s12 }
 0xf75   :  { %v963_v57 = vpop.permute.xlu2 %962 }
 0xf76   :  { %v965_v58 = vmul.f32 %v963_v57, %v946_v0 }
 0xf78   :  { %973 = vrot.lane.b32.xlu1 %v965_v58, %s1311_s12 }
 0xfe2   :  { %v968_v59 = vpop.permute.xlu0 %967 }
 0xfe3   :  { %1170 = vst.msk [vmem:[%s1696_s4 + $0xc] sm:$0x3] %vm154_vm8, %v968_v59  ;;  %1173 = vmatmul.msk.f32.vlgmr.msrb.gmra.mxu2 %vm28_vm9, %v968_v59 }
 0xfea   :  { %v974_v60 = vpop.permute.xlu1 %973 }
 0xfeb   :  { %1171 = vst.msk [vmem:[%s1697_s5 + $0x2] sm:$0x3] %vm154_vm8, %v974_v60  ;;  %1174 = vmatmul.msk.f32.vlgmr.msrb.gmra.mxu3 %vm28_vm9, %v974_v60 }
0x1066   :  { %v999_v62 = vpop.f32.mrf.mxu2 }
0x1067   :  { %v1002_v63 = vadd.f32 %v1172_v61, %v999_v62 }
0x1069   :  { %1293 = vtanh.f32 %v1002_v63  ;;  %v1175_v13 = vmul.f32 -1.442695, %v1002_v63 }
0x106e   :  { %v1023_v9 = vpop.f32.mrf.mxu3 }
0x106f   :  { %v1294_v10 = vpop.eup %1293  ;;  %v1026_v11 = vadd.f32 %v1023_v9, %v1003_v8 }
0x1070   :  { %1049 = vrot.lane.b32.xlu2 %v1294_v10, %s1310_s11 }
0x1071   :  { %1295 = vtanh.f32 %v1026_v11  ;;  %v1176_v19 = vmul.f32 -1.442695, %v1026_v11 }
0x1072   :  { %1297 = vpow2.f32 %v1175_v13 }
0x1077   :  { %v1296_v12 = vpop.eup %1295 }
0x1078   :  { %1086 = vrot.lane.b32.xlu0 %v1296_v12, %s1310_s11  ;;  %v1298_v14 = vpop.eup %1297 }
0x1079   :  { %v1030_v15 = vadd.f32 1.0, %v1298_v14 }
0x107b   :  { %1299 = vrcp.f32 %v1030_v15  ;;  %v1042_v22 = vand.u32 2147483648, %v1030_v15  ;;  %vm1036_vm0 = vweird.f32 %v1030_v15  ;;  %v1040_v23 = vand.u32 2147483647, %v1030_v15 }
0x107c   :  { %1301 = vpow2.f32 %v1176_v19 }
0x107d   :  { %v1043_v26 = vor.u32 1.1754944e-38, %v1042_v22  ;;  %vm1041_vm2 = vcmp.eq.f32.partialorder %v1040_v23, 8.507059e+37 }
0x1081   :  { %v1300_v16 = vpop.eup %1299 }
0x1082   :  { %v1032_v17 = vmul.f32 %v1300_v16, %v1030_v15  ;;  %vm1037_vm9 = vweird.f32 %v1300_v16  ;;  %v1302_v24 = vpop.eup %1301 }
0x1083   :  { %vm1038_vm1 = vmor %vm1036_vm0, %vm1037_vm9  ;;  %v1067_v27 = vadd.f32 1.0, %v1302_v24 }
0x1084   :  { %v1033_v18 = vsub.f32 1.0, %v1032_v17 }
0x1085   :  { %1303 = vrcp.f32 %v1067_v27  ;;  %v1079_v36 = vand.u32 2147483648, %v1067_v27  ;;  %vm1073_vm4 = vweird.f32 %v1067_v27  ;;  %v1077_v37 = vand.u32 2147483647, %v1067_v27 }
0x1086   :  { %v1034_v20 = vmul.f32 %v1300_v16, %v1033_v18 }
0x1087   :  { %v1080_v39 = vor.u32 1.1754944e-38, %v1079_v36  ;;  %vm1078_vm6 = vcmp.eq.f32.partialorder %v1077_v37, 8.507059e+37 }
0x1088   :  { %v1035_v21 = vadd.f32 %v1300_v16, %v1034_v20 }
0x108a   :  { %v1039_v25 = vsel %vm1038_vm1, %v1300_v16, %v1035_v21 }
0x108b   :  { %v1044_v28 = vsel %vm1041_vm2, %v1043_v26, %v1039_v25  ;;  %v1304_v31 = vpop.eup %1303 }
0x108c   :  { %v1069_v32 = vmul.f32 %v1304_v31, %v1067_v27  ;;  %vm1074_vm3 = vweird.f32 %v1304_v31  ;;  %v1047_v43 = vmul.f32 %v1044_v28, %v1647_v54 }
0x108d   :  { %vm1075_vm5 = vmor %vm1073_vm4, %vm1074_vm3 }
0x108e   :  { %v1070_v33 = vsub.f32 1.0, %v1069_v32 }
0x1090   :  { %v1071_v34 = vmul.f32 %v1304_v31, %v1070_v33 }
0x1092   :  { %v1072_v35 = vadd.f32 %v1304_v31, %v1071_v34 }
0x1094   :  { %v1076_v38 = vsel %vm1075_vm5, %v1304_v31, %v1072_v35 }
0x1095   :  { %v1081_v41 = vsel %vm1078_vm6, %v1080_v39, %v1076_v38 }
0x1096   :  { %v1084_v47 = vmul.f32 %v1081_v41, %v1652_v5 }
0x10ca   :  { %v1050_v29 = vpop.permute.xlu2 %1049 }
0x10cb   :  { %v1052_v30 = vmul.f32 %v1050_v29, %v1044_v28 }
0x10cd   :  { %1054 = vrot.lane.b32.xlu1 %v1052_v30, %s1311_s12 }
0x10ea   :  { %v1087_v40 = vpop.permute.xlu0 %1086 }
0x10eb   :  { %v1089_v42 = vmul.f32 %v1087_v40, %v1081_v41 }
0x10ed   :  { %1091 = vrot.lane.b32.xlu2 %v1089_v42, %s1311_s12 }
0x113f   :  { %v1055_v44 = vpop.permute.xlu1 %1054 }
0x1140   :  { %v1057_v46 = vadd.f32 %v1055_v44, %v1047_v43 }
0x1142   :  { %1305 = vtanh.f32 %v1057_v46 }
0x1147   :  { %v1092_v48 = vpop.permute.xlu2 %1091 }
0x1148   :  { %v1306_v45 = vpop.eup %1305  ;;  %v1094_v51 = vadd.f32 %v1092_v48, %v1084_v47 }
0x1149   :  { %1060 = vrot.lane.b32.xlu0 %v1306_v45, %s1310_s11 }
0x114a   :  { %1307 = vtanh.f32 %v1094_v51 }
0x1150   :  { %v1308_v52 = vpop.eup %1307 }
0x1151   :  { %1097 = vrot.lane.b32.xlu1 %v1308_v52, %s1310_s11 }
0x11bb   :  { %v1061_v50 = vpop.permute.xlu0 %1060 }
0x11bc   :  { %v1063_v49 = vmul.f32 %v1061_v50, %v1044_v28 }
0x11be   :  { %1102 = vrot.lane.b32.xlu2 %v1063_v49, %s1311_s12 }
0x11c3   :  { %v1098_v0 = vpop.permute.xlu1 %1097 }
0x11c4   :  { %v1100_v2 = vmul.f32 %v1098_v0, %v1081_v41 }
0x11c6   :  { %1108 = vrot.lane.b32.xlu0 %v1100_v2, %s1311_s12 }
0x1218   :  { %v1103_v4 = vpop.permute.xlu2 %1102 }
0x1219   :  { %1177 = vst.msk [vmem:[%s1696_s4 + $0xe] sm:$0x3] %vm154_vm8, %v1103_v4 }
0x1238   :  { %v1109_v6 = vpop.permute.xlu0 %1108 }
0x1239   :  { %1111 = vst.msk [vmem:[%s1697_s5] sm:$0x3] %vm154_vm8, %v1109_v6 }

// kernel: model_forward.3
= control target key start
LH: loop header
LB: loop body
LE: loop exit
PB: predicated region body
PF: predicated region fallthrough
CT: control target
= control target key end

     0   :  { %s1801_s0 = inlined_call_operand.vmem [shape: f32[8,2,128], index: 0, kind: input, shape index: {}]   ;;  %s1802_s1 = inlined_call_operand.vmem [shape: f32[8,2,128], index: 1, kind: input, shape index: {}]   ;;  %s1803_s2 = inlined_call_operand.vmem [shape: f32[32,128], index: 2, kind: input, shape index: {}]   ;;  %s1804_s3 = inlined_call_operand.vmem [shape: f32[32,128], index: 3, kind: input, shape index: {}]   ;;  %s1805_s4 = inlined_call_operand.vmem [shape: f32[64,4], index: 4, kind: input, shape index: {}]   ;;  %s1806_s5 = inlined_call_operand.vmem [shape: f32[1,4], index: 5, kind: input, shape index: {}]   ;;  %s1807_s6 = inlined_call_operand.hbm [shape: f32[2,4], index: 6, kind: output, shape index: {}]  }
   0x1   :  { %v1421_v0 = vld [vmem:[%s1803_s2 + $0x18] sm:$0xff]  ;;  %v1426_v1 = vld [vmem:[%s1803_s2 + $0x10] sm:$0xff]  ;;  %v1443_v4 = vld [vmem:[%s1803_s2 + $0x8] sm:$0xff] }
   0x2   :  { %49 = vmatpush.msra.mxu0 %v1421_v0  ;;  %v1432_v2 = vld [vmem:[%s1804_s3 + $0x18] sm:$0xff]  ;;  %v1437_v3 = vld [vmem:[%s1804_s3 + $0x10] sm:$0xff]  ;;  %174 = vmatpush.msra.mxu2 %v1421_v0  ;;  %v1451_v5 = vld [vmem:[%s1804_s3 + $0x8] sm:$0xff] }
   0x3   :  { %72 = vmatpush.msra.mxu1 %v1432_v2  ;;  %202 = vmatpush.msra.mxu3 %v1432_v2 }
   0x4   :  { %50 = vmatpush.msra.mxu0 %v1426_v1  ;;  %175 = vmatpush.msra.mxu2 %v1426_v1 }
   0x5   :  { %11 = vsyncpa [#allocation3], 0  ;;  %v1457_v6 = vld [vmem:[%s1803_s2] sm:$0xff]  ;;  %73 = vmatpush.msra.mxu1 %v1437_v3  ;;  %203 = vmatpush.msra.mxu3 %v1437_v3  ;;  %v1379_v8 = vmov 0.0   ;;  %v1170_v12 = vld [vmem:[%s1802_s1 + $0xe] sm:$0x3] }
   0x6   :  { %51 = vmatpush.msra.mxu0 %v1443_v4  ;;  %v1465_v7 = vld [vmem:[%s1804_s3] sm:$0xff]  ;;  %176 = vmatpush.msra.mxu2 %v1443_v4  ;;  %s1380_s15 = smov 64   ;;  %s1381_s16 = smov 32   ;;  %vm33_vm8 = vcmask 261120  }
   0x7   :  { %74 = vmatpush.msra.mxu1 %v1451_v5  ;;  %204 = vmatpush.msra.mxu3 %v1451_v5  ;;  %v32_v9 = vld [vmem:[%s1801_s0] sm:$0x3]  ;;  %v1173_v61 = vld [vmem:[%s1801_s0 + $0x2] sm:$0x3]  ;;  %s1161_s2 = sshll.u32 %s1807_s6, 4  ;;  %s1162_s2 = int_to_ptr.hbm [resolvable:$true] %s1161_s2 }
   0x8   :  { %52 = vmatpush.msra.mxu0 %v1457_v6  ;;  %177 = vmatpush.msra.mxu2 %v1457_v6 }
   0x9   :  { %53 = vmatmul.f32.vlgmr.msra.gmra.mxu0 %v1379_v8  ;;  %75 = vmatpush.msra.mxu1 %v1465_v7 }
   0xa   :  { %76 = vmatmul.f32.vlgmr.msra.gmra.mxu1 %v1379_v8  ;;  %205 = vmatpush.msra.mxu3 %v1465_v7  ;;  %v1175_v8 = vld [vmem:[%s1802_s1 + $0xc] sm:$0x3] }
   0xb   :  { %306 = vmatpush.msrb.mxu0 %v1421_v0  ;;  %334 = vmatpush.msrb.mxu1 %v1432_v2 }
   0xc   :  { %438 = vmatpush.msrb.mxu2 %v1421_v0  ;;  %466 = vmatpush.msrb.mxu3 %v1432_v2 }
   0xd   :  { %307 = vmatpush.msrb.mxu0 %v1426_v1  ;;  %335 = vmatpush.msrb.mxu1 %v1437_v3 }
   0xe   :  { %439 = vmatpush.msrb.mxu2 %v1426_v1  ;;  %467 = vmatpush.msrb.mxu3 %v1437_v3 }
   0xf   :  { %308 = vmatpush.msrb.mxu0 %v1443_v4  ;;  %336 = vmatpush.msrb.mxu1 %v1451_v5 }
  0x10   :  { %440 = vmatpush.msrb.mxu2 %v1443_v4  ;;  %468 = vmatpush.msrb.mxu3 %v1451_v5 }
  0x11   :  { %309 = vmatpush.msrb.mxu0 %v1457_v6  ;;  %337 = vmatpush.msrb.mxu1 %v1465_v7 }
  0x12   :  { %441 = vmatpush.msrb.mxu2 %v1457_v6  ;;  %469 = vmatpush.msrb.mxu3 %v1465_v7 }
  0x13   :  { %570 = vmatpush.msra.mxu0 %v1421_v0  ;;  %598 = vmatpush.msra.mxu1 %v1432_v2 }
  0x15   :  { %571 = vmatpush.msra.mxu0 %v1426_v1  ;;  %599 = vmatpush.msra.mxu1 %v1437_v3 }
  0x17   :  { %572 = vmatpush.msra.mxu0 %v1443_v4  ;;  %600 = vmatpush.msra.mxu1 %v1451_v5 }
  0x19   :  { %573 = vmatpush.msra.mxu0 %v1457_v6  ;;  %601 = vmatpush.msra.mxu1 %v1465_v7 }
  0x86   :  { %v54_v10 = vpop.f32.mrf.mxu0 }
  0x87   :  { %v57_v11 = vadd.f32 %v54_v10, %v32_v9  ;;  %v77_v13 = vpop.f32.mrf.mxu1 }
  0x88   :  { %v80_v14 = vadd.f32 %v1170_v12, %v77_v13 }
  0x89   :  { %1221 = vtanh.f32 %v57_v11  ;;  %v1171_v17 = vmul.f32 -1.442695, %v57_v11 }
  0x8a   :  { %1223 = vtanh.f32 %v80_v14  ;;  %v1172_v18 = vmul.f32 -1.442695, %v80_v14 }
  0x8b   :  { %1225 = vpow2.f32 %v1171_v17 }
  0x8c   :  { %1227 = vpow2.f32 %v1172_v18 }
  0x8f   :  { %v1222_v15 = vpop.eup %1221 }
  0x90   :  { %103 = vrot.lane.b32.xlu0 %v1222_v15, %s1380_s15  ;;  %v1224_v16 = vpop.eup %1223 }
  0x91   :  { %v1226_v19 = vpop.eup %1225 }
  0x92   :  { %v84_v20 = vadd.f32 1.0, %v1226_v19  ;;  %v1228_v21 = vpop.eup %1227 }
  0x93   :  { %v121_v22 = vadd.f32 1.0, %v1228_v21 }
  0x94   :  { %1229 = vrcp.f32 %v84_v20  ;;  %v96_v31 = vand.u32 2147483648, %v84_v20  ;;  %vm90_vm1 = vweird.f32 %v84_v20  ;;  %v94_v32 = vand.u32 2147483647, %v84_v20 }
  0x95   :  { %1231 = vrcp.f32 %v121_v22  ;;  %vm127_vm4 = vweird.f32 %v121_v22  ;;  %v133_v38 = vand.u32 2147483648, %v121_v22  ;;  %v131_v41 = vand.u32 2147483647, %v121_v22 }
  0x96   :  { %v97_v35 = vor.u32 1.1754944e-38, %v96_v31  ;;  %vm95_vm3 = vcmp.eq.f32.partialorder %v94_v32, 8.507059e+37 }
  0x97   :  { %v134_v42 = vor.u32 1.1754944e-38, %v133_v38  ;;  %vm132_vm7 = vcmp.eq.f32.partialorder %v131_v41, 8.507059e+37 }
  0x98   :  { %140 = vrot.lane.b32.xlu0 %v1224_v16, %s1380_s15 }
  0x9a   :  { %v1230_v23 = vpop.eup %1229 }
  0x9b   :  { %v86_v24 = vmul.f32 %v1230_v23, %v84_v20  ;;  %v1232_v26 = vpop.eup %1231  ;;  %vm91_vm0 = vweird.f32 %v1230_v23 }
  0x9c   :  { %v123_v28 = vmul.f32 %v1232_v26, %v121_v22  ;;  %vm92_vm2 = vmor %vm90_vm1, %vm91_vm0  ;;  %vm128_vm5 = vweird.f32 %v1232_v26 }
  0x9d   :  { %v87_v25 = vsub.f32 1.0, %v86_v24  ;;  %vm129_vm6 = vmor %vm127_vm4, %vm128_vm5 }
  0x9e   :  { %v124_v30 = vsub.f32 1.0, %v123_v28 }
  0x9f   :  { %v88_v27 = vmul.f32 %v1230_v23, %v87_v25 }
  0xa0   :  { %v125_v34 = vmul.f32 %v1232_v26, %v124_v30 }
  0xa1   :  { %v89_v29 = vadd.f32 %v1230_v23, %v88_v27 }
  0xa2   :  { %v126_v40 = vadd.f32 %v1232_v26, %v125_v34 }
  0xa3   :  { %v93_v33 = vsel %vm92_vm2, %v1230_v23, %v89_v29 }
  0xa4   :  { %v98_v37 = vsel %vm95_vm3, %v97_v35, %v93_v33  ;;  %v130_v43 = vsel %vm129_vm6, %v1232_v26, %v126_v40 }
  0xa5   :  { %v135_v44 = vsel %vm132_vm7, %v134_v42, %v130_v43  ;;  %v101_v47 = vmul.f32 0.0, %v98_v37 }
  0xa6   :  { %v138_v50 = vmul.f32 0.0, %v135_v44 }
 0x102   :  { %v104_v36 = vpop.permute.xlu0 %103 }
 0x103   :  { %v106_v39 = vmul.f32 %v104_v36, %v98_v37 }
 0x105   :  { %108 = vrot.lane.b32.xlu1 %v106_v39, %s1381_s16 }
 0x10a   :  { %v141_v45 = vpop.permute.xlu0 %140 }
 0x10b   :  { %v143_v46 = vmul.f32 %v141_v45, %v135_v44 }
 0x10d   :  { %145 = vrot.lane.b32.xlu1 %v143_v46, %s1381_s16 }
 0x177   :  { %v109_v48 = vpop.permute.xlu1 %108 }
 0x178   :  { %v1508_v49 = vadd.f32 %v109_v48, %v101_v47 }
 0x17a   :  { %1233 = vtanh.f32 %v1508_v49 }
 0x17f   :  { %v146_v51 = vpop.permute.xlu1 %145 }
 0x180   :  { %v1234_v52 = vpop.eup %1233  ;;  %v1511_v53 = vadd.f32 %v146_v51, %v138_v50 }
 0x181   :  { %114 = vrot.lane.b32.xlu2 %v1234_v52, %s1380_s15 }
 0x182   :  { %1235 = vtanh.f32 %v1511_v53 }
 0x188   :  { %v1236_v54 = vpop.eup %1235 }
 0x189   :  { %151 = vrot.lane.b32.xlu2 %v1236_v54, %s1380_s15 }
 0x1db   :  { %v115_v55 = vpop.permute.xlu2 %114 }
 0x1dc   :  { %v1516_v56 = vmul.f32 %v115_v55, %v98_v37 }
 0x1de   :  { %158 = vrot.lane.b32.xlu0 %v1516_v56, %s1381_s16 }
 0x1e3   :  { %v152_v57 = vpop.permute.xlu2 %151 }
 0x1e4   :  { %v1520_v58 = vmul.f32 %v152_v57, %v135_v44 }
 0x1e6   :  { %186 = vrot.lane.b32.xlu1 %v1520_v58, %s1381_s16 }
 0x250   :  { %v159_v59 = vpop.permute.xlu0 %158 }
 0x251   :  { %1174 = vmatmul.msk.f32.vlgmr.msra.gmra.mxu2 %vm33_vm8, %v159_v59  ;;  %v1179_v59 = vld [vmem:[%s1801_s0 + $0x4] sm:$0x3] }
 0x252   :  { %702 = vmatpush.msra.mxu2 %v1421_v0 }
 0x254   :  { %703 = vmatpush.msra.mxu2 %v1426_v1 }
 0x256   :  { %704 = vmatpush.msra.mxu2 %v1443_v4 }
 0x258   :  { %v187_v60 = vpop.permute.xlu1 %186  ;;  %705 = vmatpush.msra.mxu2 %v1457_v6 }
 0x259   :  { %1176 = vmatmul.msk.f32.vlgmr.msra.gmra.mxu3 %vm33_vm8, %v187_v60 }
 0x25a   :  { %730 = vmatpush.msra.mxu3 %v1432_v2 }
 0x25c   :  { %731 = vmatpush.msra.mxu3 %v1437_v3 }
 0x25e   :  { %732 = vmatpush.msra.mxu3 %v1451_v5 }
 0x260   :  { %733 = vmatpush.msra.mxu3 %v1465_v7 }
 0x2d4   :  { %v179_v62 = vpop.f32.mrf.mxu2 }
 0x2d5   :  { %v182_v63 = vadd.f32 %v1173_v61, %v179_v62 }
 0x2d7   :  { %1237 = vtanh.f32 %v182_v63  ;;  %v1177_v13 = vmul.f32 -1.442695, %v182_v63  ;;  %v1181_v63 = vld [vmem:[%s1802_s1 + $0xa] sm:$0x3] }
 0x2dc   :  { %v207_v9 = vpop.f32.mrf.mxu3 }
 0x2dd   :  { %v1238_v10 = vpop.eup %1237  ;;  %v210_v11 = vadd.f32 %v1175_v8, %v207_v9 }
 0x2de   :  { %233 = vrot.lane.b32.xlu2 %v1238_v10, %s1380_s15 }
 0x2df   :  { %1239 = vtanh.f32 %v210_v11  ;;  %v1178_v19 = vmul.f32 -1.442695, %v210_v11 }
 0x2e0   :  { %1241 = vpow2.f32 %v1177_v13 }
 0x2e5   :  { %v1240_v12 = vpop.eup %1239 }
 0x2e6   :  { %270 = vrot.lane.b32.xlu0 %v1240_v12, %s1380_s15  ;;  %v1242_v14 = vpop.eup %1241 }
 0x2e7   :  { %v214_v15 = vadd.f32 1.0, %v1242_v14 }
 0x2e9   :  { %1243 = vrcp.f32 %v214_v15  ;;  %v226_v22 = vand.u32 2147483648, %v214_v15  ;;  %vm220_vm10 = vweird.f32 %v214_v15  ;;  %v224_v23 = vand.u32 2147483647, %v214_v15 }
 0x2ea   :  { %1245 = vpow2.f32 %v1178_v19 }
 0x2eb   :  { %v227_v26 = vor.u32 1.1754944e-38, %v226_v22  ;;  %vm225_vm12 = vcmp.eq.f32.partialorder %v224_v23, 8.507059e+37 }
 0x2ef   :  { %v1244_v16 = vpop.eup %1243 }
 0x2f0   :  { %v216_v17 = vmul.f32 %v1244_v16, %v214_v15  ;;  %vm221_vm9 = vweird.f32 %v1244_v16  ;;  %v1246_v24 = vpop.eup %1245 }
 0x2f1   :  { %vm222_vm11 = vmor %vm220_vm10, %vm221_vm9  ;;  %v251_v27 = vadd.f32 1.0, %v1246_v24 }
 0x2f2   :  { %v217_v18 = vsub.f32 1.0, %v216_v17 }
 0x2f3   :  { %1247 = vrcp.f32 %v251_v27  ;;  %v263_v36 = vand.u32 2147483648, %v251_v27  ;;  %vm257_vm14 = vweird.f32 %v251_v27  ;;  %v261_v37 = vand.u32 2147483647, %v251_v27 }
 0x2f4   :  { %v218_v20 = vmul.f32 %v1244_v16, %v217_v18 }
 0x2f5   :  { %v264_v39 = vor.u32 1.1754944e-38, %v263_v36  ;;  %vm262_vm0 = vcmp.eq.f32.partialorder %v261_v37, 8.507059e+37 }
 0x2f6   :  { %v219_v21 = vadd.f32 %v1244_v16, %v218_v20 }
 0x2f8   :  { %v223_v25 = vsel %vm222_vm11, %v1244_v16, %v219_v21 }
 0x2f9   :  { %v228_v28 = vsel %vm225_vm12, %v227_v26, %v223_v25  ;;  %v1248_v31 = vpop.eup %1247 }
 0x2fa   :  { %v253_v32 = vmul.f32 %v1248_v31, %v251_v27  ;;  %vm258_vm13 = vweird.f32 %v1248_v31  ;;  %v231_v43 = vmul.f32 %v228_v28, %v1508_v49 }
 0x2fb   :  { %vm259_vm15 = vmor %vm257_vm14, %vm258_vm13 }
 0x2fc   :  { %v254_v33 = vsub.f32 1.0, %v253_v32 }
 0x2fe   :  { %v255_v34 = vmul.f32 %v1248_v31, %v254_v33 }
 0x300   :  { %v256_v35 = vadd.f32 %v1248_v31, %v255_v34 }
 0x302   :  { %v260_v38 = vsel %vm259_vm15, %v1248_v31, %v256_v35 }
 0x303   :  { %v265_v41 = vsel %vm262_vm0, %v264_v39, %v260_v38 }
 0x304   :  { %v268_v46 = vmul.f32 %v265_v41, %v1511_v53 }
 0x338   :  { %v234_v29 = vpop.permute.xlu2 %233 }
 0x339   :  { %v236_v30 = vmul.f32 %v234_v29, %v228_v28 }
 0x33b   :  { %238 = vrot.lane.b32.xlu1 %v236_v30, %s1381_s16 }
 0x358   :  { %v271_v40 = vpop.permute.xlu0 %270 }
 0x359   :  { %v273_v42 = vmul.f32 %v271_v40, %v265_v41 }
 0x35b   :  { %275 = vrot.lane.b32.xlu2 %v273_v42, %s1381_s16 }
 0x3ad   :  { %v239_v44 = vpop.permute.xlu1 %238 }
 0x3ae   :  { %v1545_v45 = vadd.f32 %v239_v44, %v231_v43 }
 0x3b0   :  { %1249 = vtanh.f32 %v1545_v45 }
 0x3b5   :  { %v276_v47 = vpop.permute.xlu2 %275 }
 0x3b6   :  { %v1250_v48 = vpop.eup %1249  ;;  %v1549_v50 = vadd.f32 %v276_v47, %v268_v46 }
 0x3b7   :  { %244 = vrot.lane.b32.xlu0 %v1250_v48, %s1380_s15 }
 0x3b8   :  { %1251 = vtanh.f32 %v1549_v50 }
 0x3be   :  { %v1252_v51 = vpop.eup %1251 }
 0x3bf   :  { %281 = vrot.lane.b32.xlu1 %v1252_v51, %s1380_s15 }
 0x429   :  { %v245_v52 = vpop.permute.xlu0 %244 }
 0x42a   :  { %v1554_v49 = vmul.f32 %v245_v52, %v228_v28 }
 0x42c   :  { %290 = vrot.lane.b32.xlu2 %v1554_v49, %s1381_s16 }
 0x431   :  { %v282_v54 = vpop.permute.xlu1 %281 }
 0x432   :  { %v1558_v55 = vmul.f32 %v282_v54, %v265_v41 }
 0x434   :  { %318 = vrot.lane.b32.xlu0 %v1558_v55, %s1381_s16 }
 0x486   :  { %v291_v53 = vpop.permute.xlu2 %290 }
 0x487   :  { %1180 = vmatmul.msk.f32.vlgmr.msrb.gmra.mxu0 %vm33_vm8, %v291_v53 }
 0x488   :  { %834 = vmatpush.msrb.mxu0 %v1421_v0 }
 0x48a   :  { %835 = vmatpush.msrb.mxu0 %v1426_v1 }
 0x48c   :  { %836 = vmatpush.msrb.mxu0 %v1443_v4 }
 0x48e   :  { %837 = vmatpush.msrb.mxu0 %v1457_v6 }
 0x4a6   :  { %v319_v57 = vpop.permute.xlu0 %318 }
 0x4a7   :  { %1182 = vmatmul.msk.f32.vlgmr.msrb.gmra.mxu1 %vm33_vm8, %v319_v57  ;;  %v286_v57 = vmax.f32 %v1520_v58, %v1558_v55 }
 0x4a8   :  { %862 = vmatpush.msrb.mxu1 %v1432_v2 }
 0x4aa   :  { %863 = vmatpush.msrb.mxu1 %v1437_v3 }
 0x4ac   :  { %864 = vmatpush.msrb.mxu1 %v1451_v5 }
 0x4ae   :  { %865 = vmatpush.msrb.mxu1 %v1465_v7 }
 0x504   :  { %v311_v60 = vpop.f32.mrf.mxu0 }
 0x505   :  { %v314_v61 = vadd.f32 %v1179_v59, %v311_v60 }
 0x507   :  { %1253 = vtanh.f32 %v314_v61  ;;  %v1183_v11 = vmul.f32 -1.442695, %v314_v61 }
 0x50d   :  { %v1254_v62 = vpop.eup %1253 }
 0x50e   :  { %365 = vrot.lane.b32.xlu1 %v1254_v62, %s1380_s15 }
 0x524   :  { %v339_v8 = vpop.f32.mrf.mxu1 }
 0x525   :  { %v342_v9 = vadd.f32 %v1181_v63, %v339_v8 }
 0x527   :  { %1255 = vtanh.f32 %v342_v9  ;;  %v1184_v12 = vmul.f32 -1.442695, %v342_v9 }
 0x528   :  { %1257 = vpow2.f32 %v1183_v11 }
 0x529   :  { %1259 = vpow2.f32 %v1184_v12 }
 0x52d   :  { %v1256_v10 = vpop.eup %1255 }
 0x52e   :  { %402 = vrot.lane.b32.xlu2 %v1256_v10, %s1380_s15  ;;  %v1258_v13 = vpop.eup %1257 }
 0x52f   :  { %v346_v14 = vadd.f32 1.0, %v1258_v13  ;;  %v1260_v15 = vpop.eup %1259 }
 0x530   :  { %v383_v16 = vadd.f32 1.0, %v1260_v15 }
 0x531   :  { %1261 = vrcp.f32 %v346_v14  ;;  %v358_v25 = vand.u32 2147483648, %v346_v14  ;;  %vm352_vm2 = vweird.f32 %v346_v14  ;;  %v356_v26 = vand.u32 2147483647, %v346_v14 }
 0x532   :  { %1263 = vrcp.f32 %v383_v16  ;;  %v395_v34 = vand.u32 2147483648, %v383_v16  ;;  %vm389_vm6 = vweird.f32 %v383_v16  ;;  %v393_v35 = vand.u32 2147483647, %v383_v16 }
 0x533   :  { %v359_v29 = vor.u32 1.1754944e-38, %v358_v25  ;;  %vm357_vm4 = vcmp.eq.f32.partialorder %v356_v26, 8.507059e+37 }
 0x534   :  { %v396_v37 = vor.u32 1.1754944e-38, %v395_v34  ;;  %vm394_vm9 = vcmp.eq.f32.partialorder %v393_v35, 8.507059e+37 }
 0x537   :  { %v1262_v17 = vpop.eup %1261 }
 0x538   :  { %v348_v18 = vmul.f32 %v1262_v17, %v346_v14  ;;  %v1264_v20 = vpop.eup %1263  ;;  %vm353_vm1 = vweird.f32 %v1262_v17 }
 0x539   :  { %v385_v22 = vmul.f32 %v1264_v20, %v383_v16  ;;  %vm354_vm3 = vmor %vm352_vm2, %vm353_vm1  ;;  %vm390_vm5 = vweird.f32 %v1264_v20 }
 0x53a   :  { %v349_v19 = vsub.f32 1.0, %v348_v18  ;;  %vm391_vm7 = vmor %vm389_vm6, %vm390_vm5 }
 0x53b   :  { %v386_v24 = vsub.f32 1.0, %v385_v22 }
 0x53c   :  { %v350_v21 = vmul.f32 %v1262_v17, %v349_v19 }
 0x53d   :  { %v387_v28 = vmul.f32 %v1264_v20, %v386_v24 }
 0x53e   :  { %v351_v23 = vadd.f32 %v1262_v17, %v350_v21 }
 0x53f   :  { %v388_v33 = vadd.f32 %v1264_v20, %v387_v28 }
 0x540   :  { %v355_v27 = vsel %vm354_vm3, %v1262_v17, %v351_v23 }
 0x541   :  { %v360_v31 = vsel %vm357_vm4, %v359_v29, %v355_v27  ;;  %v392_v36 = vsel %vm391_vm7, %v1264_v20, %v388_v33 }
 0x542   :  { %v397_v38 = vsel %vm394_vm9, %v396_v37, %v392_v36  ;;  %v363_v41 = vmul.f32 %v360_v31, %v1545_v45  ;;  %v285_v45 = vmax.f32 %v1516_v56, %v1554_v49 }
 0x543   :  { %v400_v44 = vmul.f32 %v397_v38, %v1549_v50 }
 0x580   :  { %v366_v30 = vpop.permute.xlu1 %365 }
 0x581   :  { %v368_v32 = vmul.f32 %v366_v30, %v360_v31 }
 0x583   :  { %370 = vrot.lane.b32.xlu0 %v368_v32, %s1381_s16 }
 0x588   :  { %v403_v39 = vpop.permute.xlu2 %402 }
 0x589   :  { %v405_v40 = vmul.f32 %v403_v39, %v397_v38 }
 0x58b   :  { %407 = vrot.lane.b32.xlu1 %v405_v40, %s1381_s16 }
 0x5f5   :  { %v371_v42 = vpop.permute.xlu0 %370 }
 0x5f6   :  { %v1583_v43 = vadd.f32 %v371_v42, %v363_v41 }
 0x5f8   :  { %1265 = vtanh.f32 %v1583_v43 }
 0x5fd   :  { %v408_v46 = vpop.permute.xlu1 %407 }
 0x5fe   :  { %v1266_v47 = vpop.eup %1265  ;;  %v1587_v48 = vadd.f32 %v408_v46, %v400_v44 }
 0x5ff   :  { %376 = vrot.lane.b32.xlu2 %v1266_v47, %s1380_s15 }
 0x600   :  { %1267 = vtanh.f32 %v1587_v48 }
 0x606   :  { %v1268_v51 = vpop.eup %1267 }
 0x607   :  { %413 = vrot.lane.b32.xlu0 %v1268_v51, %s1380_s15 }
 0x659   :  { %v377_v52 = vpop.permute.xlu2 %376 }
 0x65a   :  { %v379_v54 = vmul.f32 %v377_v52, %v360_v31  ;;  %v1191_v52 = vld [vmem:[%s1801_s0 + $0x8] sm:$0x3] }
 0x65c   :  { %v1594_v53 = vmax.f32 %v285_v45, %v379_v54  ;;  %422 = vrot.lane.b32.xlu1 %v379_v54, %s1381_s16 }
 0x679   :  { %v414_v50 = vpop.permute.xlu0 %413 }
 0x67a   :  { %v416_v59 = vmul.f32 %v414_v50, %v397_v38  ;;  %v1193_v50 = vld [vmem:[%s1802_s1 + $0x6] sm:$0x3] }
 0x67c   :  { %v1599_v60 = vmax.f32 %v286_v57, %v416_v59  ;;  %450 = vrot.lane.b32.xlu2 %v416_v59, %s1381_s16 }
 0x6ce   :  { %v423_v61 = vpop.permute.xlu1 %422 }
 0x6cf   :  { %1186 = vmatmul.msk.f32.vlgmr.msrb.gmra.mxu2 %vm33_vm8, %v423_v61 }
 0x6d0   :  { %966 = vmatpush.msrb.mxu2 %v1421_v0  ;;  %v1185_v0 = vld [vmem:[%s1801_s0 + $0x6] sm:$0x3] }
 0x6d2   :  { %967 = vmatpush.msrb.mxu2 %v1426_v1 }
 0x6d4   :  { %968 = vmatpush.msrb.mxu2 %v1443_v4  ;;  %v1187_v4 = vld [vmem:[%s1802_s1 + $0x8] sm:$0x3] }
 0x6d6   :  { %v451_v56 = vpop.permute.xlu2 %450  ;;  %969 = vmatpush.msrb.mxu2 %v1457_v6 }
 0x6d7   :  { %1188 = vmatmul.msk.f32.vlgmr.msrb.gmra.mxu3 %vm33_vm8, %v451_v56 }
 0x6d8   :  { %993 = vmatpush.msrb.mxu3 %v1432_v2 }
 0x6da   :  { %994 = vmatpush.msrb.mxu3 %v1437_v3 }
 0x6dc   :  { %995 = vmatpush.msrb.mxu3 %v1451_v5 }
 0x6de   :  { %996 = vmatpush.msrb.mxu3 %v1465_v7 }
 0x752   :  { %v443_v1 = vpop.f32.mrf.mxu2 }
 0x753   :  { %v446_v58 = vadd.f32 %v1185_v0, %v443_v1 }
 0x755   :  { %1269 = vtanh.f32 %v446_v58  ;;  %v1189_v5 = vmul.f32 -1.442695, %v446_v58 }
 0x75a   :  { %v471_v6 = vpop.f32.mrf.mxu3 }
 0x75b   :  { %v1270_v49 = vpop.eup %1269  ;;  %v474_v2 = vadd.f32 %v1187_v4, %v471_v6 }
 0x75c   :  { %497 = vrot.lane.b32.xlu0 %v1270_v49, %s1380_s15 }
 0x75d   :  { %1271 = vtanh.f32 %v474_v2  ;;  %v1190_v7 = vmul.f32 -1.442695, %v474_v2 }
 0x75e   :  { %1273 = vpow2.f32 %v1189_v5 }
 0x75f   :  { %1275 = vpow2.f32 %v1190_v7 }
 0x763   :  { %v1272_v3 = vpop.eup %1271 }
 0x764   :  { %534 = vrot.lane.b32.xlu1 %v1272_v3, %s1380_s15  ;;  %v1274_v55 = vpop.eup %1273 }
 0x765   :  { %v478_v62 = vadd.f32 1.0, %v1274_v55  ;;  %v1276_v63 = vpop.eup %1275 }
 0x766   :  { %v515_v8 = vadd.f32 1.0, %v1276_v63 }
 0x767   :  { %1277 = vrcp.f32 %v478_v62  ;;  %v490_v17 = vand.u32 2147483648, %v478_v62  ;;  %vm484_vm11 = vweird.f32 %v478_v62  ;;  %v488_v18 = vand.u32 2147483647, %v478_v62 }
 0x768   :  { %1279 = vrcp.f32 %v515_v8  ;;  %v527_v26 = vand.u32 2147483648, %v515_v8  ;;  %vm521_vm15 = vweird.f32 %v515_v8  ;;  %v525_v27 = vand.u32 2147483647, %v515_v8 }
 0x769   :  { %v491_v21 = vor.u32 1.1754944e-38, %v490_v17  ;;  %vm489_vm13 = vcmp.eq.f32.partialorder %v488_v18, 8.507059e+37 }
 0x76a   :  { %v528_v29 = vor.u32 1.1754944e-38, %v527_v26  ;;  %vm526_vm1 = vcmp.eq.f32.partialorder %v525_v27, 8.507059e+37 }
 0x76d   :  { %v1278_v9 = vpop.eup %1277 }
 0x76e   :  { %v480_v10 = vmul.f32 %v1278_v9, %v478_v62  ;;  %v1280_v12 = vpop.eup %1279  ;;  %vm485_vm10 = vweird.f32 %v1278_v9 }
 0x76f   :  { %v517_v14 = vmul.f32 %v1280_v12, %v515_v8  ;;  %vm486_vm12 = vmor %vm484_vm11, %vm485_vm10  ;;  %vm522_vm14 = vweird.f32 %v1280_v12 }
 0x770   :  { %v481_v11 = vsub.f32 1.0, %v480_v10  ;;  %vm523_vm0 = vmor %vm521_vm15, %vm522_vm14 }
 0x771   :  { %v518_v16 = vsub.f32 1.0, %v517_v14 }
 0x772   :  { %v482_v13 = vmul.f32 %v1278_v9, %v481_v11 }
 0x773   :  { %v519_v20 = vmul.f32 %v1280_v12, %v518_v16 }
 0x774   :  { %v483_v15 = vadd.f32 %v1278_v9, %v482_v13 }
 0x775   :  { %v520_v25 = vadd.f32 %v1280_v12, %v519_v20 }
 0x776   :  { %v487_v19 = vsel %vm486_vm12, %v1278_v9, %v483_v15 }
 0x777   :  { %v492_v23 = vsel %vm489_vm13, %v491_v21, %v487_v19  ;;  %v524_v28 = vsel %vm523_vm0, %v1280_v12, %v520_v25 }
 0x778   :  { %v529_v31 = vsel %vm526_vm1, %v528_v29, %v524_v28  ;;  %v495_v33 = vmul.f32 %v492_v23, %v1583_v43 }
 0x779   :  { %v532_v37 = vmul.f32 %v529_v31, %v1587_v48 }
 0x7ce   :  { %v498_v22 = vpop.permute.xlu0 %497 }
 0x7cf   :  { %v500_v24 = vmul.f32 %v498_v22, %v492_v23 }
 0x7d1   :  { %502 = vrot.lane.b32.xlu2 %v500_v24, %s1381_s16 }
 0x7d6   :  { %v535_v30 = vpop.permute.xlu1 %534 }
 0x7d7   :  { %v537_v32 = vmul.f32 %v535_v30, %v529_v31 }
 0x7d9   :  { %539 = vrot.lane.b32.xlu0 %v537_v32, %s1381_s16 }
 0x82b   :  { %v503_v34 = vpop.permute.xlu2 %502 }
 0x82c   :  { %v1623_v35 = vadd.f32 %v503_v34, %v495_v33 }
 0x82e   :  { %1281 = vtanh.f32 %v1623_v35 }
 0x834   :  { %v1282_v36 = vpop.eup %1281 }
 0x835   :  { %508 = vrot.lane.b32.xlu1 %v1282_v36, %s1380_s15 }
 0x84b   :  { %v540_v38 = vpop.permute.xlu0 %539 }
 0x84c   :  { %v1628_v39 = vadd.f32 %v540_v38, %v532_v37 }
 0x84e   :  { %1283 = vtanh.f32 %v1628_v39 }
 0x854   :  { %v1284_v40 = vpop.eup %1283 }
 0x855   :  { %545 = vrot.lane.b32.xlu2 %v1284_v40, %s1380_s15 }
 0x8a7   :  { %v509_v41 = vpop.permute.xlu1 %508 }
 0x8a8   :  { %v1632_v42 = vmul.f32 %v509_v41, %v492_v23 }
 0x8aa   :  { %v549_v43 = vmax.f32 %v1594_v53, %v1632_v42  ;;  %554 = vrot.lane.b32.xlu0 %v1632_v42, %s1381_s16  ;;  %v1197_v53 = vld [vmem:[%s1801_s0 + $0xa] sm:$0x3] }
 0x8af   :  { %v546_v44 = vpop.permute.xlu2 %545 }
 0x8b0   :  { %v1638_v46 = vmul.f32 %v546_v44, %v529_v31 }
 0x8b2   :  { %v550_v47 = vmax.f32 %v1599_v60, %v1638_v46  ;;  %582 = vrot.lane.b32.xlu1 %v1638_v46, %s1381_s16  ;;  %v1199_v60 = vld [vmem:[%s1802_s1 + $0x4] sm:$0x3] }
 0x91c   :  { %v555_v48 = vpop.permute.xlu0 %554 }
 0x91d   :  { %1192 = vmatmul.msk.f32.vlgmr.msra.gmra.mxu0 %vm33_vm8, %v555_v48 }
 0x924   :  { %v583_v51 = vpop.permute.xlu1 %582 }
 0x925   :  { %1194 = vmatmul.msk.f32.vlgmr.msra.gmra.mxu1 %vm33_vm8, %v583_v51 }
 0x99a   :  { %v575_v45 = vpop.f32.mrf.mxu0 }
 0x99b   :  { %v578_v54 = vadd.f32 %v1191_v52, %v575_v45 }
 0x99d   :  { %1285 = vtanh.f32 %v578_v54  ;;  %v1195_v0 = vmul.f32 -1.442695, %v578_v54 }
 0x9a2   :  { %v603_v57 = vpop.f32.mrf.mxu1 }
 0x9a3   :  { %v1286_v59 = vpop.eup %1285  ;;  %v606_v61 = vadd.f32 %v1193_v50, %v603_v57 }
 0x9a4   :  { %629 = vrot.lane.b32.xlu2 %v1286_v59, %s1380_s15 }
 0x9a5   :  { %1287 = vtanh.f32 %v606_v61  ;;  %v1196_v2 = vmul.f32 -1.442695, %v606_v61 }
 0x9a6   :  { %1289 = vpow2.f32 %v1195_v0 }
 0x9ab   :  { %v1288_v56 = vpop.eup %1287 }
 0x9ac   :  { %666 = vrot.lane.b32.xlu0 %v1288_v56, %s1380_s15  ;;  %v1290_v1 = vpop.eup %1289 }
 0x9ad   :  { %v610_v58 = vadd.f32 1.0, %v1290_v1 }
 0x9af   :  { %1291 = vrcp.f32 %v610_v58  ;;  %v622_v7 = vand.u32 2147483648, %v610_v58  ;;  %vm616_vm3 = vweird.f32 %v610_v58  ;;  %v620_v55 = vand.u32 2147483647, %v610_v58 }
 0x9b0   :  { %1293 = vpow2.f32 %v1196_v2 }
 0x9b1   :  { %v623_v8 = vor.u32 1.1754944e-38, %v622_v7  ;;  %vm621_vm5 = vcmp.eq.f32.partialorder %v620_v55, 8.507059e+37 }
 0x9b5   :  { %v1292_v4 = vpop.eup %1291 }
 0x9b6   :  { %v612_v6 = vmul.f32 %v1292_v4, %v610_v58  ;;  %vm617_vm2 = vweird.f32 %v1292_v4  ;;  %v1294_v62 = vpop.eup %1293 }
 0x9b7   :  { %vm618_vm4 = vmor %vm616_vm3, %vm617_vm2  ;;  %v647_v9 = vadd.f32 1.0, %v1294_v62 }
 0x9b8   :  { %v613_v49 = vsub.f32 1.0, %v612_v6 }
 0x9b9   :  { %1295 = vrcp.f32 %v647_v9  ;;  %v659_v18 = vand.u32 2147483648, %v647_v9  ;;  %vm653_vm7 = vweird.f32 %v647_v9  ;;  %v657_v19 = vand.u32 2147483647, %v647_v9 }
 0x9ba   :  { %v614_v3 = vmul.f32 %v1292_v4, %v613_v49 }
 0x9bb   :  { %v660_v21 = vor.u32 1.1754944e-38, %v659_v18  ;;  %vm658_vm10 = vcmp.eq.f32.partialorder %v657_v19, 8.507059e+37 }
 0x9bc   :  { %v615_v5 = vadd.f32 %v1292_v4, %v614_v3 }
 0x9be   :  { %v619_v63 = vsel %vm618_vm4, %v1292_v4, %v615_v5 }
 0x9bf   :  { %v624_v10 = vsel %vm621_vm5, %v623_v8, %v619_v63  ;;  %v1296_v13 = vpop.eup %1295 }
 0x9c0   :  { %v649_v14 = vmul.f32 %v1296_v13, %v647_v9  ;;  %vm654_vm6 = vweird.f32 %v1296_v13  ;;  %v627_v25 = vmul.f32 %v624_v10, %v1623_v35 }
 0x9c1   :  { %vm655_vm9 = vmor %vm653_vm7, %vm654_vm6 }
 0x9c2   :  { %v650_v15 = vsub.f32 1.0, %v649_v14 }
 0x9c4   :  { %v651_v16 = vmul.f32 %v1296_v13, %v650_v15 }
 0x9c6   :  { %v652_v17 = vadd.f32 %v1296_v13, %v651_v16 }
 0x9c8   :  { %v656_v20 = vsel %vm655_vm9, %v1296_v13, %v652_v17 }
 0x9c9   :  { %v661_v23 = vsel %vm658_vm10, %v660_v21, %v656_v20 }
 0x9ca   :  { %v664_v28 = vmul.f32 %v661_v23, %v1628_v39 }
 0x9fe   :  { %v630_v11 = vpop.permute.xlu2 %629 }
 0x9ff   :  { %v632_v12 = vmul.f32 %v630_v11, %v624_v10 }
 0xa01   :  { %634 = vrot.lane.b32.xlu1 %v632_v12, %s1381_s16 }
 0xa1e   :  { %v667_v22 = vpop.permute.xlu0 %666 }
 0xa1f   :  { %v669_v24 = vmul.f32 %v667_v22, %v661_v23 }
 0xa21   :  { %671 = vrot.lane.b32.xlu2 %v669_v24, %s1381_s16 }
 0xa73   :  { %v635_v26 = vpop.permute.xlu1 %634 }
 0xa74   :  { %v1657_v27 = vadd.f32 %v635_v26, %v627_v25 }
 0xa76   :  { %1297 = vtanh.f32 %v1657_v27 }
 0xa7b   :  { %v672_v29 = vpop.permute.xlu2 %671 }
 0xa7c   :  { %v1298_v30 = vpop.eup %1297  ;;  %v1661_v31 = vadd.f32 %v672_v29, %v664_v28 }
 0xa7d   :  { %640 = vrot.lane.b32.xlu0 %v1298_v30, %s1380_s15 }
 0xa7e   :  { %1299 = vtanh.f32 %v1661_v31 }
 0xa84   :  { %v1300_v32 = vpop.eup %1299 }
 0xa85   :  { %677 = vrot.lane.b32.xlu1 %v1300_v32, %s1380_s15 }
 0xaef   :  { %v641_v33 = vpop.permute.xlu0 %640 }
 0xaf0   :  { %v643_v34 = vmul.f32 %v641_v33, %v624_v10 }
 0xaf2   :  { %v1669_v35 = vmax.f32 %v549_v43, %v643_v34  ;;  %686 = vrot.lane.b32.xlu2 %v643_v34, %s1381_s16  ;;  %v1205_v34 = vld [vmem:[%s1802_s1 + $0x2] sm:$0x3] }
 0xaf7   :  { %v678_v36 = vpop.permute.xlu1 %677 }
 0xaf8   :  { %v680_v37 = vmul.f32 %v678_v36, %v661_v23 }
 0xafa   :  { %v1675_v38 = vmax.f32 %v550_v47, %v680_v37  ;;  %714 = vrot.lane.b32.xlu0 %v680_v37, %s1381_s16 }
 0xb4c   :  { %v687_v39 = vpop.permute.xlu2 %686 }
 0xb4d   :  { %1198 = vmatmul.msk.f32.vlgmr.msra.gmra.mxu2 %vm33_vm8, %v687_v39 }
 0xb6c   :  { %v715_v40 = vpop.permute.xlu0 %714 }
 0xb6d   :  { %1200 = vmatmul.msk.f32.vlgmr.msra.gmra.mxu3 %vm33_vm8, %v715_v40 }
 0xbd0   :  { %v707_v41 = vpop.f32.mrf.mxu2 }
 0xbd1   :  { %v710_v42 = vadd.f32 %v1197_v53, %v707_v41 }
 0xbd3   :  { %1301 = vtanh.f32 %v710_v42  ;;  %v1201_v48 = vmul.f32 -1.442695, %v710_v42 }
 0xbd9   :  { %v1302_v43 = vpop.eup %1301 }
 0xbda   :  { %761 = vrot.lane.b32.xlu1 %v1302_v43, %s1380_s15 }
 0xbf0   :  { %v735_v44 = vpop.f32.mrf.mxu3 }
 0xbf1   :  { %v738_v46 = vadd.f32 %v1199_v60, %v735_v44 }
 0xbf3   :  { %1303 = vtanh.f32 %v738_v46  ;;  %v1202_v51 = vmul.f32 -1.442695, %v738_v46 }
 0xbf4   :  { %1305 = vpow2.f32 %v1201_v48 }
 0xbf5   :  { %1307 = vpow2.f32 %v1202_v51 }
 0xbf9   :  { %v1304_v47 = vpop.eup %1303 }
 0xbfa   :  { %798 = vrot.lane.b32.xlu2 %v1304_v47, %s1380_s15  ;;  %v1306_v52 = vpop.eup %1305 }
 0xbfb   :  { %v742_v45 = vadd.f32 1.0, %v1306_v52  ;;  %v1308_v54 = vpop.eup %1307 }
 0xbfc   :  { %v779_v50 = vadd.f32 1.0, %v1308_v54 }
 0xbfd   :  { %1309 = vrcp.f32 %v742_v45  ;;  %v754_v6 = vand.u32 2147483648, %v742_v45  ;;  %vm748_vm12 = vweird.f32 %v742_v45  ;;  %v752_v49 = vand.u32 2147483647, %v742_v45 }
 0xbfe   :  { %1311 = vrcp.f32 %v779_v50  ;;  %v791_v8 = vand.u32 2147483648, %v779_v50  ;;  %vm785_vm0 = vweird.f32 %v779_v50  ;;  %v789_v9 = vand.u32 2147483647, %v779_v50 }
 0xbff   :  { %v755_v5 = vor.u32 1.1754944e-38, %v754_v6  ;;  %vm753_vm14 = vcmp.eq.f32.partialorder %v752_v49, 8.507059e+37 }
 0xc00   :  { %v792_v11 = vor.u32 1.1754944e-38, %v791_v8  ;;  %vm790_vm2 = vcmp.eq.f32.partialorder %v789_v9, 8.507059e+37 }
 0xc03   :  { %v1310_v57 = vpop.eup %1309 }
 0xc04   :  { %v744_v59 = vmul.f32 %v1310_v57, %v742_v45  ;;  %v1312_v56 = vpop.eup %1311  ;;  %vm749_vm11 = vweird.f32 %v1310_v57 }
 0xc05   :  { %v781_v1 = vmul.f32 %v1312_v56, %v779_v50  ;;  %vm750_vm13 = vmor %vm748_vm12, %vm749_vm11  ;;  %vm786_vm15 = vweird.f32 %v1312_v56 }
 0xc06   :  { %v745_v61 = vsub.f32 1.0, %v744_v59  ;;  %vm787_vm1 = vmor %vm785_vm0, %vm786_vm15 }
 0xc07   :  { %v782_v4 = vsub.f32 1.0, %v781_v1 }
 0xc08   :  { %v746_v0 = vmul.f32 %v1310_v57, %v745_v61 }
 0xc09   :  { %v783_v3 = vmul.f32 %v1312_v56, %v782_v4 }
 0xc0a   :  { %v747_v58 = vadd.f32 %v1310_v57, %v746_v0 }
 0xc0b   :  { %v784_v63 = vadd.f32 %v1312_v56, %v783_v3 }
 0xc0c   :  { %v751_v2 = vsel %vm750_vm13, %v1310_v57, %v747_v58 }
 0xc0d   :  { %v756_v55 = vsel %vm753_vm14, %v755_v5, %v751_v2  ;;  %v788_v10 = vsel %vm787_vm1, %v1312_v56, %v784_v63 }
 0xc0e   :  { %v793_v12 = vsel %vm790_vm2, %v792_v11, %v788_v10  ;;  %v759_v15 = vmul.f32 %v756_v55, %v1657_v27 }
 0xc0f   :  { %v796_v18 = vmul.f32 %v793_v12, %v1661_v31  ;;  %v1203_v31 = vld [vmem:[%s1801_s0 + $0xc] sm:$0x3] }
 0xc4c   :  { %v762_v7 = vpop.permute.xlu1 %761 }
 0xc4d   :  { %v764_v62 = vmul.f32 %v762_v7, %v756_v55 }
 0xc4f   :  { %766 = vrot.lane.b32.xlu0 %v764_v62, %s1381_s16 }
 0xc54   :  { %v799_v13 = vpop.permute.xlu2 %798 }
 0xc55   :  { %v801_v14 = vmul.f32 %v799_v13, %v793_v12 }
 0xc57   :  { %803 = vrot.lane.b32.xlu1 %v801_v14, %s1381_s16 }
 0xcc1   :  { %v767_v16 = vpop.permute.xlu0 %766 }
 0xcc2   :  { %v1691_v17 = vadd.f32 %v767_v16, %v759_v15 }
 0xcc4   :  { %1313 = vtanh.f32 %v1691_v17 }
 0xcc9   :  { %v804_v19 = vpop.permute.xlu1 %803 }
 0xcca   :  { %v1314_v20 = vpop.eup %1313  ;;  %v1695_v21 = vadd.f32 %v804_v19, %v796_v18 }
 0xccb   :  { %772 = vrot.lane.b32.xlu2 %v1314_v20, %s1380_s15 }
 0xccc   :  { %1315 = vtanh.f32 %v1695_v21 }
 0xcd2   :  { %v1316_v22 = vpop.eup %1315 }
 0xcd3   :  { %809 = vrot.lane.b32.xlu0 %v1316_v22, %s1380_s15 }
 0xd25   :  { %v773_v23 = vpop.permute.xlu2 %772 }
 0xd26   :  { %v1700_v24 = vmul.f32 %v773_v23, %v756_v55 }
 0xd28   :  { %v813_v25 = vmax.f32 %v1669_v35, %v1700_v24  ;;  %818 = vrot.lane.b32.xlu1 %v1700_v24, %s1381_s16  ;;  %v1209_v35 = vld [vmem:[%s1801_s0 + $0xe] sm:$0x3] }
 0xd45   :  { %v810_v26 = vpop.permute.xlu0 %809 }
 0xd46   :  { %v1706_v27 = vmul.f32 %v810_v26, %v793_v12 }
 0xd48   :  { %v814_v28 = vmax.f32 %v1675_v38, %v1706_v27  ;;  %846 = vrot.lane.b32.xlu2 %v1706_v27, %s1381_s16  ;;  %v975_v38 = vld [vmem:[%s1802_s1] sm:$0x3] }
 0xd9a   :  { %v819_v29 = vpop.permute.xlu1 %818 }
 0xd9b   :  { %1204 = vmatmul.msk.f32.vlgmr.msrb.gmra.mxu0 %vm33_vm8, %v819_v29 }
 0xda2   :  { %v847_v30 = vpop.permute.xlu2 %846 }
 0xda3   :  { %1206 = vmatmul.msk.f32.vlgmr.msrb.gmra.mxu1 %vm33_vm8, %v847_v30 }
 0xe18   :  { %v839_v32 = vpop.f32.mrf.mxu0 }
 0xe19   :  { %v842_v33 = vadd.f32 %v1203_v31, %v839_v32 }
 0xe1b   :  { %1317 = vtanh.f32 %v842_v33  ;;  %v1207_v53 = vmul.f32 -1.442695, %v842_v33 }
 0xe20   :  { %v867_v36 = vpop.f32.mrf.mxu1 }
 0xe21   :  { %v1318_v37 = vpop.eup %1317  ;;  %v870_v39 = vadd.f32 %v1205_v34, %v867_v36 }
 0xe22   :  { %893 = vrot.lane.b32.xlu0 %v1318_v37, %s1380_s15 }
 0xe23   :  { %1319 = vtanh.f32 %v870_v39  ;;  %v1208_v41 = vmul.f32 -1.442695, %v870_v39 }
 0xe24   :  { %1321 = vpow2.f32 %v1207_v53 }
 0xe25   :  { %1323 = vpow2.f32 %v1208_v41 }
 0xe29   :  { %v1320_v40 = vpop.eup %1319 }
 0xe2a   :  { %930 = vrot.lane.b32.xlu1 %v1320_v40, %s1380_s15  ;;  %v1322_v42 = vpop.eup %1321 }
 0xe2b   :  { %v874_v43 = vadd.f32 1.0, %v1322_v42  ;;  %v1324_v60 = vpop.eup %1323 }
 0xe2c   :  { %v911_v44 = vadd.f32 1.0, %v1324_v60 }
 0xe2d   :  { %1325 = vrcp.f32 %v874_v43  ;;  %v886_v57 = vand.u32 2147483648, %v874_v43  ;;  %vm880_vm4 = vweird.f32 %v874_v43  ;;  %v884_v59 = vand.u32 2147483647, %v874_v43 }
 0xe2e   :  { %1327 = vrcp.f32 %v911_v44  ;;  %v923_v49 = vand.u32 2147483648, %v911_v44  ;;  %vm917_vm9 = vweird.f32 %v911_v44  ;;  %v921_v2 = vand.u32 2147483647, %v911_v44 }
 0xe2f   :  { %v887_v0 = vor.u32 1.1754944e-38, %v886_v57  ;;  %vm885_vm6 = vcmp.eq.f32.partialorder %v884_v59, 8.507059e+37 }
 0xe30   :  { %v924_v5 = vor.u32 1.1754944e-38, %v923_v49  ;;  %vm922_vm11 = vcmp.eq.f32.partialorder %v921_v2, 8.507059e+37 }
 0xe33   :  { %v1326_v46 = vpop.eup %1325 }
 0xe34   :  { %v876_v47 = vmul.f32 %v1326_v46, %v874_v43  ;;  %v1328_v51 = vpop.eup %1327  ;;  %vm881_vm3 = vweird.f32 %v1326_v46 }
 0xe35   :  { %v913_v45 = vmul.f32 %v1328_v51, %v911_v44  ;;  %vm882_vm5 = vmor %vm880_vm4, %vm881_vm3  ;;  %vm918_vm7 = vweird.f32 %v1328_v51  ;;  %vm1141_vm4 = vcmask 25600  }
 0xe36   :  { %v877_v48 = vsub.f32 1.0, %v876_v47  ;;  %vm919_vm10 = vmor %vm917_vm9, %vm918_vm7 }
 0xe37   :  { %v914_v50 = vsub.f32 1.0, %v913_v45 }
 0xe38   :  { %v878_v52 = vmul.f32 %v1326_v46, %v877_v48 }
 0xe39   :  { %v915_v56 = vmul.f32 %v1328_v51, %v914_v50 }
 0xe3a   :  { %v879_v54 = vadd.f32 %v1326_v46, %v878_v52 }
 0xe3b   :  { %v916_v6 = vadd.f32 %v1328_v51, %v915_v56 }
 0xe3c   :  { %v883_v61 = vsel %vm882_vm5, %v1326_v46, %v879_v54 }
 0xe3d   :  { %v888_v58 = vsel %vm885_vm6, %v887_v0, %v883_v61  ;;  %v920_v3 = vsel %vm919_vm10, %v1328_v51, %v916_v6 }
 0xe3e   :  { %v925_v55 = vsel %vm922_vm11, %v924_v5, %v920_v3  ;;  %v891_v63 = vmul.f32 %v888_v58, %v1691_v17 }
 0xe3f   :  { %v928_v11 = vmul.f32 %v925_v55, %v1695_v21 }
 0xe94   :  { %v894_v1 = vpop.permute.xlu0 %893 }
 0xe95   :  { %v896_v4 = vmul.f32 %v894_v1, %v888_v58 }
 0xe97   :  { %898 = vrot.lane.b32.xlu2 %v896_v4, %s1381_s16 }
 0xe9c   :  { %v931_v7 = vpop.permute.xlu1 %930 }
 0xe9d   :  { %v933_v62 = vmul.f32 %v931_v7, %v925_v55 }
 0xe9f   :  { %935 = vrot.lane.b32.xlu0 %v933_v62, %s1381_s16  ;;  %v1084_v62 = vld [vmem:[%s1805_s4 + $0x30] sm:$0xff] }
 0xef1   :  { %v899_v8 = vpop.permute.xlu2 %898 }
 0xef2   :  { %v1725_v9 = vadd.f32 %v899_v8, %v891_v63  ;;  %v1083_v63 = vld [vmem:[%s1805_s4 + $0x28] sm:$0xff]  ;;  %v1082_v8 = vld [vmem:[%s1805_s4 + $0x20] sm:$0xff] }
 0xef4   :  { %1329 = vtanh.f32 %v1725_v9 }
 0xefa   :  { %v1330_v10 = vpop.eup %1329 }
 0xefb   :  { %904 = vrot.lane.b32.xlu1 %v1330_v10, %s1380_s15 }
 0xf11   :  { %v936_v12 = vpop.permute.xlu0 %935 }
 0xf12   :  { %v1730_v13 = vadd.f32 %v936_v12, %v928_v11 }
 0xf14   :  { %1331 = vtanh.f32 %v1730_v13 }
 0xf1a   :  { %v1332_v14 = vpop.eup %1331 }
 0xf1b   :  { %941 = vrot.lane.b32.xlu2 %v1332_v14, %s1380_s15 }
 0xf6d   :  { %v905_v15 = vpop.permute.xlu1 %904 }
 0xf6e   :  { %v907_v16 = vmul.f32 %v905_v15, %v888_v58  ;;  %v1081_v15 = vld [vmem:[%s1805_s4 + $0x18] sm:$0xff] }
 0xf6f   :  { %1128 = vmatpush.msra.mxu1 %v1081_v15 }
 0xf70   :  { %v1737_v17 = vmax.f32 %v813_v25, %v907_v16  ;;  %950 = vrot.lane.b32.xlu0 %v907_v16, %s1381_s16  ;;  %v1080_v16 = vld [vmem:[%s1805_s4 + $0x10] sm:$0xff] }
 0xf71   :  { %1129 = vmatpush.msra.mxu1 %v1080_v16 }
 0xf75   :  { %v942_v18 = vpop.permute.xlu2 %941 }
 0xf76   :  { %v944_v19 = vmul.f32 %v942_v18, %v925_v55  ;;  %v1085_v55 = vld [vmem:[%s1805_s4 + $0x38] sm:$0xff]  ;;  %v1078_v18 = vld [vmem:[%s1805_s4] sm:$0xff] }
 0xf77   :  { %1103 = vmatpush.msra.mxu0 %v1085_v55 }
 0xf78   :  { %v1743_v20 = vmax.f32 %v814_v28, %v944_v19  ;;  %977 = vrot.lane.b32.xlu1 %v944_v19, %s1381_s16 }
 0xf79   :  { %1104 = vmatpush.msra.mxu0 %v1084_v62 }
 0xf7b   :  { %1105 = vmatpush.msra.mxu0 %v1083_v63 }
 0xf7d   :  { %1106 = vmatpush.msra.mxu0 %v1082_v8 }
 0xfe2   :  { %v951_v21 = vpop.permute.xlu0 %950 }
 0xfe3   :  { %1210 = vmatmul.msk.f32.vlgmr.msrb.gmra.mxu2 %vm33_vm8, %v951_v21  ;;  %v1220_v21 = vld [vmem:[%s1806_s5] ss:$0 sm:$0xff] }
 0xfea   :  { %v978_v22 = vpop.permute.xlu1 %977 }
 0xfeb   :  { %1211 = vmatmul.msk.f32.vlgmr.msrb.gmra.mxu3 %vm33_vm8, %v978_v22 }
0x1066   :  { %v971_v23 = vpop.f32.mrf.mxu2 }
0x1067   :  { %v974_v24 = vadd.f32 %v1209_v35, %v971_v23 }
0x1069   :  { %1333 = vtanh.f32 %v974_v24  ;;  %v1212_v29 = vmul.f32 -1.442695, %v974_v24 }
0x106e   :  { %v998_v25 = vpop.f32.mrf.mxu3 }
0x106f   :  { %v1334_v26 = vpop.eup %1333  ;;  %v1001_v27 = vadd.f32 %v998_v25, %v975_v38 }
0x1070   :  { %1024 = vrot.lane.b32.xlu2 %v1334_v26, %s1380_s15 }
0x1071   :  { %1335 = vtanh.f32 %v1001_v27  ;;  %v1213_v36 = vmul.f32 -1.442695, %v1001_v27 }
0x1072   :  { %1337 = vpow2.f32 %v1212_v29 }
0x1077   :  { %v1336_v28 = vpop.eup %1335 }
0x1078   :  { %1061 = vrot.lane.b32.xlu0 %v1336_v28, %s1380_s15  ;;  %v1338_v30 = vpop.eup %1337 }
0x1079   :  { %v1005_v31 = vadd.f32 1.0, %v1338_v30 }
0x107b   :  { %1339 = vrcp.f32 %v1005_v31  ;;  %v1017_v40 = vand.u32 2147483648, %v1005_v31  ;;  %vm1011_vm13 = vweird.f32 %v1005_v31  ;;  %v1015_v53 = vand.u32 2147483647, %v1005_v31 }
0x107c   :  { %1341 = vpow2.f32 %v1213_v36 }
0x107d   :  { %v1018_v43 = vor.u32 1.1754944e-38, %v1017_v40  ;;  %vm1016_vm15 = vcmp.eq.f32.partialorder %v1015_v53, 8.507059e+37 }
0x1081   :  { %v1340_v32 = vpop.eup %1339 }
0x1082   :  { %v1007_v33 = vmul.f32 %v1340_v32, %v1005_v31  ;;  %vm1012_vm12 = vweird.f32 %v1340_v32  ;;  %v1342_v41 = vpop.eup %1341 }
0x1083   :  { %vm1013_vm14 = vmor %vm1011_vm13, %vm1012_vm12  ;;  %v1042_v60 = vadd.f32 1.0, %v1342_v41 }
0x1084   :  { %v1008_v34 = vsub.f32 1.0, %v1007_v33 }
0x1085   :  { %1343 = vrcp.f32 %v1042_v60  ;;  %v1054_v50 = vand.u32 2147483648, %v1042_v60  ;;  %vm1048_vm1 = vweird.f32 %v1042_v60  ;;  %v1052_v57 = vand.u32 2147483647, %v1042_v60 }
0x1086   :  { %v1009_v37 = vmul.f32 %v1340_v32, %v1008_v34 }
0x1087   :  { %v1055_v61 = vor.u32 1.1754944e-38, %v1054_v50  ;;  %vm1053_vm3 = vcmp.eq.f32.partialorder %v1052_v57, 8.507059e+37 }
0x1088   :  { %v1010_v39 = vadd.f32 %v1340_v32, %v1009_v37 }
0x108a   :  { %v1014_v42 = vsel %vm1013_vm14, %v1340_v32, %v1010_v39 }
0x108b   :  { %v1019_v44 = vsel %vm1016_vm15, %v1018_v43, %v1014_v42  ;;  %v1344_v48 = vpop.eup %1343 }
0x108c   :  { %v1044_v51 = vmul.f32 %v1344_v48, %v1042_v60  ;;  %vm1049_vm0 = vweird.f32 %v1344_v48  ;;  %v1022_v58 = vmul.f32 %v1019_v44, %v1725_v9 }
0x108d   :  { %vm1050_vm2 = vmor %vm1048_vm1, %vm1049_vm0 }
0x108e   :  { %v1045_v52 = vsub.f32 1.0, %v1044_v51 }
0x1090   :  { %v1046_v45 = vmul.f32 %v1344_v48, %v1045_v52 }
0x1092   :  { %v1047_v54 = vadd.f32 %v1344_v48, %v1046_v45 }
0x1094   :  { %v1051_v59 = vsel %vm1050_vm2, %v1344_v48, %v1047_v54 }
0x1095   :  { %v1056_v0 = vsel %vm1053_vm3, %v1055_v61, %v1051_v59 }
0x1096   :  { %v1059_v49 = vmul.f32 %v1056_v0, %v1730_v13 }
0x10ca   :  { %v1025_v46 = vpop.permute.xlu2 %1024 }
0x10cb   :  { %v1027_v47 = vmul.f32 %v1025_v46, %v1019_v44 }
0x10cd   :  { %1029 = vrot.lane.b32.xlu1 %v1027_v47, %s1381_s16 }
0x10ea   :  { %v1062_v56 = vpop.permute.xlu0 %1061 }
0x10eb   :  { %v1064_v1 = vmul.f32 %v1062_v56, %v1056_v0 }
0x10ed   :  { %1066 = vrot.lane.b32.xlu2 %v1064_v1, %s1381_s16 }
0x113f   :  { %v1030_v4 = vpop.permute.xlu1 %1029 }
0x1140   :  { %v1032_v6 = vadd.f32 %v1030_v4, %v1022_v58 }
0x1142   :  { %1345 = vtanh.f32 %v1032_v6 }
0x1147   :  { %v1067_v2 = vpop.permute.xlu2 %1066 }
0x1148   :  { %v1346_v3 = vpop.eup %1345  ;;  %v1069_v5 = vadd.f32 %v1067_v2, %v1059_v49 }
0x1149   :  { %1035 = vrot.lane.b32.xlu0 %v1346_v3, %s1380_s15 }
0x114a   :  { %1347 = vtanh.f32 %v1069_v5 }
0x1150   :  { %v1348_v7 = vpop.eup %1347 }
0x1151   :  { %1072 = vrot.lane.b32.xlu1 %v1348_v7, %s1380_s15 }
0x11bb   :  { %v1036_v9 = vpop.permute.xlu0 %1035 }
0x11bc   :  { %v1038_v10 = vmul.f32 %v1036_v9, %v1019_v44 }
0x11be   :  { %v1076_v11 = vmax.f32 %v1737_v17, %v1038_v10  ;;  %v1079_v17 = vld [vmem:[%s1805_s4 + $0x8] sm:$0xff]  ;;  %s1382_s4 = smov [#allocation2]  }
0x11bf   :  { %1130 = vmatpush.msra.mxu1 %v1079_v17  ;;  %s1159_s5 = sshll.u32 %s1382_s4, 4  ;;  %s1160_s5 = int_to_ptr.vmem [resolvable:$true] %s1159_s5 }
0x11c0   :  { %1112 = vrot.lane.b32.xlu0 %v1076_v11, %s1381_s16 }
0x11c1   :  { %1131 = vmatpush.msra.mxu1 %v1078_v18 }
0x11c3   :  { %v1073_v12 = vpop.permute.xlu1 %1072 }
0x11c4   :  { %v1075_v13 = vmul.f32 %v1073_v12, %v1056_v0 }
0x11c6   :  { %v1077_v14 = vmax.f32 %v1743_v20, %v1075_v13 }
0x11c8   :  { %1087 = vrot.lane.b32.xlu2 %v1077_v14, %s1381_s16 }
0x1222   :  { %v1088_v19 = vpop.permute.xlu2 %1087 }
0x1223   :  { %1214 = vmatmul.msk.f32.vlgmr.msra.gmra.mxu0 %vm33_vm8, %v1088_v19 }
0x1232   :  { %v1113_v20 = vpop.permute.xlu0 %1112 }
0x1233   :  { %1215 = vmatmul.msk.f32.vlgmr.msra.gmra.mxu1 %vm33_vm8, %v1113_v20 }
0x12a0   :  { %v1108_v22 = vpop.f32.mrf.mxu0 }
0x12b0   :  { %v1133_v35 = vpop.f32.mrf.mxu1 }
0x12b1   :  { %v1134_v23 = vadd.f32 %v1133_v35, %v1108_v22 }
0x12b3   :  { %v1140_v24 = vadd.f32 %v1220_v21, %v1134_v23 }
0x12b5   :  { %v1142_v38 = vsel %vm1141_vm4, %v1140_v24, -inf }
0x12b6   :  { %1143 = vmax.xlane.f32.xlu1 %v1142_v38 }
0x1329   :  { %v1144_v25 = vpop.xlane.xlu1 %1143 }
0x132a   :  { %v1145_v26 = vsub.f32 %v1140_v24, %v1144_v25 }
0x132c   :  { %v1146_v27 = vmul.f32 1.442695, %v1145_v26 }
0x132e   :  { %1349 = vpow2.f32 %v1146_v27 }
0x1334   :  { %v1350_v28 = vpop.eup %1349 }
0x1335   :  { %v1148_v29 = vsel %vm1141_vm4, %v1350_v28, 0.0 }
0x1336   :  { %1149 = vadd.xlane.f32.xlu2 %v1148_v29 }
0x13a9   :  { %v1150_v30 = vpop.xlane.xlu2 %1149 }
0x13aa   :  { %1351 = vrcp.f32 %v1150_v30 }
0x13b0   :  { %v1352_v31 = vpop.eup %1351 }
0x13b1   :  { %v1152_v32 = vmul.f32 %v1352_v31, %v1350_v28 }
0x13b3   :  { %1153 = vst.msk [vmem:[#allocation2] sm:$0x3] %vm1141_vm4, %v1152_v32 }
0x13b4   :  { %1164 = dma.vmem_to_hbm [thread:$0]  %s1160_s5, 32, %s1162_s2, [#allocation3]  }
0x13b5   :  { %1377 = dma.done.wait [#allocation3], 32  }
0x13b6   :  { %1378 = vsyncadd [#allocation3], 4294967264 }
0x13b7   :  { %1169 = vsyncpa [#allocation3], 1 }

</bundles_post_ra>
